<compile_context>
chip_gen: v6e
topology: v6e:2x2x1
jax: 0.10.0
libtpu: 0.0.40
codegen_flags: <defaults>
</compile_context>

<pallas_src>
import numpy as np

import jax
import jax.numpy as jnp
from jax.experimental import pallas as pl
from jax.experimental.pallas import tpu as pltpu


_VMEM = pl.BlockSpec(memory_space=pltpu.MemorySpace.VMEM)


# ----------------------------- fused Pallas kernel --------------------------

def _lenet_kernel(xr_ref, cw1_ref, cb1_ref, cw2_ref, cb2_ref,
                  wf1_ref, bf1_ref, wf2_ref, bf2_ref, wf3_ref, bf3_ref,
                  o_ref, a1_ref, a2_ref):
    """Whole LeNet forward, VMEM resident.

    xr_ref : (4, N, 8, 32)  zero-padded 32x32 input rows, split by (row mod 4)
    cw1_ref: (5, 32, 256)   conv1 banded weights; lane = d1w*128 + pw*8 + cout
    cb1_ref: (1, 128)       conv1 bias tiled over pw        (lane = pw*8 + cout)
    cw2_ref: (5, 128, 256)  conv2 banded weights; row = pw1*8 + cin,
                            lane = d2w*128 + pw2*16 + cout
    cb2_ref: (1, 128)       conv2 bias tiled over pw2       (lane = pw2*16+cout)
    wf1_ref: (5, 128, 128)  fc1 weights split by pooled row ph2 (cols padded)
    wf2/wf3: (128, 128)     fc2 / fc3 weights, zero padded, pre-transposed
    o_ref  : (N, 128)       logits in lanes 0..9 (lane-dense output tile)
    a1_ref : (2, 7, 128)    scratch: a1[e][v, pw*8+ci]   = pool1[ci, 2v+e, pw]
    a2_ref : (N, 5, 128)    scratch: a2[n][ph2, pw2*16+c] = pool2[c, ph2, pw2]
    """
    n_batch = xr_ref.shape[1]
    f32 = jnp.float32

    for n in range(n_batch):
        # ---- conv1 (1->6, k=5, pad=2) + ReLU + 2x2 maxpool, fused -----------
        for e in range(2):                      # parity of the pooled row
            best = None
            for d1h in range(2):                # row inside the 2x2 pool window
                acc = jnp.zeros((7, 256), f32)
                for kh in range(5):
                    s = 2 * e + d1h + kh        # padded-input row offset, 0..7
                    slab = xr_ref[s % 4, n, s // 4:s // 4 + 7, :]     # (7, 32)
                    acc = acc + jnp.dot(slab, cw1_ref[kh],
                                        preferred_element_type=f32)
                m = jnp.maximum(acc[:, :128], acc[:, 128:])   # pool over d1w
                best = m if best is None else jnp.maximum(best, m)
            a1_ref[e] = jnp.maximum(best + cb1_ref[...], 0.0)

        # ---- conv2 (6->16, k=5) + ReLU + 2x2 maxpool, fused -----------------
        best2 = None
        for d2h in range(2):
            acc2 = jnp.zeros((5, 256), f32)
            for kh in range(5):
                s = d2h + kh                    # pooled-conv1 row offset, 0..5
                acc2 = acc2 + jnp.dot(a1_ref[s % 2, s // 2:s // 2 + 5, :],
                                      cw2_ref[kh], preferred_element_type=f32)
            m2 = jnp.maximum(acc2[:, :128], acc2[:, 128:])    # pool over d2w
            best2 = m2 if best2 is None else jnp.maximum(best2, m2)
        a2_ref[n] = jnp.maximum(best2 + cb2_ref[...], 0.0)

    # ---- fc1 -> ReLU -> fc2 -> ReLU -> fc3 on the whole batch ---------------
    a2_all = a2_ref[...]                                      # (N, 5, 128)
    f1 = jnp.zeros((n_batch, 128), f32)
    for ph2 in range(5):
        f1 = f1 + jnp.dot(a2_all[:, ph2, :], wf1_ref[ph2],
                          preferred_element_type=f32)
    y = jnp.maximum(f1 + bf1_ref[...], 0.0)
    y = jnp.maximum(jnp.dot(y, wf2_ref[...], preferred_element_type=f32)
                    + bf2_ref[...], 0.0)
    y = jnp.dot(y, wf3_ref[...], preferred_element_type=f32) + bf3_ref[...]
    o_ref[...] = y                               # lanes 10..127 are zero pad


# ------------------------------ forward wrapper -----------------------------

def lenet_forward(kparams, x):
    """x: (N, 1, 28, 28) float32 -> logits (N, 10)."""
    n = x.shape[0]
    xpad = jnp.pad(x[:, 0], ((0, 0), (2, 2), (2, 2)))              # (N, 32, 32)
    # Split padded rows by (row mod 4) so the kernel only ever needs contiguous
    # 7-row windows (conv rows + both pooling parities folded together).
    xr = jnp.stack([xpad[:, r::4, :] for r in range(4)], axis=0)   # (4,N,8,32)

    out = pl.pallas_call(
        _lenet_kernel,
        out_shape=jax.ShapeDtypeStruct((n, 128), jnp.float32),
        in_specs=[_VMEM] * 11,
        out_specs=_VMEM,
        scratch_shapes=[pltpu.VMEM((2, 7, 128), jnp.float32),   # pooled conv1
                        pltpu.VMEM((n, 5, 128), jnp.float32)],  # pooled conv2
    )(xr, kparams["cw1"], kparams["cb1"], kparams["cw2"], kparams["cb2"],
      kparams["wf1"], kparams["bf1"], kparams["wf2"], kparams["bf2"],
      kparams["wf3"], kparams["bf3"])
    return out[:, :10]


# --------------------- parameters (torch conventions) -----------------------

def init_params(key):
    ks = jax.random.split(key, 10)
    s = 0.05
    return {
        "w1": s * jax.random.normal(ks[0], (6, 1, 5, 5), jnp.float32),
        "b1": s * jax.random.normal(ks[1], (6,), jnp.float32),
        "w2": s * jax.random.normal(ks[2], (16, 6, 5, 5), jnp.float32),
        "b2": s * jax.random.normal(ks[3], (16,), jnp.float32),
        "wf1": s * jax.random.normal(ks[4], (120, 16 * 5 * 5), jnp.float32),
        "bf1": s * jax.random.normal(ks[5], (120,), jnp.float32),
        "wf2": s * jax.random.normal(ks[6], (84, 120), jnp.float32),
        "bf2": s * jax.random.normal(ks[7], (84,), jnp.float32),
        "wf3": s * jax.random.normal(ks[8], (10, 84), jnp.float32),
        "bf3": s * jax.random.normal(ks[9], (10,), jnp.float32),
    }


def prepare_kernel_params(p):
    """One-time re-layout of torch-convention weights into the kernel layout."""
    w1 = np.asarray(p["w1"]); b1 = np.asarray(p["b1"])
    w2 = np.asarray(p["w2"]); b2 = np.asarray(p["b2"])
    wf1 = np.asarray(p["wf1"]); bf1 = np.asarray(p["bf1"])
    wf2 = np.asarray(p["wf2"]); bf2 = np.asarray(p["bf2"])
    wf3 = np.asarray(p["wf3"]); bf3 = np.asarray(p["bf3"])

    # conv1 banded weights: acc[v, d1w*128+pw*8+co] =
    #   sum_{kh,kw} xpad[4v+2e+d1h+kh, 2pw+d1w+kw] * w1[co,0,kh,kw]
    cw1 = np.zeros((5, 32, 256), np.float32)
    for kh in range(5):
        for d1w in range(2):
            for pw in range(14):
                for kw in range(5):
                    w = 2 * pw + d1w + kw
                    base = d1w * 128 + pw * 8
                    cw1[kh, w, base:base + 6] = w1[:, 0, kh, kw]
    cb1 = np.zeros((1, 128), np.float32)
    for pw in range(14):
        cb1[0, pw * 8:pw * 8 + 6] = b1

    # conv2 banded weights: rows are pooled-conv1 lanes (pw1*8 + cin),
    # lanes are d2w*128 + pw2*16 + cout.
    cw2 = np.zeros((5, 128, 256), np.float32)
    for kh in range(5):
        for d2w in range(2):
            for pw2 in range(5):
                for kw in range(5):
                    pw1 = 2 * pw2 + d2w + kw
                    base = d2w * 128 + pw2 * 16
                    for ci in range(6):
                        cw2[kh, pw1 * 8 + ci, base:base + 16] = w2[:, ci, kh, kw]
    cb2 = np.zeros((1, 128), np.float32)
    for pw2 in range(5):
        cb2[0, pw2 * 16:pw2 * 16 + 16] = b2

    # fc1: permute columns once so the kernel's (ph2, pw2, cout) flatten order
    # matches torch's NCHW .view(-1, 400); split by ph2, pad to 128 lanes.
    wf1k = np.zeros((5, 128, 128), np.float32)
    for ph2 in range(5):
        for pw2 in range(5):
            for co in range(16):
                wf1k[ph2, pw2 * 16 + co, :120] = wf1[:, co * 25 + ph2 * 5 + pw2]
    bf1p = np.zeros((1, 128), np.float32); bf1p[0, :120] = bf1

    wf2k = np.zeros((128, 128), np.float32); wf2k[:120, :84] = wf2.T
    bf2p = np.zeros((1, 128), np.float32); bf2p[0, :84] = bf2
    wf3k = np.zeros((128, 128), np.float32); wf3k[:84, :10] = wf3.T
    bf3p = np.zeros((1, 128), np.float32); bf3p[0, :10] = bf3

    out = dict(cw1=cw1, cb1=cb1, cw2=cw2, cb2=cb2,
               wf1=wf1k, bf1=bf1p, wf2=wf2k, bf2=bf2p, wf3=wf3k, bf3=bf3p)
    return {k: jnp.asarray(v) for k, v in out.items()}


# --------------------------- pure-JAX reference -----------------------------

def lenet_reference(p, x):
    dn = ("NCHW", "OIHW", "NCHW")
    y = jax.lax.conv_general_dilated(x, p["w1"], (1, 1), ((2, 2), (2, 2)),
                                     dimension_numbers=dn)
    y = jax.nn.relu(y + p["b1"].reshape(1, -1, 1, 1))
    y = jax.lax.reduce_window(y, -jnp.inf, jax.lax.max,
                              (1, 1, 2, 2), (1, 1, 2, 2), "VALID")
    y = jax.lax.conv_general_dilated(y, p["w2"], (1, 1), ((0, 0), (0, 0)),
                                     dimension_numbers=dn)
    y = jax.nn.relu(y + p["b2"].reshape(1, -1, 1, 1))
    y = jax.lax.reduce_window(y, -jnp.inf, jax.lax.max,
                              (1, 1, 2, 2), (1, 1, 2, 2), "VALID")
    y = y.reshape(y.shape[0], -1)
    y = jax.nn.relu(y @ p["wf1"].T + p["bf1"])
    y = jax.nn.relu(y @ p["wf2"].T + p["bf2"])
    return y @ p["wf3"].T + p["bf3"]


# ------------------------------------ main -----------------------------------

if __name__ == "__main__":
    key = jax.random.PRNGKey(0)
    pkey, xkey = jax.random.split(key)
    params = init_params(pkey)
    kparams = prepare_kernel_params(params)      # hoisted one-time re-layout

    # LeNet's 16*5*5 flatten implies a 28x28 single-channel input.
    x = jax.random.normal(xkey, (2, 1, 28, 28), jnp.float32)

    out = jax.jit(lenet_forward)(kparams, x)
    out = jax.block_until_ready(out)
    assert out.shape == (2, 10), out.shape
    assert out.dtype == jnp.float32

    # Correctness check against a plain-XLA LeNet with the same parameters.
    ref = lenet_reference(params, x)
    assert jnp.allclose(out, ref, atol=1e-3, rtol=1e-3), (
        float(jnp.max(jnp.abs(out - ref))))

    print("KERNEL_OK")
</pallas_src>

<mosaic_0001>
module attributes {stable_mosaic.version = 11 : i64} {
  func.func @_lenet_kernel(%arg0: memref<4x2x8x32xf32, #tpu.memory_space<vmem>>, %arg1: memref<5x32x256xf32, #tpu.memory_space<vmem>>, %arg2: memref<1x128xf32, #tpu.memory_space<vmem>>, %arg3: memref<5x128x256xf32, #tpu.memory_space<vmem>>, %arg4: memref<1x128xf32, #tpu.memory_space<vmem>>, %arg5: memref<5x128x128xf32, #tpu.memory_space<vmem>>, %arg6: memref<1x128xf32, #tpu.memory_space<vmem>>, %arg7: memref<128x128xf32, #tpu.memory_space<vmem>>, %arg8: memref<1x128xf32, #tpu.memory_space<vmem>>, %arg9: memref<128x128xf32, #tpu.memory_space<vmem>>, %arg10: memref<1x128xf32, #tpu.memory_space<vmem>>, %arg11: memref<2x128xf32, #tpu.memory_space<vmem>>, %arg12: memref<2x7x128xf32, #tpu.memory_space<vmem>>, %arg13: memref<2x5x128xf32, #tpu.memory_space<vmem>>) attributes {dimension_semantics = [], scalar_prefetch = 0 : i64, scratch_operands = 2 : i64, tpu.core_type = #tpu.core_type<tc>} {
    %cst = arith.constant 0.000000e+00 : f32
    %0 = vector.broadcast %cst : f32 to vector<7x256xf32>
    %c0 = arith.constant 0 : index
    %c0_0 = arith.constant 0 : index
    %c0_1 = arith.constant 0 : index
    %c0_2 = arith.constant 0 : index
    %1 = vector.load %arg0[%c0, %c0_0, %c0_1, %c0_2] : memref<4x2x8x32xf32, #tpu.memory_space<vmem>>, vector<1x1x7x32xf32>
    %2 = vector.shape_cast %1 : vector<1x1x7x32xf32> to vector<7x32xf32>
    %c0_3 = arith.constant 0 : index
    %c0_4 = arith.constant 0 : index
    %c0_5 = arith.constant 0 : index
    %3 = vector.load %arg1[%c0_3, %c0_4, %c0_5] : memref<5x32x256xf32, #tpu.memory_space<vmem>>, vector<1x32x256xf32>
    %4 = vector.shape_cast %3 : vector<1x32x256xf32> to vector<32x256xf32>
    %cst_6 = arith.constant dense<0.000000e+00> : vector<7x256xf32>
    %5 = tpu.matmul %2, %4, %cst_6 {dimension_numbers = #tpu.dot_dimension_numbers<[1], [0], [0], [1], [0, 0, 1, 1], [], []>} : vector<7x32xf32>, vector<32x256xf32>, vector<7x256xf32> -> vector<7x256xf32>
    %6 = arith.addf %0, %5 : vector<7x256xf32>
    %c1 = arith.constant 1 : index
    %c0_7 = arith.constant 0 : index
    %c0_8 = arith.constant 0 : index
    %c0_9 = arith.constant 0 : index
    %7 = vector.load %arg0[%c1, %c0_7, %c0_8, %c0_9] : memref<4x2x8x32xf32, #tpu.memory_space<vmem>>, vector<1x1x7x32xf32>
    %8 = vector.shape_cast %7 : vector<1x1x7x32xf32> to vector<7x32xf32>
    %c1_10 = arith.constant 1 : index
    %c0_11 = arith.constant 0 : index
    %c0_12 = arith.constant 0 : index
    %9 = vector.load %arg1[%c1_10, %c0_11, %c0_12] : memref<5x32x256xf32, #tpu.memory_space<vmem>>, vector<1x32x256xf32>
    %10 = vector.shape_cast %9 : vector<1x32x256xf32> to vector<32x256xf32>
    %cst_13 = arith.constant dense<0.000000e+00> : vector<7x256xf32>
    %11 = tpu.matmul %8, %10, %cst_13 {dimension_numbers = #tpu.dot_dimension_numbers<[1], [0], [0], [1], [0, 0, 1, 1], [], []>} : vector<7x32xf32>, vector<32x256xf32>, vector<7x256xf32> -> vector<7x256xf32>
    %12 = arith.addf %6, %11 : vector<7x256xf32>
    %c2 = arith.constant 2 : index
    %c0_14 = arith.constant 0 : index
    %c0_15 = arith.constant 0 : index
    %c0_16 = arith.constant 0 : index
    %13 = vector.load %arg0[%c2, %c0_14, %c0_15, %c0_16] : memref<4x2x8x32xf32, #tpu.memory_space<vmem>>, vector<1x1x7x32xf32>
    %14 = vector.shape_cast %13 : vector<1x1x7x32xf32> to vector<7x32xf32>
    %c2_17 = arith.constant 2 : index
    %c0_18 = arith.constant 0 : index
    %c0_19 = arith.constant 0 : index
    %15 = vector.load %arg1[%c2_17, %c0_18, %c0_19] : memref<5x32x256xf32, #tpu.memory_space<vmem>>, vector<1x32x256xf32>
    %16 = vector.shape_cast %15 : vector<1x32x256xf32> to vector<32x256xf32>
    %cst_20 = arith.constant dense<0.000000e+00> : vector<7x256xf32>
    %17 = tpu.matmul %14, %16, %cst_20 {dimension_numbers = #tpu.dot_dimension_numbers<[1], [0], [0], [1], [0, 0, 1, 1], [], []>} : vector<7x32xf32>, vector<32x256xf32>, vector<7x256xf32> -> vector<7x256xf32>
    %18 = arith.addf %12, %17 : vector<7x256xf32>
    %c3 = arith.constant 3 : index
    %c0_21 = arith.constant 0 : index
    %c0_22 = arith.constant 0 : index
    %c0_23 = arith.constant 0 : index
    %19 = vector.load %arg0[%c3, %c0_21, %c0_22, %c0_23] : memref<4x2x8x32xf32, #tpu.memory_space<vmem>>, vector<1x1x7x32xf32>
    %20 = vector.shape_cast %19 : vector<1x1x7x32xf32> to vector<7x32xf32>
    %c3_24 = arith.constant 3 : index
    %c0_25 = arith.constant 0 : index
    %c0_26 = arith.constant 0 : index
    %21 = vector.load %arg1[%c3_24, %c0_25, %c0_26] : memref<5x32x256xf32, #tpu.memory_space<vmem>>, vector<1x32x256xf32>
    %22 = vector.shape_cast %21 : vector<1x32x256xf32> to vector<32x256xf32>
    %cst_27 = arith.constant dense<0.000000e+00> : vector<7x256xf32>
    %23 = tpu.matmul %20, %22, %cst_27 {dimension_numbers = #tpu.dot_dimension_numbers<[1], [0], [0], [1], [0, 0, 1, 1], [], []>} : vector<7x32xf32>, vector<32x256xf32>, vector<7x256xf32> -> vector<7x256xf32>
    %24 = arith.addf %18, %23 : vector<7x256xf32>
    %c0_28 = arith.constant 0 : index
    %c0_29 = arith.constant 0 : index
    %c1_30 = arith.constant 1 : index
    %c0_31 = arith.constant 0 : index
    %25 = vector.load %arg0[%c0_28, %c0_29, %c1_30, %c0_31] : memref<4x2x8x32xf32, #tpu.memory_space<vmem>>, vector<1x1x7x32xf32>
    %26 = vector.shape_cast %25 : vector<1x1x7x32xf32> to vector<7x32xf32>
    %c4 = arith.constant 4 : index
    %c0_32 = arith.constant 0 : index
    %c0_33 = arith.constant 0 : index
    %27 = vector.load %arg1[%c4, %c0_32, %c0_33] : memref<5x32x256xf32, #tpu.memory_space<vmem>>, vector<1x32x256xf32>
    %28 = vector.shape_cast %27 : vector<1x32x256xf32> to vector<32x256xf32>
    %cst_34 = arith.constant dense<0.000000e+00> : vector<7x256xf32>
    %29 = tpu.matmul %26, %28, %cst_34 {dimension_numbers = #tpu.dot_dimension_numbers<[1], [0], [0], [1], [0, 0, 1, 1], [], []>} : vector<7x32xf32>, vector<32x256xf32>, vector<7x256xf32> -> vector<7x256xf32>
    %30 = arith.addf %24, %29 : vector<7x256xf32>
    %31 = vector.extract_strided_slice %30 {offsets = [0, 0], sizes = [7, 128], strides = [1, 1]} : vector<7x256xf32> to vector<7x128xf32>
    %32 = vector.extract_strided_slice %30 {offsets = [0, 128], sizes = [7, 128], strides = [1, 1]} : vector<7x256xf32> to vector<7x128xf32>
    %33 = arith.maximumf %31, %32 : vector<7x128xf32>
    %cst_35 = arith.constant 0.000000e+00 : f32
    %34 = vector.broadcast %cst_35 : f32 to vector<7x256xf32>
    %c1_36 = arith.constant 1 : index
    %c0_37 = arith.constant 0 : index
    %c0_38 = arith.constant 0 : index
    %c0_39 = arith.constant 0 : index
    %35 = vector.load %arg0[%c1_36, %c0_37, %c0_38, %c0_39] : memref<4x2x8x32xf32, #tpu.memory_space<vmem>>, vector<1x1x7x32xf32>
    %36 = vector.shape_cast %35 : vector<1x1x7x32xf32> to vector<7x32xf32>
    %c0_40 = arith.constant 0 : index
    %c0_41 = arith.constant 0 : index
    %c0_42 = arith.constant 0 : index
    %37 = vector.load %arg1[%c0_40, %c0_41, %c0_42] : memref<5x32x256xf32, #tpu.memory_space<vmem>>, vector<1x32x256xf32>
    %38 = vector.shape_cast %37 : vector<1x32x256xf32> to vector<32x256xf32>
    %cst_43 = arith.constant dense<0.000000e+00> : vector<7x256xf32>
    %39 = tpu.matmul %36, %38, %cst_43 {dimension_numbers = #tpu.dot_dimension_numbers<[1], [0], [0], [1], [0, 0, 1, 1], [], []>} : vector<7x32xf32>, vector<32x256xf32>, vector<7x256xf32> -> vector<7x256xf32>
    %40 = arith.addf %34, %39 : vector<7x256xf32>
    %c2_44 = arith.constant 2 : index
    %c0_45 = arith.constant 0 : index
    %c0_46 = arith.constant 0 : index
    %c0_47 = arith.constant 0 : index
    %41 = vector.load %arg0[%c2_44, %c0_45, %c0_46, %c0_47] : memref<4x2x8x32xf32, #tpu.memory_space<vmem>>, vector<1x1x7x32xf32>
    %42 = vector.shape_cast %41 : vector<1x1x7x32xf32> to vector<7x32xf32>
    %c1_48 = arith.constant 1 : index
    %c0_49 = arith.constant 0 : index
    %c0_50 = arith.constant 0 : index
    %43 = vector.load %arg1[%c1_48, %c0_49, %c0_50] : memref<5x32x256xf32, #tpu.memory_space<vmem>>, vector<1x32x256xf32>
    %44 = vector.shape_cast %43 : vector<1x32x256xf32> to vector<32x256xf32>
    %cst_51 = arith.constant dense<0.000000e+00> : vector<7x256xf32>
    %45 = tpu.matmul %42, %44, %cst_51 {dimension_numbers = #tpu.dot_dimension_numbers<[1], [0], [0], [1], [0, 0, 1, 1], [], []>} : vector<7x32xf32>, vector<32x256xf32>, vector<7x256xf32> -> vector<7x256xf32>
    %46 = arith.addf %40, %45 : vector<7x256xf32>
    %c3_52 = arith.constant 3 : index
    %c0_53 = arith.constant 0 : index
    %c0_54 = arith.constant 0 : index
    %c0_55 = arith.constant 0 : index
    %47 = vector.load %arg0[%c3_52, %c0_53, %c0_54, %c0_55] : memref<4x2x8x32xf32, #tpu.memory_space<vmem>>, vector<1x1x7x32xf32>
    %48 = vector.shape_cast %47 : vector<1x1x7x32xf32> to vector<7x32xf32>
    %c2_56 = arith.constant 2 : index
    %c0_57 = arith.constant 0 : index
    %c0_58 = arith.constant 0 : index
    %49 = vector.load %arg1[%c2_56, %c0_57, %c0_58] : memref<5x32x256xf32, #tpu.memory_space<vmem>>, vector<1x32x256xf32>
    %50 = vector.shape_cast %49 : vector<1x32x256xf32> to vector<32x256xf32>
    %cst_59 = arith.constant dense<0.000000e+00> : vector<7x256xf32>
    %51 = tpu.matmul %48, %50, %cst_59 {dimension_numbers = #tpu.dot_dimension_numbers<[1], [0], [0], [1], [0, 0, 1, 1], [], []>} : vector<7x32xf32>, vector<32x256xf32>, vector<7x256xf32> -> vector<7x256xf32>
    %52 = arith.addf %46, %51 : vector<7x256xf32>
    %c0_60 = arith.constant 0 : index
    %c0_61 = arith.constant 0 : index
    %c1_62 = arith.constant 1 : index
    %c0_63 = arith.constant 0 : index
    %53 = vector.load %arg0[%c0_60, %c0_61, %c1_62, %c0_63] : memref<4x2x8x32xf32, #tpu.memory_space<vmem>>, vector<1x1x7x32xf32>
    %54 = vector.shape_cast %53 : vector<1x1x7x32xf32> to vector<7x32xf32>
    %c3_64 = arith.constant 3 : index
    %c0_65 = arith.constant 0 : index
    %c0_66 = arith.constant 0 : index
    %55 = vector.load %arg1[%c3_64, %c0_65, %c0_66] : memref<5x32x256xf32, #tpu.memory_space<vmem>>, vector<1x32x256xf32>
    %56 = vector.shape_cast %55 : vector<1x32x256xf32> to vector<32x256xf32>
    %cst_67 = arith.constant dense<0.000000e+00> : vector<7x256xf32>
    %57 = tpu.matmul %54, %56, %cst_67 {dimension_numbers = #tpu.dot_dimension_numbers<[1], [0], [0], [1], [0, 0, 1, 1], [], []>} : vector<7x32xf32>, vector<32x256xf32>, vector<7x256xf32> -> vector<7x256xf32>
    %58 = arith.addf %52, %57 : vector<7x256xf32>
    %c1_68 = arith.constant 1 : index
    %c0_69 = arith.constant 0 : index
    %c1_70 = arith.constant 1 : index
    %c0_71 = arith.constant 0 : index
    %59 = vector.load %arg0[%c1_68, %c0_69, %c1_70, %c0_71] : memref<4x2x8x32xf32, #tpu.memory_space<vmem>>, vector<1x1x7x32xf32>
    %60 = vector.shape_cast %59 : vector<1x1x7x32xf32> to vector<7x32xf32>
    %c4_72 = arith.constant 4 : index
    %c0_73 = arith.constant 0 : index
    %c0_74 = arith.constant 0 : index
    %61 = vector.load %arg1[%c4_72, %c0_73, %c0_74] : memref<5x32x256xf32, #tpu.memory_space<vmem>>, vector<1x32x256xf32>
    %62 = vector.shape_cast %61 : vector<1x32x256xf32> to vector<32x256xf32>
    %cst_75 = arith.constant dense<0.000000e+00> : vector<7x256xf32>
    %63 = tpu.matmul %60, %62, %cst_75 {dimension_numbers = #tpu.dot_dimension_numbers<[1], [0], [0], [1], [0, 0, 1, 1], [], []>} : vector<7x32xf32>, vector<32x256xf32>, vector<7x256xf32> -> vector<7x256xf32>
    %64 = arith.addf %58, %63 : vector<7x256xf32>
    %65 = vector.extract_strided_slice %64 {offsets = [0, 0], sizes = [7, 128], strides = [1, 1]} : vector<7x256xf32> to vector<7x128xf32>
    %66 = vector.extract_strided_slice %64 {offsets = [0, 128], sizes = [7, 128], strides = [1, 1]} : vector<7x256xf32> to vector<7x128xf32>
    %67 = arith.maximumf %65, %66 : vector<7x128xf32>
    %68 = arith.maximumf %33, %67 : vector<7x128xf32>
    %c0_76 = arith.constant 0 : index
    %c0_77 = arith.constant 0 : index
    %69 = vector.load %arg2[%c0_76, %c0_77] : memref<1x128xf32, #tpu.memory_space<vmem>>, vector<1x128xf32>
    %70 = vector.broadcast %69 : vector<1x128xf32> to vector<7x128xf32>
    %71 = arith.addf %68, %70 : vector<7x128xf32>
    %cst_78 = arith.constant 0.000000e+00 : f32
    %72 = vector.broadcast %cst_78 : f32 to vector<7x128xf32>
    %73 = arith.maximumf %71, %72 : vector<7x128xf32>
    %c0_79 = arith.constant 0 : index
    %c0_80 = arith.constant 0 : index
    %c0_81 = arith.constant 0 : index
    %74 = vector.load %arg12[%c0_79, %c0_80, %c0_81] : memref<2x7x128xf32, #tpu.memory_space<vmem>>, vector<1x7x128xf32>
    %75 = vector.shape_cast %74 : vector<1x7x128xf32> to vector<7x128xf32>
    %76 = vector.shape_cast %73 : vector<7x128xf32> to vector<1x7x128xf32>
    tpu.vector_store %arg12[%c0_79, %c0_80, %c0_81], %76 {strides = array<i32>} : memref<2x7x128xf32, #tpu.memory_space<vmem>>, vector<1x7x128xf32>,
    %cst_82 = arith.constant 0.000000e+00 : f32
    %77 = vector.broadcast %cst_82 : f32 to vector<7x256xf32>
    %c2_83 = arith.constant 2 : index
    %c0_84 = arith.constant 0 : index
    %c0_85 = arith.constant 0 : index
    %c0_86 = arith.constant 0 : index
    %78 = vector.load %arg0[%c2_83, %c0_84, %c0_85, %c0_86] : memref<4x2x8x32xf32, #tpu.memory_space<vmem>>, vector<1x1x7x32xf32>
    %79 = vector.shape_cast %78 : vector<1x1x7x32xf32> to vector<7x32xf32>
    %c0_87 = arith.constant 0 : index
    %c0_88 = arith.constant 0 : index
    %c0_89 = arith.constant 0 : index
    %80 = vector.load %arg1[%c0_87, %c0_88, %c0_89] : memref<5x32x256xf32, #tpu.memory_space<vmem>>, vector<1x32x256xf32>
    %81 = vector.shape_cast %80 : vector<1x32x256xf32> to vector<32x256xf32>
    %cst_90 = arith.constant dense<0.000000e+00> : vector<7x256xf32>
    %82 = tpu.matmul %79, %81, %cst_90 {dimension_numbers = #tpu.dot_dimension_numbers<[1], [0], [0], [1], [0, 0, 1, 1], [], []>} : vector<7x32xf32>, vector<32x256xf32>, vector<7x256xf32> -> vector<7x256xf32>
    %83 = arith.addf %77, %82 : vector<7x256xf32>
    %c3_91 = arith.constant 3 : index
    %c0_92 = arith.constant 0 : index
    %c0_93 = arith.constant 0 : index
    %c0_94 = arith.constant 0 : index
    %84 = vector.load %arg0[%c3_91, %c0_92, %c0_93, %c0_94] : memref<4x2x8x32xf32, #tpu.memory_space<vmem>>, vector<1x1x7x32xf32>
    %85 = vector.shape_cast %84 : vector<1x1x7x32xf32> to vector<7x32xf32>
    %c1_95 = arith.constant 1 : index
    %c0_96 = arith.constant 0 : index
    %c0_97 = arith.constant 0 : index
    %86 = vector.load %arg1[%c1_95, %c0_96, %c0_97] : memref<5x32x256xf32, #tpu.memory_space<vmem>>, vector<1x32x256xf32>
    %87 = vector.shape_cast %86 : vector<1x32x256xf32> to vector<32x256xf32>
    %cst_98 = arith.constant dense<0.000000e+00> : vector<7x256xf32>
    %88 = tpu.matmul %85, %87, %cst_98 {dimension_numbers = #tpu.dot_dimension_numbers<[1], [0], [0], [1], [0, 0, 1, 1], [], []>} : vector<7x32xf32>, vector<32x256xf32>, vector<7x256xf32> -> vector<7x256xf32>
    %89 = arith.addf %83, %88 : vector<7x256xf32>
    %c0_99 = arith.constant 0 : index
    %c0_100 = arith.constant 0 : index
    %c1_101 = arith.constant 1 : index
    %c0_102 = arith.constant 0 : index
    %90 = vector.load %arg0[%c0_99, %c0_100, %c1_101, %c0_102] : memref<4x2x8x32xf32, #tpu.memory_space<vmem>>, vector<1x1x7x32xf32>
    %91 = vector.shape_cast %90 : vector<1x1x7x32xf32> to vector<7x32xf32>
    %c2_103 = arith.constant 2 : index
    %c0_104 = arith.constant 0 : index
    %c0_105 = arith.constant 0 : index
    %92 = vector.load %arg1[%c2_103, %c0_104, %c0_105] : memref<5x32x256xf32, #tpu.memory_space<vmem>>, vector<1x32x256xf32>
    %93 = vector.shape_cast %92 : vector<1x32x256xf32> to vector<32x256xf32>
    %cst_106 = arith.constant dense<0.000000e+00> : vector<7x256xf32>
    %94 = tpu.matmul %91, %93, %cst_106 {dimension_numbers = #tpu.dot_dimension_numbers<[1], [0], [0], [1], [0, 0, 1, 1], [], []>} : vector<7x32xf32>, vector<32x256xf32>, vector<7x256xf32> -> vector<7x256xf32>
    %95 = arith.addf %89, %94 : vector<7x256xf32>
    %c1_107 = arith.constant 1 : index
    %c0_108 = arith.constant 0 : index
    %c1_109 = arith.constant 1 : index
    %c0_110 = arith.constant 0 : index
    %96 = vector.load %arg0[%c1_107, %c0_108, %c1_109, %c0_110] : memref<4x2x8x32xf32, #tpu.memory_space<vmem>>, vector<1x1x7x32xf32>
    %97 = vector.shape_cast %96 : vector<1x1x7x32xf32> to vector<7x32xf32>
    %c3_111 = arith.constant 3 : index
    %c0_112 = arith.constant 0 : index
    %c0_113 = arith.constant 0 : index
    %98 = vector.load %arg1[%c3_111, %c0_112, %c0_113] : memref<5x32x256xf32, #tpu.memory_space<vmem>>, vector<1x32x256xf32>
    %99 = vector.shape_cast %98 : vector<1x32x256xf32> to vector<32x256xf32>
    %cst_114 = arith.constant dense<0.000000e+00> : vector<7x256xf32>
    %100 = tpu.matmul %97, %99, %cst_114 {dimension_numbers = #tpu.dot_dimension_numbers<[1], [0], [0], [1], [0, 0, 1, 1], [], []>} : vector<7x32xf32>, vector<32x256xf32>, vector<7x256xf32> -> vector<7x256xf32>
    %101 = arith.addf %95, %100 : vector<7x256xf32>
    %c2_115 = arith.constant 2 : index
    %c0_116 = arith.constant 0 : index
    %c1_117 = arith.constant 1 : index
    %c0_118 = arith.constant 0 : index
    %102 = vector.load %arg0[%c2_115, %c0_116, %c1_117, %c0_118] : memref<4x2x8x32xf32, #tpu.memory_space<vmem>>, vector<1x1x7x32xf32>
    %103 = vector.shape_cast %102 : vector<1x1x7x32xf32> to vector<7x32xf32>
    %c4_119 = arith.constant 4 : index
    %c0_120 = arith.constant 0 : index
    %c0_121 = arith.constant 0 : index
    %104 = vector.load %arg1[%c4_119, %c0_120, %c0_121] : memref<5x32x256xf32, #tpu.memory_space<vmem>>, vector<1x32x256xf32>
    %105 = vector.shape_cast %104 : vector<1x32x256xf32> to vector<32x256xf32>
    %cst_122 = arith.constant dense<0.000000e+00> : vector<7x256xf32>
    %106 = tpu.matmul %103, %105, %cst_122 {dimension_numbers = #tpu.dot_dimension_numbers<[1], [0], [0], [1], [0, 0, 1, 1], [], []>} : vector<7x32xf32>, vector<32x256xf32>, vector<7x256xf32> -> vector<7x256xf32>
    %107 = arith.addf %101, %106 : vector<7x256xf32>
    %108 = vector.extract_strided_slice %107 {offsets = [0, 0], sizes = [7, 128], strides = [1, 1]} : vector<7x256xf32> to vector<7x128xf32>
    %109 = vector.extract_strided_slice %107 {offsets = [0, 128], sizes = [7, 128], strides = [1, 1]} : vector<7x256xf32> to vector<7x128xf32>
    %110 = arith.maximumf %108, %109 : vector<7x128xf32>
    %cst_123 = arith.constant 0.000000e+00 : f32
    %111 = vector.broadcast %cst_123 : f32 to vector<7x256xf32>
    %c3_124 = arith.constant 3 : index
    %c0_125 = arith.constant 0 : index
    %c0_126 = arith.constant 0 : index
    %c0_127 = arith.constant 0 : index
    %112 = vector.load %arg0[%c3_124, %c0_125, %c0_126, %c0_127] : memref<4x2x8x32xf32, #tpu.memory_space<vmem>>, vector<1x1x7x32xf32>
    %113 = vector.shape_cast %112 : vector<1x1x7x32xf32> to vector<7x32xf32>
    %c0_128 = arith.constant 0 : index
    %c0_129 = arith.constant 0 : index
    %c0_130 = arith.constant 0 : index
    %114 = vector.load %arg1[%c0_128, %c0_129, %c0_130] : memref<5x32x256xf32, #tpu.memory_space<vmem>>, vector<1x32x256xf32>
    %115 = vector.shape_cast %114 : vector<1x32x256xf32> to vector<32x256xf32>
    %cst_131 = arith.constant dense<0.000000e+00> : vector<7x256xf32>
    %116 = tpu.matmul %113, %115, %cst_131 {dimension_numbers = #tpu.dot_dimension_numbers<[1], [0], [0], [1], [0, 0, 1, 1], [], []>} : vector<7x32xf32>, vector<32x256xf32>, vector<7x256xf32> -> vector<7x256xf32>
    %117 = arith.addf %111, %116 : vector<7x256xf32>
    %c0_132 = arith.constant 0 : index
    %c0_133 = arith.constant 0 : index
    %c1_134 = arith.constant 1 : index
    %c0_135 = arith.constant 0 : index
    %118 = vector.load %arg0[%c0_132, %c0_133, %c1_134, %c0_135] : memref<4x2x8x32xf32, #tpu.memory_space<vmem>>, vector<1x1x7x32xf32>
    %119 = vector.shape_cast %118 : vector<1x1x7x32xf32> to vector<7x32xf32>
    %c1_136 = arith.constant 1 : index
    %c0_137 = arith.constant 0 : index
    %c0_138 = arith.constant 0 : index
    %120 = vector.load %arg1[%c1_136, %c0_137, %c0_138] : memref<5x32x256xf32, #tpu.memory_space<vmem>>, vector<1x32x256xf32>
    %121 = vector.shape_cast %120 : vector<1x32x256xf32> to vector<32x256xf32>
    %cst_139 = arith.constant dense<0.000000e+00> : vector<7x256xf32>
    %122 = tpu.matmul %119, %121, %cst_139 {dimension_numbers = #tpu.dot_dimension_numbers<[1], [0], [0], [1], [0, 0, 1, 1], [], []>} : vector<7x32xf32>, vector<32x256xf32>, vector<7x256xf32> -> vector<7x256xf32>
    %123 = arith.addf %117, %122 : vector<7x256xf32>
    %c1_140 = arith.constant 1 : index
    %c0_141 = arith.constant 0 : index
    %c1_142 = arith.constant 1 : index
    %c0_143 = arith.constant 0 : index
    %124 = vector.load %arg0[%c1_140, %c0_141, %c1_142, %c0_143] : memref<4x2x8x32xf32, #tpu.memory_space<vmem>>, vector<1x1x7x32xf32>
    %125 = vector.shape_cast %124 : vector<1x1x7x32xf32> to vector<7x32xf32>
    %c2_144 = arith.constant 2 : index
    %c0_145 = arith.constant 0 : index
    %c0_146 = arith.constant 0 : index
    %126 = vector.load %arg1[%c2_144, %c0_145, %c0_146] : memref<5x32x256xf32, #tpu.memory_space<vmem>>, vector<1x32x256xf32>
    %127 = vector.shape_cast %126 : vector<1x32x256xf32> to vector<32x256xf32>
    %cst_147 = arith.constant dense<0.000000e+00> : vector<7x256xf32>
    %128 = tpu.matmul %125, %127, %cst_147 {dimension_numbers = #tpu.dot_dimension_numbers<[1], [0], [0], [1], [0, 0, 1, 1], [], []>} : vector<7x32xf32>, vector<32x256xf32>, vector<7x256xf32> -> vector<7x256xf32>
    %129 = arith.addf %123, %128 : vector<7x256xf32>
    %c2_148 = arith.constant 2 : index
    %c0_149 = arith.constant 0 : index
    %c1_150 = arith.constant 1 : index
    %c0_151 = arith.constant 0 : index
    %130 = vector.load %arg0[%c2_148, %c0_149, %c1_150, %c0_151] : memref<4x2x8x32xf32, #tpu.memory_space<vmem>>, vector<1x1x7x32xf32>
    %131 = vector.shape_cast %130 : vector<1x1x7x32xf32> to vector<7x32xf32>
    %c3_152 = arith.constant 3 : index
    %c0_153 = arith.constant 0 : index
    %c0_154 = arith.constant 0 : index
    %132 = vector.load %arg1[%c3_152, %c0_153, %c0_154] : memref<5x32x256xf32, #tpu.memory_space<vmem>>, vector<1x32x256xf32>
    %133 = vector.shape_cast %132 : vector<1x32x256xf32> to vector<32x256xf32>
    %cst_155 = arith.constant dense<0.000000e+00> : vector<7x256xf32>
    %134 = tpu.matmul %131, %133, %cst_155 {dimension_numbers = #tpu.dot_dimension_numbers<[1], [0], [0], [1], [0, 0, 1, 1], [], []>} : vector<7x32xf32>, vector<32x256xf32>, vector<7x256xf32> -> vector<7x256xf32>
    %135 = arith.addf %129, %134 : vector<7x256xf32>
    %c3_156 = arith.constant 3 : index
    %c0_157 = arith.constant 0 : index
    %c1_158 = arith.constant 1 : index
    %c0_159 = arith.constant 0 : index
    %136 = vector.load %arg0[%c3_156, %c0_157, %c1_158, %c0_159] : memref<4x2x8x32xf32, #tpu.memory_space<vmem>>, vector<1x1x7x32xf32>
    %137 = vector.shape_cast %136 : vector<1x1x7x32xf32> to vector<7x32xf32>
    %c4_160 = arith.constant 4 : index
    %c0_161 = arith.constant 0 : index
    %c0_162 = arith.constant 0 : index
    %138 = vector.load %arg1[%c4_160, %c0_161, %c0_162] : memref<5x32x256xf32, #tpu.memory_space<vmem>>, vector<1x32x256xf32>
    %139 = vector.shape_cast %138 : vector<1x32x256xf32> to vector<32x256xf32>
    %cst_163 = arith.constant dense<0.000000e+00> : vector<7x256xf32>
    %140 = tpu.matmul %137, %139, %cst_163 {dimension_numbers = #tpu.dot_dimension_numbers<[1], [0], [0], [1], [0, 0, 1, 1], [], []>} : vector<7x32xf32>, vector<32x256xf32>, vector<7x256xf32> -> vector<7x256xf32>
    %141 = arith.addf %135, %140 : vector<7x256xf32>
    %142 = vector.extract_strided_slice %141 {offsets = [0, 0], sizes = [7, 128], strides = [1, 1]} : vector<7x256xf32> to vector<7x128xf32>
    %143 = vector.extract_strided_slice %141 {offsets = [0, 128], sizes = [7, 128], strides = [1, 1]} : vector<7x256xf32> to vector<7x128xf32>
    %144 = arith.maximumf %142, %143 : vector<7x128xf32>
    %145 = arith.maximumf %110, %144 : vector<7x128xf32>
    %c0_164 = arith.constant 0 : index
    %c0_165 = arith.constant 0 : index
    %146 = vector.load %arg2[%c0_164, %c0_165] : memref<1x128xf32, #tpu.memory_space<vmem>>, vector<1x128xf32>
    %147 = vector.broadcast %146 : vector<1x128xf32> to vector<7x128xf32>
    %148 = arith.addf %145, %147 : vector<7x128xf32>
    %cst_166 = arith.constant 0.000000e+00 : f32
    %149 = vector.broadcast %cst_166 : f32 to vector<7x128xf32>
    %150 = arith.maximumf %148, %149 : vector<7x128xf32>
    %c1_167 = arith.constant 1 : index
    %c0_168 = arith.constant 0 : index
    %c0_169 = arith.constant 0 : index
    %151 = vector.load %arg12[%c1_167, %c0_168, %c0_169] : memref<2x7x128xf32, #tpu.memory_space<vmem>>, vector<1x7x128xf32>
    %152 = vector.shape_cast %151 : vector<1x7x128xf32> to vector<7x128xf32>
    %153 = vector.shape_cast %150 : vector<7x128xf32> to vector<1x7x128xf32>
    tpu.vector_store %arg12[%c1_167, %c0_168, %c0_169], %153 {strides = array<i32>} : memref<2x7x128xf32, #tpu.memory_space<vmem>>, vector<1x7x128xf32>,
    %cst_170 = arith.constant 0.000000e+00 : f32
    %154 = vector.broadcast %cst_170 : f32 to vector<5x256xf32>
    %c0_171 = arith.constant 0 : index
    %c0_172 = arith.constant 0 : index
    %c0_173 = arith.constant 0 : index
    %155 = vector.load %arg12[%c0_171, %c0_172, %c0_173] : memref<2x7x128xf32, #tpu.memory_space<vmem>>, vector<1x5x128xf32>
    %156 = vector.shape_cast %155 : vector<1x5x128xf32> to vector<5x128xf32>
    %c0_174 = arith.constant 0 : index
    %c0_175 = arith.constant 0 : index
    %c0_176 = arith.constant 0 : index
    %157 = vector.load %arg3[%c0_174, %c0_175, %c0_176] : memref<5x128x256xf32, #tpu.memory_space<vmem>>, vector<1x128x256xf32>
    %158 = vector.shape_cast %157 : vector<1x128x256xf32> to vector<128x256xf32>
    %cst_177 = arith.constant dense<0.000000e+00> : vector<5x256xf32>
    %159 = tpu.matmul %156, %158, %cst_177 {dimension_numbers = #tpu.dot_dimension_numbers<[1], [0], [0], [1], [0, 0, 1, 1], [], []>} : vector<5x128xf32>, vector<128x256xf32>, vector<5x256xf32> -> vector<5x256xf32>
    %160 = arith.addf %154, %159 : vector<5x256xf32>
    %c1_178 = arith.constant 1 : index
    %c0_179 = arith.constant 0 : index
    %c0_180 = arith.constant 0 : index
    %161 = vector.load %arg12[%c1_178, %c0_179, %c0_180] : memref<2x7x128xf32, #tpu.memory_space<vmem>>, vector<1x5x128xf32>
    %162 = vector.shape_cast %161 : vector<1x5x128xf32> to vector<5x128xf32>
    %c1_181 = arith.constant 1 : index
    %c0_182 = arith.constant 0 : index
    %c0_183 = arith.constant 0 : index
    %163 = vector.load %arg3[%c1_181, %c0_182, %c0_183] : memref<5x128x256xf32, #tpu.memory_space<vmem>>, vector<1x128x256xf32>
    %164 = vector.shape_cast %163 : vector<1x128x256xf32> to vector<128x256xf32>
    %cst_184 = arith.constant dense<0.000000e+00> : vector<5x256xf32>
    %165 = tpu.matmul %162, %164, %cst_184 {dimension_numbers = #tpu.dot_dimension_numbers<[1], [0], [0], [1], [0, 0, 1, 1], [], []>} : vector<5x128xf32>, vector<128x256xf32>, vector<5x256xf32> -> vector<5x256xf32>
    %166 = arith.addf %160, %165 : vector<5x256xf32>
    %c0_185 = arith.constant 0 : index
    %c1_186 = arith.constant 1 : index
    %c0_187 = arith.constant 0 : index
    %167 = vector.load %arg12[%c0_185, %c1_186, %c0_187] : memref<2x7x128xf32, #tpu.memory_space<vmem>>, vector<1x5x128xf32>
    %168 = vector.shape_cast %167 : vector<1x5x128xf32> to vector<5x128xf32>
    %c2_188 = arith.constant 2 : index
    %c0_189 = arith.constant 0 : index
    %c0_190 = arith.constant 0 : index
    %169 = vector.load %arg3[%c2_188, %c0_189, %c0_190] : memref<5x128x256xf32, #tpu.memory_space<vmem>>, vector<1x128x256xf32>
    %170 = vector.shape_cast %169 : vector<1x128x256xf32> to vector<128x256xf32>
    %cst_191 = arith.constant dense<0.000000e+00> : vector<5x256xf32>
    %171 = tpu.matmul %168, %170, %cst_191 {dimension_numbers = #tpu.dot_dimension_numbers<[1], [0], [0], [1], [0, 0, 1, 1], [], []>} : vector<5x128xf32>, vector<128x256xf32>, vector<5x256xf32> -> vector<5x256xf32>
    %172 = arith.addf %166, %171 : vector<5x256xf32>
    %c1_192 = arith.constant 1 : index
    %c1_193 = arith.constant 1 : index
    %c0_194 = arith.constant 0 : index
    %173 = vector.load %arg12[%c1_192, %c1_193, %c0_194] : memref<2x7x128xf32, #tpu.memory_space<vmem>>, vector<1x5x128xf32>
    %174 = vector.shape_cast %173 : vector<1x5x128xf32> to vector<5x128xf32>
    %c3_195 = arith.constant 3 : index
    %c0_196 = arith.constant 0 : index
    %c0_197 = arith.constant 0 : index
    %175 = vector.load %arg3[%c3_195, %c0_196, %c0_197] : memref<5x128x256xf32, #tpu.memory_space<vmem>>, vector<1x128x256xf32>
    %176 = vector.shape_cast %175 : vector<1x128x256xf32> to vector<128x256xf32>
    %cst_198 = arith.constant dense<0.000000e+00> : vector<5x256xf32>
    %177 = tpu.matmul %174, %176, %cst_198 {dimension_numbers = #tpu.dot_dimension_numbers<[1], [0], [0], [1], [0, 0, 1, 1], [], []>} : vector<5x128xf32>, vector<128x256xf32>, vector<5x256xf32> -> vector<5x256xf32>
    %178 = arith.addf %172, %177 : vector<5x256xf32>
    %c0_199 = arith.constant 0 : index
    %c2_200 = arith.constant 2 : index
    %c0_201 = arith.constant 0 : index
    %179 = vector.load %arg12[%c0_199, %c2_200, %c0_201] : memref<2x7x128xf32, #tpu.memory_space<vmem>>, vector<1x5x128xf32>
    %180 = vector.shape_cast %179 : vector<1x5x128xf32> to vector<5x128xf32>
    %c4_202 = arith.constant 4 : index
    %c0_203 = arith.constant 0 : index
    %c0_204 = arith.constant 0 : index
    %181 = vector.load %arg3[%c4_202, %c0_203, %c0_204] : memref<5x128x256xf32, #tpu.memory_space<vmem>>, vector<1x128x256xf32>
    %182 = vector.shape_cast %181 : vector<1x128x256xf32> to vector<128x256xf32>
    %cst_205 = arith.constant dense<0.000000e+00> : vector<5x256xf32>
    %183 = tpu.matmul %180, %182, %cst_205 {dimension_numbers = #tpu.dot_dimension_numbers<[1], [0], [0], [1], [0, 0, 1, 1], [], []>} : vector<5x128xf32>, vector<128x256xf32>, vector<5x256xf32> -> vector<5x256xf32>
    %184 = arith.addf %178, %183 : vector<5x256xf32>
    %185 = vector.extract_strided_slice %184 {offsets = [0, 0], sizes = [5, 128], strides = [1, 1]} : vector<5x256xf32> to vector<5x128xf32>
    %186 = vector.extract_strided_slice %184 {offsets = [0, 128], sizes = [5, 128], strides = [1, 1]} : vector<5x256xf32> to vector<5x128xf32>
    %187 = arith.maximumf %185, %186 : vector<5x128xf32>
    %cst_206 = arith.constant 0.000000e+00 : f32
    %188 = vector.broadcast %cst_206 : f32 to vector<5x256xf32>
    %c1_207 = arith.constant 1 : index
    %c0_208 = arith.constant 0 : index
    %c0_209 = arith.constant 0 : index
    %189 = vector.load %arg12[%c1_207, %c0_208, %c0_209] : memref<2x7x128xf32, #tpu.memory_space<vmem>>, vector<1x5x128xf32>
    %190 = vector.shape_cast %189 : vector<1x5x128xf32> to vector<5x128xf32>
    %c0_210 = arith.constant 0 : index
    %c0_211 = arith.constant 0 : index
    %c0_212 = arith.constant 0 : index
    %191 = vector.load %arg3[%c0_210, %c0_211, %c0_212] : memref<5x128x256xf32, #tpu.memory_space<vmem>>, vector<1x128x256xf32>
    %192 = vector.shape_cast %191 : vector<1x128x256xf32> to vector<128x256xf32>
    %cst_213 = arith.constant dense<0.000000e+00> : vector<5x256xf32>
    %193 = tpu.matmul %190, %192, %cst_213 {dimension_numbers = #tpu.dot_dimension_numbers<[1], [0], [0], [1], [0, 0, 1, 1], [], []>} : vector<5x128xf32>, vector<128x256xf32>, vector<5x256xf32> -> vector<5x256xf32>
    %194 = arith.addf %188, %193 : vector<5x256xf32>
    %c0_214 = arith.constant 0 : index
    %c1_215 = arith.constant 1 : index
    %c0_216 = arith.constant 0 : index
    %195 = vector.load %arg12[%c0_214, %c1_215, %c0_216] : memref<2x7x128xf32, #tpu.memory_space<vmem>>, vector<1x5x128xf32>
    %196 = vector.shape_cast %195 : vector<1x5x128xf32> to vector<5x128xf32>
    %c1_217 = arith.constant 1 : index
    %c0_218 = arith.constant 0 : index
    %c0_219 = arith.constant 0 : index
    %197 = vector.load %arg3[%c1_217, %c0_218, %c0_219] : memref<5x128x256xf32, #tpu.memory_space<vmem>>, vector<1x128x256xf32>
    %198 = vector.shape_cast %197 : vector<1x128x256xf32> to vector<128x256xf32>
    %cst_220 = arith.constant dense<0.000000e+00> : vector<5x256xf32>
    %199 = tpu.matmul %196, %198, %cst_220 {dimension_numbers = #tpu.dot_dimension_numbers<[1], [0], [0], [1], [0, 0, 1, 1], [], []>} : vector<5x128xf32>, vector<128x256xf32>, vector<5x256xf32> -> vector<5x256xf32>
    %200 = arith.addf %194, %199 : vector<5x256xf32>
    %c1_221 = arith.constant 1 : index
    %c1_222 = arith.constant 1 : index
    %c0_223 = arith.constant 0 : index
    %201 = vector.load %arg12[%c1_221, %c1_222, %c0_223] : memref<2x7x128xf32, #tpu.memory_space<vmem>>, vector<1x5x128xf32>
    %202 = vector.shape_cast %201 : vector<1x5x128xf32> to vector<5x128xf32>
    %c2_224 = arith.constant 2 : index
    %c0_225 = arith.constant 0 : index
    %c0_226 = arith.constant 0 : index
    %203 = vector.load %arg3[%c2_224, %c0_225, %c0_226] : memref<5x128x256xf32, #tpu.memory_space<vmem>>, vector<1x128x256xf32>
    %204 = vector.shape_cast %203 : vector<1x128x256xf32> to vector<128x256xf32>
    %cst_227 = arith.constant dense<0.000000e+00> : vector<5x256xf32>
    %205 = tpu.matmul %202, %204, %cst_227 {dimension_numbers = #tpu.dot_dimension_numbers<[1], [0], [0], [1], [0, 0, 1, 1], [], []>} : vector<5x128xf32>, vector<128x256xf32>, vector<5x256xf32> -> vector<5x256xf32>
    %206 = arith.addf %200, %205 : vector<5x256xf32>
    %c0_228 = arith.constant 0 : index
    %c2_229 = arith.constant 2 : index
    %c0_230 = arith.constant 0 : index
    %207 = vector.load %arg12[%c0_228, %c2_229, %c0_230] : memref<2x7x128xf32, #tpu.memory_space<vmem>>, vector<1x5x128xf32>
    %208 = vector.shape_cast %207 : vector<1x5x128xf32> to vector<5x128xf32>
    %c3_231 = arith.constant 3 : index
    %c0_232 = arith.constant 0 : index
    %c0_233 = arith.constant 0 : index
    %209 = vector.load %arg3[%c3_231, %c0_232, %c0_233] : memref<5x128x256xf32, #tpu.memory_space<vmem>>, vector<1x128x256xf32>
    %210 = vector.shape_cast %209 : vector<1x128x256xf32> to vector<128x256xf32>
    %cst_234 = arith.constant dense<0.000000e+00> : vector<5x256xf32>
    %211 = tpu.matmul %208, %210, %cst_234 {dimension_numbers = #tpu.dot_dimension_numbers<[1], [0], [0], [1], [0, 0, 1, 1], [], []>} : vector<5x128xf32>, vector<128x256xf32>, vector<5x256xf32> -> vector<5x256xf32>
    %212 = arith.addf %206, %211 : vector<5x256xf32>
    %c1_235 = arith.constant 1 : index
    %c2_236 = arith.constant 2 : index
    %c0_237 = arith.constant 0 : index
    %213 = vector.load %arg12[%c1_235, %c2_236, %c0_237] : memref<2x7x128xf32, #tpu.memory_space<vmem>>, vector<1x5x128xf32>
    %214 = vector.shape_cast %213 : vector<1x5x128xf32> to vector<5x128xf32>
    %c4_238 = arith.constant 4 : index
    %c0_239 = arith.constant 0 : index
    %c0_240 = arith.constant 0 : index
    %215 = vector.load %arg3[%c4_238, %c0_239, %c0_240] : memref<5x128x256xf32, #tpu.memory_space<vmem>>, vector<1x128x256xf32>
    %216 = vector.shape_cast %215 : vector<1x128x256xf32> to vector<128x256xf32>
    %cst_241 = arith.constant dense<0.000000e+00> : vector<5x256xf32>
    %217 = tpu.matmul %214, %216, %cst_241 {dimension_numbers = #tpu.dot_dimension_numbers<[1], [0], [0], [1], [0, 0, 1, 1], [], []>} : vector<5x128xf32>, vector<128x256xf32>, vector<5x256xf32> -> vector<5x256xf32>
    %218 = arith.addf %212, %217 : vector<5x256xf32>
    %219 = vector.extract_strided_slice %218 {offsets = [0, 0], sizes = [5, 128], strides = [1, 1]} : vector<5x256xf32> to vector<5x128xf32>
    %220 = vector.extract_strided_slice %218 {offsets = [0, 128], sizes = [5, 128], strides = [1, 1]} : vector<5x256xf32> to vector<5x128xf32>
    %221 = arith.maximumf %219, %220 : vector<5x128xf32>
    %222 = arith.maximumf %187, %221 : vector<5x128xf32>
    %c0_242 = arith.constant 0 : index
    %c0_243 = arith.constant 0 : index
    %223 = vector.load %arg4[%c0_242, %c0_243] : memref<1x128xf32, #tpu.memory_space<vmem>>, vector<1x128xf32>
    %224 = vector.broadcast %223 : vector<1x128xf32> to vector<5x128xf32>
    %225 = arith.addf %222, %224 : vector<5x128xf32>
    %cst_244 = arith.constant 0.000000e+00 : f32
    %226 = vector.broadcast %cst_244 : f32 to vector<5x128xf32>
    %227 = arith.maximumf %225, %226 : vector<5x128xf32>
    %c0_245 = arith.constant 0 : index
    %c0_246 = arith.constant 0 : index
    %c0_247 = arith.constant 0 : index
    %228 = vector.load %arg13[%c0_245, %c0_246, %c0_247] : memref<2x5x128xf32, #tpu.memory_space<vmem>>, vector<1x5x128xf32>
    %229 = vector.shape_cast %228 : vector<1x5x128xf32> to vector<5x128xf32>
    %230 = vector.shape_cast %227 : vector<5x128xf32> to vector<1x5x128xf32>
    tpu.vector_store %arg13[%c0_245, %c0_246, %c0_247], %230 {strides = array<i32>} : memref<2x5x128xf32, #tpu.memory_space<vmem>>, vector<1x5x128xf32>,
    %cst_248 = arith.constant 0.000000e+00 : f32
    %231 = vector.broadcast %cst_248 : f32 to vector<7x256xf32>
    %c0_249 = arith.constant 0 : index
    %c1_250 = arith.constant 1 : index
    %c0_251 = arith.constant 0 : index
    %c0_252 = arith.constant 0 : index
    %232 = vector.load %arg0[%c0_249, %c1_250, %c0_251, %c0_252] : memref<4x2x8x32xf32, #tpu.memory_space<vmem>>, vector<1x1x7x32xf32>
    %233 = vector.shape_cast %232 : vector<1x1x7x32xf32> to vector<7x32xf32>
    %c0_253 = arith.constant 0 : index
    %c0_254 = arith.constant 0 : index
    %c0_255 = arith.constant 0 : index
    %234 = vector.load %arg1[%c0_253, %c0_254, %c0_255] : memref<5x32x256xf32, #tpu.memory_space<vmem>>, vector<1x32x256xf32>
    %235 = vector.shape_cast %234 : vector<1x32x256xf32> to vector<32x256xf32>
    %cst_256 = arith.constant dense<0.000000e+00> : vector<7x256xf32>
    %236 = tpu.matmul %233, %235, %cst_256 {dimension_numbers = #tpu.dot_dimension_numbers<[1], [0], [0], [1], [0, 0, 1, 1], [], []>} : vector<7x32xf32>, vector<32x256xf32>, vector<7x256xf32> -> vector<7x256xf32>
    %237 = arith.addf %231, %236 : vector<7x256xf32>
    %c1_257 = arith.constant 1 : index
    %c1_258 = arith.constant 1 : index
    %c0_259 = arith.constant 0 : index
    %c0_260 = arith.constant 0 : index
    %238 = vector.load %arg0[%c1_257, %c1_258, %c0_259, %c0_260] : memref<4x2x8x32xf32, #tpu.memory_space<vmem>>, vector<1x1x7x32xf32>
    %239 = vector.shape_cast %238 : vector<1x1x7x32xf32> to vector<7x32xf32>
    %c1_261 = arith.constant 1 : index
    %c0_262 = arith.constant 0 : index
    %c0_263 = arith.constant 0 : index
    %240 = vector.load %arg1[%c1_261, %c0_262, %c0_263] : memref<5x32x256xf32, #tpu.memory_space<vmem>>, vector<1x32x256xf32>
    %241 = vector.shape_cast %240 : vector<1x32x256xf32> to vector<32x256xf32>
    %cst_264 = arith.constant dense<0.000000e+00> : vector<7x256xf32>
    %242 = tpu.matmul %239, %241, %cst_264 {dimension_numbers = #tpu.dot_dimension_numbers<[1], [0], [0], [1], [0, 0, 1, 1], [], []>} : vector<7x32xf32>, vector<32x256xf32>, vector<7x256xf32> -> vector<7x256xf32>
    %243 = arith.addf %237, %242 : vector<7x256xf32>
    %c2_265 = arith.constant 2 : index
    %c1_266 = arith.constant 1 : index
    %c0_267 = arith.constant 0 : index
    %c0_268 = arith.constant 0 : index
    %244 = vector.load %arg0[%c2_265, %c1_266, %c0_267, %c0_268] : memref<4x2x8x32xf32, #tpu.memory_space<vmem>>, vector<1x1x7x32xf32>
    %245 = vector.shape_cast %244 : vector<1x1x7x32xf32> to vector<7x32xf32>
    %c2_269 = arith.constant 2 : index
    %c0_270 = arith.constant 0 : index
    %c0_271 = arith.constant 0 : index
    %246 = vector.load %arg1[%c2_269, %c0_270, %c0_271] : memref<5x32x256xf32, #tpu.memory_space<vmem>>, vector<1x32x256xf32>
    %247 = vector.shape_cast %246 : vector<1x32x256xf32> to vector<32x256xf32>
    %cst_272 = arith.constant dense<0.000000e+00> : vector<7x256xf32>
    %248 = tpu.matmul %245, %247, %cst_272 {dimension_numbers = #tpu.dot_dimension_numbers<[1], [0], [0], [1], [0, 0, 1, 1], [], []>} : vector<7x32xf32>, vector<32x256xf32>, vector<7x256xf32> -> vector<7x256xf32>
    %249 = arith.addf %243, %248 : vector<7x256xf32>
    %c3_273 = arith.constant 3 : index
    %c1_274 = arith.constant 1 : index
    %c0_275 = arith.constant 0 : index
    %c0_276 = arith.constant 0 : index
    %250 = vector.load %arg0[%c3_273, %c1_274, %c0_275, %c0_276] : memref<4x2x8x32xf32, #tpu.memory_space<vmem>>, vector<1x1x7x32xf32>
    %251 = vector.shape_cast %250 : vector<1x1x7x32xf32> to vector<7x32xf32>
    %c3_277 = arith.constant 3 : index
    %c0_278 = arith.constant 0 : index
    %c0_279 = arith.constant 0 : index
    %252 = vector.load %arg1[%c3_277, %c0_278, %c0_279] : memref<5x32x256xf32, #tpu.memory_space<vmem>>, vector<1x32x256xf32>
    %253 = vector.shape_cast %252 : vector<1x32x256xf32> to vector<32x256xf32>
    %cst_280 = arith.constant dense<0.000000e+00> : vector<7x256xf32>
    %254 = tpu.matmul %251, %253, %cst_280 {dimension_numbers = #tpu.dot_dimension_numbers<[1], [0], [0], [1], [0, 0, 1, 1], [], []>} : vector<7x32xf32>, vector<32x256xf32>, vector<7x256xf32> -> vector<7x256xf32>
    %255 = arith.addf %249, %254 : vector<7x256xf32>
    %c0_281 = arith.constant 0 : index
    %c1_282 = arith.constant 1 : index
    %c1_283 = arith.constant 1 : index
    %c0_284 = arith.constant 0 : index
    %256 = vector.load %arg0[%c0_281, %c1_282, %c1_283, %c0_284] : memref<4x2x8x32xf32, #tpu.memory_space<vmem>>, vector<1x1x7x32xf32>
    %257 = vector.shape_cast %256 : vector<1x1x7x32xf32> to vector<7x32xf32>
    %c4_285 = arith.constant 4 : index
    %c0_286 = arith.constant 0 : index
    %c0_287 = arith.constant 0 : index
    %258 = vector.load %arg1[%c4_285, %c0_286, %c0_287] : memref<5x32x256xf32, #tpu.memory_space<vmem>>, vector<1x32x256xf32>
    %259 = vector.shape_cast %258 : vector<1x32x256xf32> to vector<32x256xf32>
    %cst_288 = arith.constant dense<0.000000e+00> : vector<7x256xf32>
    %260 = tpu.matmul %257, %259, %cst_288 {dimension_numbers = #tpu.dot_dimension_numbers<[1], [0], [0], [1], [0, 0, 1, 1], [], []>} : vector<7x32xf32>, vector<32x256xf32>, vector<7x256xf32> -> vector<7x256xf32>
    %261 = arith.addf %255, %260 : vector<7x256xf32>
    %262 = vector.extract_strided_slice %261 {offsets = [0, 0], sizes = [7, 128], strides = [1, 1]} : vector<7x256xf32> to vector<7x128xf32>
    %263 = vector.extract_strided_slice %261 {offsets = [0, 128], sizes = [7, 128], strides = [1, 1]} : vector<7x256xf32> to vector<7x128xf32>
    %264 = arith.maximumf %262, %263 : vector<7x128xf32>
    %cst_289 = arith.constant 0.000000e+00 : f32
    %265 = vector.broadcast %cst_289 : f32 to vector<7x256xf32>
    %c1_290 = arith.constant 1 : index
    %c1_291 = arith.constant 1 : index
    %c0_292 = arith.constant 0 : index
    %c0_293 = arith.constant 0 : index
    %266 = vector.load %arg0[%c1_290, %c1_291, %c0_292, %c0_293] : memref<4x2x8x32xf32, #tpu.memory_space<vmem>>, vector<1x1x7x32xf32>
    %267 = vector.shape_cast %266 : vector<1x1x7x32xf32> to vector<7x32xf32>
    %c0_294 = arith.constant 0 : index
    %c0_295 = arith.constant 0 : index
    %c0_296 = arith.constant 0 : index
    %268 = vector.load %arg1[%c0_294, %c0_295, %c0_296] : memref<5x32x256xf32, #tpu.memory_space<vmem>>, vector<1x32x256xf32>
    %269 = vector.shape_cast %268 : vector<1x32x256xf32> to vector<32x256xf32>
    %cst_297 = arith.constant dense<0.000000e+00> : vector<7x256xf32>
    %270 = tpu.matmul %267, %269, %cst_297 {dimension_numbers = #tpu.dot_dimension_numbers<[1], [0], [0], [1], [0, 0, 1, 1], [], []>} : vector<7x32xf32>, vector<32x256xf32>, vector<7x256xf32> -> vector<7x256xf32>
    %271 = arith.addf %265, %270 : vector<7x256xf32>
    %c2_298 = arith.constant 2 : index
    %c1_299 = arith.constant 1 : index
    %c0_300 = arith.constant 0 : index
    %c0_301 = arith.constant 0 : index
    %272 = vector.load %arg0[%c2_298, %c1_299, %c0_300, %c0_301] : memref<4x2x8x32xf32, #tpu.memory_space<vmem>>, vector<1x1x7x32xf32>
    %273 = vector.shape_cast %272 : vector<1x1x7x32xf32> to vector<7x32xf32>
    %c1_302 = arith.constant 1 : index
    %c0_303 = arith.constant 0 : index
    %c0_304 = arith.constant 0 : index
    %274 = vector.load %arg1[%c1_302, %c0_303, %c0_304] : memref<5x32x256xf32, #tpu.memory_space<vmem>>, vector<1x32x256xf32>
    %275 = vector.shape_cast %274 : vector<1x32x256xf32> to vector<32x256xf32>
    %cst_305 = arith.constant dense<0.000000e+00> : vector<7x256xf32>
    %276 = tpu.matmul %273, %275, %cst_305 {dimension_numbers = #tpu.dot_dimension_numbers<[1], [0], [0], [1], [0, 0, 1, 1], [], []>} : vector<7x32xf32>, vector<32x256xf32>, vector<7x256xf32> -> vector<7x256xf32>
    %277 = arith.addf %271, %276 : vector<7x256xf32>
    %c3_306 = arith.constant 3 : index
    %c1_307 = arith.constant 1 : index
    %c0_308 = arith.constant 0 : index
    %c0_309 = arith.constant 0 : index
    %278 = vector.load %arg0[%c3_306, %c1_307, %c0_308, %c0_309] : memref<4x2x8x32xf32, #tpu.memory_space<vmem>>, vector<1x1x7x32xf32>
    %279 = vector.shape_cast %278 : vector<1x1x7x32xf32> to vector<7x32xf32>
    %c2_310 = arith.constant 2 : index
    %c0_311 = arith.constant 0 : index
    %c0_312 = arith.constant 0 : index
    %280 = vector.load %arg1[%c2_310, %c0_311, %c0_312] : memref<5x32x256xf32, #tpu.memory_space<vmem>>, vector<1x32x256xf32>
    %281 = vector.shape_cast %280 : vector<1x32x256xf32> to vector<32x256xf32>
    %cst_313 = arith.constant dense<0.000000e+00> : vector<7x256xf32>
    %282 = tpu.matmul %279, %281, %cst_313 {dimension_numbers = #tpu.dot_dimension_numbers<[1], [0], [0], [1], [0, 0, 1, 1], [], []>} : vector<7x32xf32>, vector<32x256xf32>, vector<7x256xf32> -> vector<7x256xf32>
    %283 = arith.addf %277, %282 : vector<7x256xf32>
    %c0_314 = arith.constant 0 : index
    %c1_315 = arith.constant 1 : index
    %c1_316 = arith.constant 1 : index
    %c0_317 = arith.constant 0 : index
    %284 = vector.load %arg0[%c0_314, %c1_315, %c1_316, %c0_317] : memref<4x2x8x32xf32, #tpu.memory_space<vmem>>, vector<1x1x7x32xf32>
    %285 = vector.shape_cast %284 : vector<1x1x7x32xf32> to vector<7x32xf32>
    %c3_318 = arith.constant 3 : index
    %c0_319 = arith.constant 0 : index
    %c0_320 = arith.constant 0 : index
    %286 = vector.load %arg1[%c3_318, %c0_319, %c0_320] : memref<5x32x256xf32, #tpu.memory_space<vmem>>, vector<1x32x256xf32>
    %287 = vector.shape_cast %286 : vector<1x32x256xf32> to vector<32x256xf32>
    %cst_321 = arith.constant dense<0.000000e+00> : vector<7x256xf32>
    %288 = tpu.matmul %285, %287, %cst_321 {dimension_numbers = #tpu.dot_dimension_numbers<[1], [0], [0], [1], [0, 0, 1, 1], [], []>} : vector<7x32xf32>, vector<32x256xf32>, vector<7x256xf32> -> vector<7x256xf32>
    %289 = arith.addf %283, %288 : vector<7x256xf32>
    %c1_322 = arith.constant 1 : index
    %c1_323 = arith.constant 1 : index
    %c1_324 = arith.constant 1 : index
    %c0_325 = arith.constant 0 : index
    %290 = vector.load %arg0[%c1_322, %c1_323, %c1_324, %c0_325] : memref<4x2x8x32xf32, #tpu.memory_space<vmem>>, vector<1x1x7x32xf32>
    %291 = vector.shape_cast %290 : vector<1x1x7x32xf32> to vector<7x32xf32>
    %c4_326 = arith.constant 4 : index
    %c0_327 = arith.constant 0 : index
    %c0_328 = arith.constant 0 : index
    %292 = vector.load %arg1[%c4_326, %c0_327, %c0_328] : memref<5x32x256xf32, #tpu.memory_space<vmem>>, vector<1x32x256xf32>
    %293 = vector.shape_cast %292 : vector<1x32x256xf32> to vector<32x256xf32>
    %cst_329 = arith.constant dense<0.000000e+00> : vector<7x256xf32>
    %294 = tpu.matmul %291, %293, %cst_329 {dimension_numbers = #tpu.dot_dimension_numbers<[1], [0], [0], [1], [0, 0, 1, 1], [], []>} : vector<7x32xf32>, vector<32x256xf32>, vector<7x256xf32> -> vector<7x256xf32>
    %295 = arith.addf %289, %294 : vector<7x256xf32>
    %296 = vector.extract_strided_slice %295 {offsets = [0, 0], sizes = [7, 128], strides = [1, 1]} : vector<7x256xf32> to vector<7x128xf32>
    %297 = vector.extract_strided_slice %295 {offsets = [0, 128], sizes = [7, 128], strides = [1, 1]} : vector<7x256xf32> to vector<7x128xf32>
    %298 = arith.maximumf %296, %297 : vector<7x128xf32>
    %299 = arith.maximumf %264, %298 : vector<7x128xf32>
    %c0_330 = arith.constant 0 : index
    %c0_331 = arith.constant 0 : index
    %300 = vector.load %arg2[%c0_330, %c0_331] : memref<1x128xf32, #tpu.memory_space<vmem>>, vector<1x128xf32>
    %301 = vector.broadcast %300 : vector<1x128xf32> to vector<7x128xf32>
    %302 = arith.addf %299, %301 : vector<7x128xf32>
    %cst_332 = arith.constant 0.000000e+00 : f32
    %303 = vector.broadcast %cst_332 : f32 to vector<7x128xf32>
    %304 = arith.maximumf %302, %303 : vector<7x128xf32>
    %c0_333 = arith.constant 0 : index
    %c0_334 = arith.constant 0 : index
    %c0_335 = arith.constant 0 : index
    %305 = vector.load %arg12[%c0_333, %c0_334, %c0_335] : memref<2x7x128xf32, #tpu.memory_space<vmem>>, vector<1x7x128xf32>
    %306 = vector.shape_cast %305 : vector<1x7x128xf32> to vector<7x128xf32>
    %307 = vector.shape_cast %304 : vector<7x128xf32> to vector<1x7x128xf32>
    tpu.vector_store %arg12[%c0_333, %c0_334, %c0_335], %307 {strides = array<i32>} : memref<2x7x128xf32, #tpu.memory_space<vmem>>, vector<1x7x128xf32>,
    %cst_336 = arith.constant 0.000000e+00 : f32
    %308 = vector.broadcast %cst_336 : f32 to vector<7x256xf32>
    %c2_337 = arith.constant 2 : index
    %c1_338 = arith.constant 1 : index
    %c0_339 = arith.constant 0 : index
    %c0_340 = arith.constant 0 : index
    %309 = vector.load %arg0[%c2_337, %c1_338, %c0_339, %c0_340] : memref<4x2x8x32xf32, #tpu.memory_space<vmem>>, vector<1x1x7x32xf32>
    %310 = vector.shape_cast %309 : vector<1x1x7x32xf32> to vector<7x32xf32>
    %c0_341 = arith.constant 0 : index
    %c0_342 = arith.constant 0 : index
    %c0_343 = arith.constant 0 : index
    %311 = vector.load %arg1[%c0_341, %c0_342, %c0_343] : memref<5x32x256xf32, #tpu.memory_space<vmem>>, vector<1x32x256xf32>
    %312 = vector.shape_cast %311 : vector<1x32x256xf32> to vector<32x256xf32>
    %cst_344 = arith.constant dense<0.000000e+00> : vector<7x256xf32>
    %313 = tpu.matmul %310, %312, %cst_344 {dimension_numbers = #tpu.dot_dimension_numbers<[1], [0], [0], [1], [0, 0, 1, 1], [], []>} : vector<7x32xf32>, vector<32x256xf32>, vector<7x256xf32> -> vector<7x256xf32>
    %314 = arith.addf %308, %313 : vector<7x256xf32>
    %c3_345 = arith.constant 3 : index
    %c1_346 = arith.constant 1 : index
    %c0_347 = arith.constant 0 : index
    %c0_348 = arith.constant 0 : index
    %315 = vector.load %arg0[%c3_345, %c1_346, %c0_347, %c0_348] : memref<4x2x8x32xf32, #tpu.memory_space<vmem>>, vector<1x1x7x32xf32>
    %316 = vector.shape_cast %315 : vector<1x1x7x32xf32> to vector<7x32xf32>
    %c1_349 = arith.constant 1 : index
    %c0_350 = arith.constant 0 : index
    %c0_351 = arith.constant 0 : index
    %317 = vector.load %arg1[%c1_349, %c0_350, %c0_351] : memref<5x32x256xf32, #tpu.memory_space<vmem>>, vector<1x32x256xf32>
    %318 = vector.shape_cast %317 : vector<1x32x256xf32> to vector<32x256xf32>
    %cst_352 = arith.constant dense<0.000000e+00> : vector<7x256xf32>
    %319 = tpu.matmul %316, %318, %cst_352 {dimension_numbers = #tpu.dot_dimension_numbers<[1], [0], [0], [1], [0, 0, 1, 1], [], []>} : vector<7x32xf32>, vector<32x256xf32>, vector<7x256xf32> -> vector<7x256xf32>
    %320 = arith.addf %314, %319 : vector<7x256xf32>
    %c0_353 = arith.constant 0 : index
    %c1_354 = arith.constant 1 : index
    %c1_355 = arith.constant 1 : index
    %c0_356 = arith.constant 0 : index
    %321 = vector.load %arg0[%c0_353, %c1_354, %c1_355, %c0_356] : memref<4x2x8x32xf32, #tpu.memory_space<vmem>>, vector<1x1x7x32xf32>
    %322 = vector.shape_cast %321 : vector<1x1x7x32xf32> to vector<7x32xf32>
    %c2_357 = arith.constant 2 : index
    %c0_358 = arith.constant 0 : index
    %c0_359 = arith.constant 0 : index
    %323 = vector.load %arg1[%c2_357, %c0_358, %c0_359] : memref<5x32x256xf32, #tpu.memory_space<vmem>>, vector<1x32x256xf32>
    %324 = vector.shape_cast %323 : vector<1x32x256xf32> to vector<32x256xf32>
    %cst_360 = arith.constant dense<0.000000e+00> : vector<7x256xf32>
    %325 = tpu.matmul %322, %324, %cst_360 {dimension_numbers = #tpu.dot_dimension_numbers<[1], [0], [0], [1], [0, 0, 1, 1], [], []>} : vector<7x32xf32>, vector<32x256xf32>, vector<7x256xf32> -> vector<7x256xf32>
    %326 = arith.addf %320, %325 : vector<7x256xf32>
    %c1_361 = arith.constant 1 : index
    %c1_362 = arith.constant 1 : index
    %c1_363 = arith.constant 1 : index
    %c0_364 = arith.constant 0 : index
    %327 = vector.load %arg0[%c1_361, %c1_362, %c1_363, %c0_364] : memref<4x2x8x32xf32, #tpu.memory_space<vmem>>, vector<1x1x7x32xf32>
    %328 = vector.shape_cast %327 : vector<1x1x7x32xf32> to vector<7x32xf32>
    %c3_365 = arith.constant 3 : index
    %c0_366 = arith.constant 0 : index
    %c0_367 = arith.constant 0 : index
    %329 = vector.load %arg1[%c3_365, %c0_366, %c0_367] : memref<5x32x256xf32, #tpu.memory_space<vmem>>, vector<1x32x256xf32>
    %330 = vector.shape_cast %329 : vector<1x32x256xf32> to vector<32x256xf32>
    %cst_368 = arith.constant dense<0.000000e+00> : vector<7x256xf32>
    %331 = tpu.matmul %328, %330, %cst_368 {dimension_numbers = #tpu.dot_dimension_numbers<[1], [0], [0], [1], [0, 0, 1, 1], [], []>} : vector<7x32xf32>, vector<32x256xf32>, vector<7x256xf32> -> vector<7x256xf32>
    %332 = arith.addf %326, %331 : vector<7x256xf32>
    %c2_369 = arith.constant 2 : index
    %c1_370 = arith.constant 1 : index
    %c1_371 = arith.constant 1 : index
    %c0_372 = arith.constant 0 : index
    %333 = vector.load %arg0[%c2_369, %c1_370, %c1_371, %c0_372] : memref<4x2x8x32xf32, #tpu.memory_space<vmem>>, vector<1x1x7x32xf32>
    %334 = vector.shape_cast %333 : vector<1x1x7x32xf32> to vector<7x32xf32>
    %c4_373 = arith.constant 4 : index
    %c0_374 = arith.constant 0 : index
    %c0_375 = arith.constant 0 : index
    %335 = vector.load %arg1[%c4_373, %c0_374, %c0_375] : memref<5x32x256xf32, #tpu.memory_space<vmem>>, vector<1x32x256xf32>
    %336 = vector.shape_cast %335 : vector<1x32x256xf32> to vector<32x256xf32>
    %cst_376 = arith.constant dense<0.000000e+00> : vector<7x256xf32>
    %337 = tpu.matmul %334, %336, %cst_376 {dimension_numbers = #tpu.dot_dimension_numbers<[1], [0], [0], [1], [0, 0, 1, 1], [], []>} : vector<7x32xf32>, vector<32x256xf32>, vector<7x256xf32> -> vector<7x256xf32>
    %338 = arith.addf %332, %337 : vector<7x256xf32>
    %339 = vector.extract_strided_slice %338 {offsets = [0, 0], sizes = [7, 128], strides = [1, 1]} : vector<7x256xf32> to vector<7x128xf32>
    %340 = vector.extract_strided_slice %338 {offsets = [0, 128], sizes = [7, 128], strides = [1, 1]} : vector<7x256xf32> to vector<7x128xf32>
    %341 = arith.maximumf %339, %340 : vector<7x128xf32>
    %cst_377 = arith.constant 0.000000e+00 : f32
    %342 = vector.broadcast %cst_377 : f32 to vector<7x256xf32>
    %c3_378 = arith.constant 3 : index
    %c1_379 = arith.constant 1 : index
    %c0_380 = arith.constant 0 : index
    %c0_381 = arith.constant 0 : index
    %343 = vector.load %arg0[%c3_378, %c1_379, %c0_380, %c0_381] : memref<4x2x8x32xf32, #tpu.memory_space<vmem>>, vector<1x1x7x32xf32>
    %344 = vector.shape_cast %343 : vector<1x1x7x32xf32> to vector<7x32xf32>
    %c0_382 = arith.constant 0 : index
    %c0_383 = arith.constant 0 : index
    %c0_384 = arith.constant 0 : index
    %345 = vector.load %arg1[%c0_382, %c0_383, %c0_384] : memref<5x32x256xf32, #tpu.memory_space<vmem>>, vector<1x32x256xf32>
    %346 = vector.shape_cast %345 : vector<1x32x256xf32> to vector<32x256xf32>
    %cst_385 = arith.constant dense<0.000000e+00> : vector<7x256xf32>
    %347 = tpu.matmul %344, %346, %cst_385 {dimension_numbers = #tpu.dot_dimension_numbers<[1], [0], [0], [1], [0, 0, 1, 1], [], []>} : vector<7x32xf32>, vector<32x256xf32>, vector<7x256xf32> -> vector<7x256xf32>
    %348 = arith.addf %342, %347 : vector<7x256xf32>
    %c0_386 = arith.constant 0 : index
    %c1_387 = arith.constant 1 : index
    %c1_388 = arith.constant 1 : index
    %c0_389 = arith.constant 0 : index
    %349 = vector.load %arg0[%c0_386, %c1_387, %c1_388, %c0_389] : memref<4x2x8x32xf32, #tpu.memory_space<vmem>>, vector<1x1x7x32xf32>
    %350 = vector.shape_cast %349 : vector<1x1x7x32xf32> to vector<7x32xf32>
    %c1_390 = arith.constant 1 : index
    %c0_391 = arith.constant 0 : index
    %c0_392 = arith.constant 0 : index
    %351 = vector.load %arg1[%c1_390, %c0_391, %c0_392] : memref<5x32x256xf32, #tpu.memory_space<vmem>>, vector<1x32x256xf32>
    %352 = vector.shape_cast %351 : vector<1x32x256xf32> to vector<32x256xf32>
    %cst_393 = arith.constant dense<0.000000e+00> : vector<7x256xf32>
    %353 = tpu.matmul %350, %352, %cst_393 {dimension_numbers = #tpu.dot_dimension_numbers<[1], [0], [0], [1], [0, 0, 1, 1], [], []>} : vector<7x32xf32>, vector<32x256xf32>, vector<7x256xf32> -> vector<7x256xf32>
    %354 = arith.addf %348, %353 : vector<7x256xf32>
    %c1_394 = arith.constant 1 : index
    %c1_395 = arith.constant 1 : index
    %c1_396 = arith.constant 1 : index
    %c0_397 = arith.constant 0 : index
    %355 = vector.load %arg0[%c1_394, %c1_395, %c1_396, %c0_397] : memref<4x2x8x32xf32, #tpu.memory_space<vmem>>, vector<1x1x7x32xf32>
    %356 = vector.shape_cast %355 : vector<1x1x7x32xf32> to vector<7x32xf32>
    %c2_398 = arith.constant 2 : index
    %c0_399 = arith.constant 0 : index
    %c0_400 = arith.constant 0 : index
    %357 = vector.load %arg1[%c2_398, %c0_399, %c0_400] : memref<5x32x256xf32, #tpu.memory_space<vmem>>, vector<1x32x256xf32>
    %358 = vector.shape_cast %357 : vector<1x32x256xf32> to vector<32x256xf32>
    %cst_401 = arith.constant dense<0.000000e+00> : vector<7x256xf32>
    %359 = tpu.matmul %356, %358, %cst_401 {dimension_numbers = #tpu.dot_dimension_numbers<[1], [0], [0], [1], [0, 0, 1, 1], [], []>} : vector<7x32xf32>, vector<32x256xf32>, vector<7x256xf32> -> vector<7x256xf32>
    %360 = arith.addf %354, %359 : vector<7x256xf32>
    %c2_402 = arith.constant 2 : index
    %c1_403 = arith.constant 1 : index
    %c1_404 = arith.constant 1 : index
    %c0_405 = arith.constant 0 : index
    %361 = vector.load %arg0[%c2_402, %c1_403, %c1_404, %c0_405] : memref<4x2x8x32xf32, #tpu.memory_space<vmem>>, vector<1x1x7x32xf32>
    %362 = vector.shape_cast %361 : vector<1x1x7x32xf32> to vector<7x32xf32>
    %c3_406 = arith.constant 3 : index
    %c0_407 = arith.constant 0 : index
    %c0_408 = arith.constant 0 : index
    %363 = vector.load %arg1[%c3_406, %c0_407, %c0_408] : memref<5x32x256xf32, #tpu.memory_space<vmem>>, vector<1x32x256xf32>
    %364 = vector.shape_cast %363 : vector<1x32x256xf32> to vector<32x256xf32>
    %cst_409 = arith.constant dense<0.000000e+00> : vector<7x256xf32>
    %365 = tpu.matmul %362, %364, %cst_409 {dimension_numbers = #tpu.dot_dimension_numbers<[1], [0], [0], [1], [0, 0, 1, 1], [], []>} : vector<7x32xf32>, vector<32x256xf32>, vector<7x256xf32> -> vector<7x256xf32>
    %366 = arith.addf %360, %365 : vector<7x256xf32>
    %c3_410 = arith.constant 3 : index
    %c1_411 = arith.constant 1 : index
    %c1_412 = arith.constant 1 : index
    %c0_413 = arith.constant 0 : index
    %367 = vector.load %arg0[%c3_410, %c1_411, %c1_412, %c0_413] : memref<4x2x8x32xf32, #tpu.memory_space<vmem>>, vector<1x1x7x32xf32>
    %368 = vector.shape_cast %367 : vector<1x1x7x32xf32> to vector<7x32xf32>
    %c4_414 = arith.constant 4 : index
    %c0_415 = arith.constant 0 : index
    %c0_416 = arith.constant 0 : index
    %369 = vector.load %arg1[%c4_414, %c0_415, %c0_416] : memref<5x32x256xf32, #tpu.memory_space<vmem>>, vector<1x32x256xf32>
    %370 = vector.shape_cast %369 : vector<1x32x256xf32> to vector<32x256xf32>
    %cst_417 = arith.constant dense<0.000000e+00> : vector<7x256xf32>
    %371 = tpu.matmul %368, %370, %cst_417 {dimension_numbers = #tpu.dot_dimension_numbers<[1], [0], [0], [1], [0, 0, 1, 1], [], []>} : vector<7x32xf32>, vector<32x256xf32>, vector<7x256xf32> -> vector<7x256xf32>
    %372 = arith.addf %366, %371 : vector<7x256xf32>
    %373 = vector.extract_strided_slice %372 {offsets = [0, 0], sizes = [7, 128], strides = [1, 1]} : vector<7x256xf32> to vector<7x128xf32>
    %374 = vector.extract_strided_slice %372 {offsets = [0, 128], sizes = [7, 128], strides = [1, 1]} : vector<7x256xf32> to vector<7x128xf32>
    %375 = arith.maximumf %373, %374 : vector<7x128xf32>
    %376 = arith.maximumf %341, %375 : vector<7x128xf32>
    %c0_418 = arith.constant 0 : index
    %c0_419 = arith.constant 0 : index
    %377 = vector.load %arg2[%c0_418, %c0_419] : memref<1x128xf32, #tpu.memory_space<vmem>>, vector<1x128xf32>
    %378 = vector.broadcast %377 : vector<1x128xf32> to vector<7x128xf32>
    %379 = arith.addf %376, %378 : vector<7x128xf32>
    %cst_420 = arith.constant 0.000000e+00 : f32
    %380 = vector.broadcast %cst_420 : f32 to vector<7x128xf32>
    %381 = arith.maximumf %379, %380 : vector<7x128xf32>
    %c1_421 = arith.constant 1 : index
    %c0_422 = arith.constant 0 : index
    %c0_423 = arith.constant 0 : index
    %382 = vector.load %arg12[%c1_421, %c0_422, %c0_423] : memref<2x7x128xf32, #tpu.memory_space<vmem>>, vector<1x7x128xf32>
    %383 = vector.shape_cast %382 : vector<1x7x128xf32> to vector<7x128xf32>
    %384 = vector.shape_cast %381 : vector<7x128xf32> to vector<1x7x128xf32>
    tpu.vector_store %arg12[%c1_421, %c0_422, %c0_423], %384 {strides = array<i32>} : memref<2x7x128xf32, #tpu.memory_space<vmem>>, vector<1x7x128xf32>,
    %cst_424 = arith.constant 0.000000e+00 : f32
    %385 = vector.broadcast %cst_424 : f32 to vector<5x256xf32>
    %c0_425 = arith.constant 0 : index
    %c0_426 = arith.constant 0 : index
    %c0_427 = arith.constant 0 : index
    %386 = vector.load %arg12[%c0_425, %c0_426, %c0_427] : memref<2x7x128xf32, #tpu.memory_space<vmem>>, vector<1x5x128xf32>
    %387 = vector.shape_cast %386 : vector<1x5x128xf32> to vector<5x128xf32>
    %c0_428 = arith.constant 0 : index
    %c0_429 = arith.constant 0 : index
    %c0_430 = arith.constant 0 : index
    %388 = vector.load %arg3[%c0_428, %c0_429, %c0_430] : memref<5x128x256xf32, #tpu.memory_space<vmem>>, vector<1x128x256xf32>
    %389 = vector.shape_cast %388 : vector<1x128x256xf32> to vector<128x256xf32>
    %cst_431 = arith.constant dense<0.000000e+00> : vector<5x256xf32>
    %390 = tpu.matmul %387, %389, %cst_431 {dimension_numbers = #tpu.dot_dimension_numbers<[1], [0], [0], [1], [0, 0, 1, 1], [], []>} : vector<5x128xf32>, vector<128x256xf32>, vector<5x256xf32> -> vector<5x256xf32>
    %391 = arith.addf %385, %390 : vector<5x256xf32>
    %c1_432 = arith.constant 1 : index
    %c0_433 = arith.constant 0 : index
    %c0_434 = arith.constant 0 : index
    %392 = vector.load %arg12[%c1_432, %c0_433, %c0_434] : memref<2x7x128xf32, #tpu.memory_space<vmem>>, vector<1x5x128xf32>
    %393 = vector.shape_cast %392 : vector<1x5x128xf32> to vector<5x128xf32>
    %c1_435 = arith.constant 1 : index
    %c0_436 = arith.constant 0 : index
    %c0_437 = arith.constant 0 : index
    %394 = vector.load %arg3[%c1_435, %c0_436, %c0_437] : memref<5x128x256xf32, #tpu.memory_space<vmem>>, vector<1x128x256xf32>
    %395 = vector.shape_cast %394 : vector<1x128x256xf32> to vector<128x256xf32>
    %cst_438 = arith.constant dense<0.000000e+00> : vector<5x256xf32>
    %396 = tpu.matmul %393, %395, %cst_438 {dimension_numbers = #tpu.dot_dimension_numbers<[1], [0], [0], [1], [0, 0, 1, 1], [], []>} : vector<5x128xf32>, vector<128x256xf32>, vector<5x256xf32> -> vector<5x256xf32>
    %397 = arith.addf %391, %396 : vector<5x256xf32>
    %c0_439 = arith.constant 0 : index
    %c1_440 = arith.constant 1 : index
    %c0_441 = arith.constant 0 : index
    %398 = vector.load %arg12[%c0_439, %c1_440, %c0_441] : memref<2x7x128xf32, #tpu.memory_space<vmem>>, vector<1x5x128xf32>
    %399 = vector.shape_cast %398 : vector<1x5x128xf32> to vector<5x128xf32>
    %c2_442 = arith.constant 2 : index
    %c0_443 = arith.constant 0 : index
    %c0_444 = arith.constant 0 : index
    %400 = vector.load %arg3[%c2_442, %c0_443, %c0_444] : memref<5x128x256xf32, #tpu.memory_space<vmem>>, vector<1x128x256xf32>
    %401 = vector.shape_cast %400 : vector<1x128x256xf32> to vector<128x256xf32>
    %cst_445 = arith.constant dense<0.000000e+00> : vector<5x256xf32>
    %402 = tpu.matmul %399, %401, %cst_445 {dimension_numbers = #tpu.dot_dimension_numbers<[1], [0], [0], [1], [0, 0, 1, 1], [], []>} : vector<5x128xf32>, vector<128x256xf32>, vector<5x256xf32> -> vector<5x256xf32>
    %403 = arith.addf %397, %402 : vector<5x256xf32>
    %c1_446 = arith.constant 1 : index
    %c1_447 = arith.constant 1 : index
    %c0_448 = arith.constant 0 : index
    %404 = vector.load %arg12[%c1_446, %c1_447, %c0_448] : memref<2x7x128xf32, #tpu.memory_space<vmem>>, vector<1x5x128xf32>
    %405 = vector.shape_cast %404 : vector<1x5x128xf32> to vector<5x128xf32>
    %c3_449 = arith.constant 3 : index
    %c0_450 = arith.constant 0 : index
    %c0_451 = arith.constant 0 : index
    %406 = vector.load %arg3[%c3_449, %c0_450, %c0_451] : memref<5x128x256xf32, #tpu.memory_space<vmem>>, vector<1x128x256xf32>
    %407 = vector.shape_cast %406 : vector<1x128x256xf32> to vector<128x256xf32>
    %cst_452 = arith.constant dense<0.000000e+00> : vector<5x256xf32>
    %408 = tpu.matmul %405, %407, %cst_452 {dimension_numbers = #tpu.dot_dimension_numbers<[1], [0], [0], [1], [0, 0, 1, 1], [], []>} : vector<5x128xf32>, vector<128x256xf32>, vector<5x256xf32> -> vector<5x256xf32>
    %409 = arith.addf %403, %408 : vector<5x256xf32>
    %c0_453 = arith.constant 0 : index
    %c2_454 = arith.constant 2 : index
    %c0_455 = arith.constant 0 : index
    %410 = vector.load %arg12[%c0_453, %c2_454, %c0_455] : memref<2x7x128xf32, #tpu.memory_space<vmem>>, vector<1x5x128xf32>
    %411 = vector.shape_cast %410 : vector<1x5x128xf32> to vector<5x128xf32>
    %c4_456 = arith.constant 4 : index
    %c0_457 = arith.constant 0 : index
    %c0_458 = arith.constant 0 : index
    %412 = vector.load %arg3[%c4_456, %c0_457, %c0_458] : memref<5x128x256xf32, #tpu.memory_space<vmem>>, vector<1x128x256xf32>
    %413 = vector.shape_cast %412 : vector<1x128x256xf32> to vector<128x256xf32>
    %cst_459 = arith.constant dense<0.000000e+00> : vector<5x256xf32>
    %414 = tpu.matmul %411, %413, %cst_459 {dimension_numbers = #tpu.dot_dimension_numbers<[1], [0], [0], [1], [0, 0, 1, 1], [], []>} : vector<5x128xf32>, vector<128x256xf32>, vector<5x256xf32> -> vector<5x256xf32>
    %415 = arith.addf %409, %414 : vector<5x256xf32>
    %416 = vector.extract_strided_slice %415 {offsets = [0, 0], sizes = [5, 128], strides = [1, 1]} : vector<5x256xf32> to vector<5x128xf32>
    %417 = vector.extract_strided_slice %415 {offsets = [0, 128], sizes = [5, 128], strides = [1, 1]} : vector<5x256xf32> to vector<5x128xf32>
    %418 = arith.maximumf %416, %417 : vector<5x128xf32>
    %cst_460 = arith.constant 0.000000e+00 : f32
    %419 = vector.broadcast %cst_460 : f32 to vector<5x256xf32>
    %c1_461 = arith.constant 1 : index
    %c0_462 = arith.constant 0 : index
    %c0_463 = arith.constant 0 : index
    %420 = vector.load %arg12[%c1_461, %c0_462, %c0_463] : memref<2x7x128xf32, #tpu.memory_space<vmem>>, vector<1x5x128xf32>
    %421 = vector.shape_cast %420 : vector<1x5x128xf32> to vector<5x128xf32>
    %c0_464 = arith.constant 0 : index
    %c0_465 = arith.constant 0 : index
    %c0_466 = arith.constant 0 : index
    %422 = vector.load %arg3[%c0_464, %c0_465, %c0_466] : memref<5x128x256xf32, #tpu.memory_space<vmem>>, vector<1x128x256xf32>
    %423 = vector.shape_cast %422 : vector<1x128x256xf32> to vector<128x256xf32>
    %cst_467 = arith.constant dense<0.000000e+00> : vector<5x256xf32>
    %424 = tpu.matmul %421, %423, %cst_467 {dimension_numbers = #tpu.dot_dimension_numbers<[1], [0], [0], [1], [0, 0, 1, 1], [], []>} : vector<5x128xf32>, vector<128x256xf32>, vector<5x256xf32> -> vector<5x256xf32>
    %425 = arith.addf %419, %424 : vector<5x256xf32>
    %c0_468 = arith.constant 0 : index
    %c1_469 = arith.constant 1 : index
    %c0_470 = arith.constant 0 : index
    %426 = vector.load %arg12[%c0_468, %c1_469, %c0_470] : memref<2x7x128xf32, #tpu.memory_space<vmem>>, vector<1x5x128xf32>
    %427 = vector.shape_cast %426 : vector<1x5x128xf32> to vector<5x128xf32>
    %c1_471 = arith.constant 1 : index
    %c0_472 = arith.constant 0 : index
    %c0_473 = arith.constant 0 : index
    %428 = vector.load %arg3[%c1_471, %c0_472, %c0_473] : memref<5x128x256xf32, #tpu.memory_space<vmem>>, vector<1x128x256xf32>
    %429 = vector.shape_cast %428 : vector<1x128x256xf32> to vector<128x256xf32>
    %cst_474 = arith.constant dense<0.000000e+00> : vector<5x256xf32>
    %430 = tpu.matmul %427, %429, %cst_474 {dimension_numbers = #tpu.dot_dimension_numbers<[1], [0], [0], [1], [0, 0, 1, 1], [], []>} : vector<5x128xf32>, vector<128x256xf32>, vector<5x256xf32> -> vector<5x256xf32>
    %431 = arith.addf %425, %430 : vector<5x256xf32>
    %c1_475 = arith.constant 1 : index
    %c1_476 = arith.constant 1 : index
    %c0_477 = arith.constant 0 : index
    %432 = vector.load %arg12[%c1_475, %c1_476, %c0_477] : memref<2x7x128xf32, #tpu.memory_space<vmem>>, vector<1x5x128xf32>
    %433 = vector.shape_cast %432 : vector<1x5x128xf32> to vector<5x128xf32>
    %c2_478 = arith.constant 2 : index
    %c0_479 = arith.constant 0 : index
    %c0_480 = arith.constant 0 : index
    %434 = vector.load %arg3[%c2_478, %c0_479, %c0_480] : memref<5x128x256xf32, #tpu.memory_space<vmem>>, vector<1x128x256xf32>
    %435 = vector.shape_cast %434 : vector<1x128x256xf32> to vector<128x256xf32>
    %cst_481 = arith.constant dense<0.000000e+00> : vector<5x256xf32>
    %436 = tpu.matmul %433, %435, %cst_481 {dimension_numbers = #tpu.dot_dimension_numbers<[1], [0], [0], [1], [0, 0, 1, 1], [], []>} : vector<5x128xf32>, vector<128x256xf32>, vector<5x256xf32> -> vector<5x256xf32>
    %437 = arith.addf %431, %436 : vector<5x256xf32>
    %c0_482 = arith.constant 0 : index
    %c2_483 = arith.constant 2 : index
    %c0_484 = arith.constant 0 : index
    %438 = vector.load %arg12[%c0_482, %c2_483, %c0_484] : memref<2x7x128xf32, #tpu.memory_space<vmem>>, vector<1x5x128xf32>
    %439 = vector.shape_cast %438 : vector<1x5x128xf32> to vector<5x128xf32>
    %c3_485 = arith.constant 3 : index
    %c0_486 = arith.constant 0 : index
    %c0_487 = arith.constant 0 : index
    %440 = vector.load %arg3[%c3_485, %c0_486, %c0_487] : memref<5x128x256xf32, #tpu.memory_space<vmem>>, vector<1x128x256xf32>
    %441 = vector.shape_cast %440 : vector<1x128x256xf32> to vector<128x256xf32>
    %cst_488 = arith.constant dense<0.000000e+00> : vector<5x256xf32>
    %442 = tpu.matmul %439, %441, %cst_488 {dimension_numbers = #tpu.dot_dimension_numbers<[1], [0], [0], [1], [0, 0, 1, 1], [], []>} : vector<5x128xf32>, vector<128x256xf32>, vector<5x256xf32> -> vector<5x256xf32>
    %443 = arith.addf %437, %442 : vector<5x256xf32>
    %c1_489 = arith.constant 1 : index
    %c2_490 = arith.constant 2 : index
    %c0_491 = arith.constant 0 : index
    %444 = vector.load %arg12[%c1_489, %c2_490, %c0_491] : memref<2x7x128xf32, #tpu.memory_space<vmem>>, vector<1x5x128xf32>
    %445 = vector.shape_cast %444 : vector<1x5x128xf32> to vector<5x128xf32>
    %c4_492 = arith.constant 4 : index
    %c0_493 = arith.constant 0 : index
    %c0_494 = arith.constant 0 : index
    %446 = vector.load %arg3[%c4_492, %c0_493, %c0_494] : memref<5x128x256xf32, #tpu.memory_space<vmem>>, vector<1x128x256xf32>
    %447 = vector.shape_cast %446 : vector<1x128x256xf32> to vector<128x256xf32>
    %cst_495 = arith.constant dense<0.000000e+00> : vector<5x256xf32>
    %448 = tpu.matmul %445, %447, %cst_495 {dimension_numbers = #tpu.dot_dimension_numbers<[1], [0], [0], [1], [0, 0, 1, 1], [], []>} : vector<5x128xf32>, vector<128x256xf32>, vector<5x256xf32> -> vector<5x256xf32>
    %449 = arith.addf %443, %448 : vector<5x256xf32>
    %450 = vector.extract_strided_slice %449 {offsets = [0, 0], sizes = [5, 128], strides = [1, 1]} : vector<5x256xf32> to vector<5x128xf32>
    %451 = vector.extract_strided_slice %449 {offsets = [0, 128], sizes = [5, 128], strides = [1, 1]} : vector<5x256xf32> to vector<5x128xf32>
    %452 = arith.maximumf %450, %451 : vector<5x128xf32>
    %453 = arith.maximumf %418, %452 : vector<5x128xf32>
    %c0_496 = arith.constant 0 : index
    %c0_497 = arith.constant 0 : index
    %454 = vector.load %arg4[%c0_496, %c0_497] : memref<1x128xf32, #tpu.memory_space<vmem>>, vector<1x128xf32>
    %455 = vector.broadcast %454 : vector<1x128xf32> to vector<5x128xf32>
    %456 = arith.addf %453, %455 : vector<5x128xf32>
    %cst_498 = arith.constant 0.000000e+00 : f32
    %457 = vector.broadcast %cst_498 : f32 to vector<5x128xf32>
    %458 = arith.maximumf %456, %457 : vector<5x128xf32>
    %c1_499 = arith.constant 1 : index
    %c0_500 = arith.constant 0 : index
    %c0_501 = arith.constant 0 : index
    %459 = vector.load %arg13[%c1_499, %c0_500, %c0_501] : memref<2x5x128xf32, #tpu.memory_space<vmem>>, vector<1x5x128xf32>
    %460 = vector.shape_cast %459 : vector<1x5x128xf32> to vector<5x128xf32>
    %461 = vector.shape_cast %458 : vector<5x128xf32> to vector<1x5x128xf32>
    tpu.vector_store %arg13[%c1_499, %c0_500, %c0_501], %461 {strides = array<i32>} : memref<2x5x128xf32, #tpu.memory_space<vmem>>, vector<1x5x128xf32>,
    %c0_502 = arith.constant 0 : index
    %c0_503 = arith.constant 0 : index
    %c0_504 = arith.constant 0 : index
    %462 = vector.load %arg13[%c0_502, %c0_503, %c0_504] : memref<2x5x128xf32, #tpu.memory_space<vmem>>, vector<2x5x128xf32>
    %cst_505 = arith.constant 0.000000e+00 : f32
    %463 = vector.broadcast %cst_505 : f32 to vector<2x128xf32>
    %464 = vector.extract_strided_slice %462 {offsets = [0, 0, 0], sizes = [2, 1, 128], strides = [1, 1, 1]} : vector<2x5x128xf32> to vector<2x1x128xf32>
    %465 = vector.shape_cast %464 : vector<2x1x128xf32> to vector<2x128xf32>
    %c0_506 = arith.constant 0 : index
    %c0_507 = arith.constant 0 : index
    %c0_508 = arith.constant 0 : index
    %466 = vector.load %arg5[%c0_506, %c0_507, %c0_508] : memref<5x128x128xf32, #tpu.memory_space<vmem>>, vector<1x128x128xf32>
    %467 = vector.shape_cast %466 : vector<1x128x128xf32> to vector<128x128xf32>
    %cst_509 = arith.constant dense<0.000000e+00> : vector<2x128xf32>
    %468 = tpu.matmul %465, %467, %cst_509 {dimension_numbers = #tpu.dot_dimension_numbers<[1], [0], [0], [1], [0, 0, 1, 1], [], []>} : vector<2x128xf32>, vector<128x128xf32>, vector<2x128xf32> -> vector<2x128xf32>
    %469 = arith.addf %463, %468 : vector<2x128xf32>
    %470 = vector.extract_strided_slice %462 {offsets = [0, 1, 0], sizes = [2, 1, 128], strides = [1, 1, 1]} : vector<2x5x128xf32> to vector<2x1x128xf32>
    %471 = vector.shape_cast %470 : vector<2x1x128xf32> to vector<2x128xf32>
    %c1_510 = arith.constant 1 : index
    %c0_511 = arith.constant 0 : index
    %c0_512 = arith.constant 0 : index
    %472 = vector.load %arg5[%c1_510, %c0_511, %c0_512] : memref<5x128x128xf32, #tpu.memory_space<vmem>>, vector<1x128x128xf32>
    %473 = vector.shape_cast %472 : vector<1x128x128xf32> to vector<128x128xf32>
    %cst_513 = arith.constant dense<0.000000e+00> : vector<2x128xf32>
    %474 = tpu.matmul %471, %473, %cst_513 {dimension_numbers = #tpu.dot_dimension_numbers<[1], [0], [0], [1], [0, 0, 1, 1], [], []>} : vector<2x128xf32>, vector<128x128xf32>, vector<2x128xf32> -> vector<2x128xf32>
    %475 = arith.addf %469, %474 : vector<2x128xf32>
    %476 = vector.extract_strided_slice %462 {offsets = [0, 2, 0], sizes = [2, 1, 128], strides = [1, 1, 1]} : vector<2x5x128xf32> to vector<2x1x128xf32>
    %477 = vector.shape_cast %476 : vector<2x1x128xf32> to vector<2x128xf32>
    %c2_514 = arith.constant 2 : index
    %c0_515 = arith.constant 0 : index
    %c0_516 = arith.constant 0 : index
    %478 = vector.load %arg5[%c2_514, %c0_515, %c0_516] : memref<5x128x128xf32, #tpu.memory_space<vmem>>, vector<1x128x128xf32>
    %479 = vector.shape_cast %478 : vector<1x128x128xf32> to vector<128x128xf32>
    %cst_517 = arith.constant dense<0.000000e+00> : vector<2x128xf32>
    %480 = tpu.matmul %477, %479, %cst_517 {dimension_numbers = #tpu.dot_dimension_numbers<[1], [0], [0], [1], [0, 0, 1, 1], [], []>} : vector<2x128xf32>, vector<128x128xf32>, vector<2x128xf32> -> vector<2x128xf32>
    %481 = arith.addf %475, %480 : vector<2x128xf32>
    %482 = vector.extract_strided_slice %462 {offsets = [0, 3, 0], sizes = [2, 1, 128], strides = [1, 1, 1]} : vector<2x5x128xf32> to vector<2x1x128xf32>
    %483 = vector.shape_cast %482 : vector<2x1x128xf32> to vector<2x128xf32>
    %c3_518 = arith.constant 3 : index
    %c0_519 = arith.constant 0 : index
    %c0_520 = arith.constant 0 : index
    %484 = vector.load %arg5[%c3_518, %c0_519, %c0_520] : memref<5x128x128xf32, #tpu.memory_space<vmem>>, vector<1x128x128xf32>
    %485 = vector.shape_cast %484 : vector<1x128x128xf32> to vector<128x128xf32>
    %cst_521 = arith.constant dense<0.000000e+00> : vector<2x128xf32>
    %486 = tpu.matmul %483, %485, %cst_521 {dimension_numbers = #tpu.dot_dimension_numbers<[1], [0], [0], [1], [0, 0, 1, 1], [], []>} : vector<2x128xf32>, vector<128x128xf32>, vector<2x128xf32> -> vector<2x128xf32>
    %487 = arith.addf %481, %486 : vector<2x128xf32>
    %488 = vector.extract_strided_slice %462 {offsets = [0, 4, 0], sizes = [2, 1, 128], strides = [1, 1, 1]} : vector<2x5x128xf32> to vector<2x1x128xf32>
    %489 = vector.shape_cast %488 : vector<2x1x128xf32> to vector<2x128xf32>
    %c4_522 = arith.constant 4 : index
    %c0_523 = arith.constant 0 : index
    %c0_524 = arith.constant 0 : index
    %490 = vector.load %arg5[%c4_522, %c0_523, %c0_524] : memref<5x128x128xf32, #tpu.memory_space<vmem>>, vector<1x128x128xf32>
    %491 = vector.shape_cast %490 : vector<1x128x128xf32> to vector<128x128xf32>
    %cst_525 = arith.constant dense<0.000000e+00> : vector<2x128xf32>
    %492 = tpu.matmul %489, %491, %cst_525 {dimension_numbers = #tpu.dot_dimension_numbers<[1], [0], [0], [1], [0, 0, 1, 1], [], []>} : vector<2x128xf32>, vector<128x128xf32>, vector<2x128xf32> -> vector<2x128xf32>
    %493 = arith.addf %487, %492 : vector<2x128xf32>
    %c0_526 = arith.constant 0 : index
    %c0_527 = arith.constant 0 : index
    %494 = vector.load %arg6[%c0_526, %c0_527] : memref<1x128xf32, #tpu.memory_space<vmem>>, vector<1x128xf32>
    %495 = vector.broadcast %494 : vector<1x128xf32> to vector<2x128xf32>
    %496 = arith.addf %493, %495 : vector<2x128xf32>
    %cst_528 = arith.constant 0.000000e+00 : f32
    %497 = vector.broadcast %cst_528 : f32 to vector<2x128xf32>
    %498 = arith.maximumf %496, %497 : vector<2x128xf32>
    %c0_529 = arith.constant 0 : index
    %c0_530 = arith.constant 0 : index
    %499 = vector.load %arg7[%c0_529, %c0_530] : memref<128x128xf32, #tpu.memory_space<vmem>>, vector<128x128xf32>
    %cst_531 = arith.constant dense<0.000000e+00> : vector<2x128xf32>
    %500 = tpu.matmul %498, %499, %cst_531 {dimension_numbers = #tpu.dot_dimension_numbers<[1], [0], [0], [1], [0, 0, 1, 1], [], []>} : vector<2x128xf32>, vector<128x128xf32>, vector<2x128xf32> -> vector<2x128xf32>
    %c0_532 = arith.constant 0 : index
    %c0_533 = arith.constant 0 : index
    %501 = vector.load %arg8[%c0_532, %c0_533] : memref<1x128xf32, #tpu.memory_space<vmem>>, vector<1x128xf32>
    %502 = vector.broadcast %501 : vector<1x128xf32> to vector<2x128xf32>
    %503 = arith.addf %500, %502 : vector<2x128xf32>
    %cst_534 = arith.constant 0.000000e+00 : f32
    %504 = vector.broadcast %cst_534 : f32 to vector<2x128xf32>
    %505 = arith.maximumf %503, %504 : vector<2x128xf32>
    %c0_535 = arith.constant 0 : index
    %c0_536 = arith.constant 0 : index
    %506 = vector.load %arg9[%c0_535, %c0_536] : memref<128x128xf32, #tpu.memory_space<vmem>>, vector<128x128xf32>
    %cst_537 = arith.constant dense<0.000000e+00> : vector<2x128xf32>
    %507 = tpu.matmul %505, %506, %cst_537 {dimension_numbers = #tpu.dot_dimension_numbers<[1], [0], [0], [1], [0, 0, 1, 1], [], []>} : vector<2x128xf32>, vector<128x128xf32>, vector<2x128xf32> -> vector<2x128xf32>
    %c0_538 = arith.constant 0 : index
    %c0_539 = arith.constant 0 : index
    %508 = vector.load %arg10[%c0_538, %c0_539] : memref<1x128xf32, #tpu.memory_space<vmem>>, vector<1x128xf32>
    %509 = vector.broadcast %508 : vector<1x128xf32> to vector<2x128xf32>
    %510 = arith.addf %507, %509 : vector<2x128xf32>
    %c0_540 = arith.constant 0 : index
    %c0_541 = arith.constant 0 : index
    %511 = vector.load %arg11[%c0_540, %c0_541] : memref<2x128xf32, #tpu.memory_space<vmem>>, vector<2x128xf32>
    tpu.vector_store %arg11[%c0_540, %c0_541], %510 {strides = array<i32>} : memref<2x128xf32, #tpu.memory_space<vmem>>, vector<2x128xf32>,
    return
  }
}

</mosaic_0001>

<bundles_post_ra>
// kernel: lenet_forward.1
= control target key start
LH: loop header
LB: loop body
LE: loop exit
PB: predicated region body
PF: predicated region fallthrough
CT: control target
= control target key end

     0   :  { %16 = vsyncpa [#allocation5], 0  ;;  %s8867_s0 = inlined_call_operand.vmem [shape: f32[4,2,8,32], index: 0, kind: input, shape index: {}]   ;;  %s8868_s1 = inlined_call_operand.vmem [shape: f32[5,32,256], index: 1, kind: input, shape index: {}]   ;;  %s8869_s2 = inlined_call_operand.vmem [shape: f32[1,128], index: 2, kind: input, shape index: {}]   ;;  %s8870_s3 = inlined_call_operand.hbm [shape: f32[5,128,256], index: 3, kind: input, shape index: {}]   ;;  %s8871_s4 = inlined_call_operand.vmem [shape: f32[1,128], index: 4, kind: input, shape index: {}]   ;;  %s8872_s5 = inlined_call_operand.hbm [shape: f32[5,128,128], index: 5, kind: input, shape index: {}]   ;;  %s8873_s6 = inlined_call_operand.vmem [shape: f32[1,128], index: 6, kind: input, shape index: {}]   ;;  %s8874_s7 = inlined_call_operand.vmem [shape: f32[128,128], index: 7, kind: input, shape index: {}]   ;;  %s8875_s8 = inlined_call_operand.vmem [shape: f32[1,128], index: 8, kind: input, shape index: {}]   ;;  %s8876_s9 = inlined_call_operand.vmem [shape: f32[128,128], index: 9, kind: input, shape index: {}]   ;;  %s8877_s10 = inlined_call_operand.vmem [shape: f32[1,128], index: 10, kind: input, shape index: {}]   ;;  %s8878_s11 = inlined_call_operand.hbm [shape: f32[2,128], index: 11, kind: output, shape index: {}]  }
   0x1   :  { %17 = vsyncpa [#allocation8], 0 }
   0x2   :  { %18 = vsyncpa [#allocation6], 0  ;;  %s6426_s17 = smov [#allocation4]  }
   0x3   :  { %s30_s18 = sshll.u32 %s6426_s17, 4  ;;  %s31_s18 = int_to_ptr.vmem [resolvable:$true] %s30_s18 }
   0x4   :  { %s6368_s19 = scalar_lea.vmem %s31_s18, 20480  ;;  %p6373_p1 = scmp.lt.s32.totalorder %s31_s18, %s31_s18 }
   0x5   :  { %p6369_p0 = scmp.ne.s32.totalorder %s31_s18, %s6368_s19  ;;  %p6374_p2 = scmp.lt.s32.totalorder %s6368_s19, %s6368_s19 }
   0x7   :  { %p6375_p3 = por %p6374_p2, %p6373_p1 }
   0x9   :  { %p6376_p4 = pnand %p6375_p3, %p6369_p0 }
   0xb   :  { %6379 = shalt.err (!%p6376_p4)
}
   0xc   :  { %s6427_s20 = smov 256   ;;  %s6428_s21 = smov 16  }
   0xd   :  { %36 = dma.hbm_to_vmem [thread:$0]  %s8870_s3, 20480, %s31_s18, [#allocation5], %s6427_s20, %s6427_s20, %s6428_s21  }
   0xe   :  { %s6429_s24 = smov [#allocation7]  }
   0xf   :  { %s44_s25 = sshll.u32 %s6429_s24, 4  ;;  %s45_s25 = int_to_ptr.vmem [resolvable:$true] %s44_s25 }
  0x10   :  { %s6388_s26 = scalar_lea.vmem %s45_s25, 10240  ;;  %p6393_p6 = scmp.lt.s32.totalorder %s45_s25, %s45_s25 }
  0x11   :  { %p6389_p5 = scmp.ne.s32.totalorder %s45_s25, %s6388_s26  ;;  %p6394_p7 = scmp.lt.s32.totalorder %s6388_s26, %s6388_s26 }
  0x13   :  { %p6395_p8 = por %p6394_p7, %p6393_p6 }
  0x15   :  { %p6396_p9 = pnand %p6395_p8, %p6389_p5 }
  0x17   :  { %6399 = shalt.err (!%p6396_p9)
}
  0x18   :  { %s6430_s27 = smov 128   ;;  %s6431_s28 = smov 8  }
  0x19   :  { %50 = dma.hbm_to_vmem [thread:$0]  %s8872_s5, 10240, %s45_s25, [#allocation8], %s6430_s27, %s6430_s27, %s6431_s28  }
  0x1a   :  { %6420 = dma.done.wait [#allocation5], 20480  }
  0x1b   :  { %6421 = vsyncadd [#allocation5], 4294946816 }
  0x1c   :  { %6422 = dma.done.wait [#allocation8], 10240  }
  0x1d   :  { %6423 = vsyncadd [#allocation8], 4294957056  ;;  %v8879_v0 = vmov 0.0   ;;  %v6506_v1 = vld [vmem:[%s8868_s1 + $0x78] sm:$0xff]  ;;  %v6511_v2 = vld [vmem:[%s8868_s1 + $0x70] sm:$0xff]  ;;  %vm87_vm0 = vcmask 261120  }
  0x1e   :  { %155 = vmatprep.mubr.f32.mxu1 %v8879_v0  ;;  %487 = vmatprep.mubr.f32.mxu0 %v8879_v0  ;;  %v6516_v3 = vld [vmem:[%s8868_s1 + $0x68] sm:$0xff]  ;;  %v6522_v4 = vld [vmem:[%s8868_s1 + $0x60] sm:$0xff]  ;;  %v6528_v5 = vld [vmem:[%s8868_s1 + $0x58] sm:$0xff]  ;;  %vm6433_vm1 = vmmov 0   ;;  %vm5121_vm2 = vcmask 1041409   ;;  %s6434_s28 = smov [#allocation9]  }
  0x1f   :  { %115 = vmatprep.subr.mxu1 %v6506_v1  ;;  %v6534_v6 = vld [vmem:[%s8868_s1 + $0x50] sm:$0xff]  ;;  %v6540_v7 = vld [vmem:[%s8868_s1 + $0x48] sm:$0xff]  ;;  %v6546_v8 = vld [vmem:[%s8868_s1 + $0x40] sm:$0xff]  ;;  %s5746_s29 = sshll.u32 %s6434_s28, 4  ;;  %s5747_s29 = int_to_ptr.vmem [resolvable:$true] %s5746_s29 }
  0x20   :  { %116 = vmatpush1.msra.mxu1 %v6511_v2  ;;  %v6552_v9 = vld [vmem:[%s8867_s0 + $0x10] sm:$0x7f]  ;;  %v6557_v10 = vld [vmem:[%s8868_s1 + $0x38] sm:$0xff]  ;;  %v6569_v12 = vld [vmem:[%s8868_s1 + $0x28] sm:$0xff]  ;;  %p6405_p11 = scmp.lt.s32.totalorder %s5747_s29, %s5747_s29 }
  0x21   :  { %117 = vmatprep.subr.mxu1 %v6516_v3  ;;  %v6563_v11 = vld [vmem:[%s8868_s1 + $0x30] sm:$0xff]  ;;  %v6577_v13 = vld [vmem:[%s8868_s1 + $0x20] sm:$0xff]  ;;  %v6582_v14 = vld [vmem:[%s8868_s1 + $0x138] sm:$0xff] }
  0x22   :  { %118 = vmatpush1.msra.mxu1 %v6522_v4  ;;  %v6588_v15 = vld [vmem:[%s8868_s1 + $0x18] sm:$0xff]  ;;  %v6594_v16 = vld [vmem:[%s8868_s1 + $0x130] sm:$0xff]  ;;  %v6599_v17 = vld [vmem:[%s8868_s1 + $0x128] sm:$0xff]  ;;  %447 = vmatprep.subr.mxu0 %v6582_v14 }
  0x23   :  { %119 = vmatprep.subr.mxu1 %v6528_v5  ;;  %v6605_v18 = vld [vmem:[%s8868_s1 + $0x10] sm:$0xff]  ;;  %v6611_v19 = vld [vmem:[%s8868_s1 + $0x120] sm:$0xff]  ;;  %v6617_v20 = vld [vmem:[%s8868_s1 + $0x8] sm:$0xff]  ;;  %448 = vmatpush1.msra.mxu0 %v6594_v16 }
  0x24   :  { %120 = vmatpush1.msra.mxu1 %v6534_v6  ;;  %v6623_v21 = vld [vmem:[%s8868_s1 + $0x118] sm:$0xff]  ;;  %v6629_v22 = vld [vmem:[%s8868_s1] sm:$0xff]  ;;  %449 = vmatprep.subr.mxu0 %v6599_v17  ;;  %v6635_v23 = vld [vmem:[%s8868_s1 + $0x110] sm:$0xff] }
  0x25   :  { %121 = vmatprep.subr.mxu1 %v6540_v7  ;;  %v67_v24 = vld [vmem:[%s8867_s0] sm:$0x7f]  ;;  %v6644_v25 = vld [vmem:[%s8868_s1 + $0xb8] sm:$0xff]  ;;  %450 = vmatpush1.msra.mxu0 %v6611_v19  ;;  %v6651_v26 = vld [vmem:[%s8868_s1 + $0xb0] sm:$0xff] }
  0x26   :  { %122 = vmatpush1.msra.mxu1 %v6546_v8  ;;  %451 = vmatprep.subr.mxu0 %v6623_v21  ;;  %v6658_v27 = vld [vmem:[%s8868_s1 + $0xa8] sm:$0xff]  ;;  %v6671_v29 = vld [vmem:[%s8868_s1 + $0xa0] sm:$0xff]  ;;  %v6682_v31 = vld [vmem:[%s8868_s1 + $0x98] sm:$0xff] }
  0x27   :  { %5765 = vmatmul.mubr.msk.f32.vlgmr.msra.gmra.mxu1 %vm87_vm0, %v6552_v9  ;;  %189 = vmatprep.subr.mxu1 %v6557_v10  ;;  %v6664_v28 = vld [vmem:[%s8868_s1 + $0x108] sm:$0xff]  ;;  %v6676_v30 = vld [vmem:[%s8868_s1 + $0x100] sm:$0xff]  ;;  %v6689_v32 = vld [vmem:[%s8868_s1 + $0x90] sm:$0xff] }
  0x28   :  { %190 = vmatpush1.msra.mxu1 %v6563_v11  ;;  %229 = vmatprep.mubr.f32.mxu1 %v8879_v0  ;;  %v6695_v33 = vld [vmem:[%s8867_s0 + $0x1] sm:$0x7f]  ;;  %v6701_v34 = vld [vmem:[%s8868_s1 + $0x88] sm:$0xff]  ;;  %v6718_v37 = vld [vmem:[%s8868_s1 + $0xf8] sm:$0xff] }
  0x29   :  { %191 = vmatprep.subr.mxu1 %v6569_v12  ;;  %452 = vmatpush1.msra.mxu0 %v6635_v23  ;;  %v6708_v35 = vld [vmem:[%s8868_s1 + $0x80] sm:$0xff]  ;;  %v6726_v38 = vld [vmem:[%s8868_s1 + $0xf0] sm:$0xff]  ;;  %v6733_v39 = vld [vmem:[%s8868_s1 + $0xe8] sm:$0xff] }
  0x2a   :  { %192 = vmatpush1.msra.mxu1 %v6577_v13  ;;  %453 = vmatprep.subr.mxu0 %v6664_v28  ;;  %v5767_v36 = vld [vmem:[%s8867_s0 + $0x20] sm:$0x7f]  ;;  %v6747_v41 = vld [vmem:[%s8868_s1 + $0xd8] sm:$0xff]  ;;  %v6754_v42 = vld [vmem:[%s8868_s1 + $0xd0] sm:$0xff] }
  0x2b   :  { %193 = vmatprep.subr.mxu1 %v6588_v15  ;;  %454 = vmatpush1.msra.mxu0 %v6676_v30  ;;  %v6741_v40 = vld [vmem:[%s8868_s1 + $0xe0] sm:$0xff]  ;;  %v6761_v43 = vld [vmem:[%s8868_s1 + $0xc8] sm:$0xff]  ;;  %v5777_v45 = vld [vmem:[%s8867_s0 + $0x30] sm:$0x7f] }
  0x2c   :  { %194 = vmatpush1.msra.mxu1 %v6605_v18  ;;  %592 = vmatprep.subr.mxu0 %v6557_v10  ;;  %v6768_v44 = vld [vmem:[%s8868_s1 + $0xc0] sm:$0xff]  ;;  %v5800_v46 = vld [vmem:[%s8867_s0 + $0x11] sm:$0x7f]  ;;  %v6951_v53 = vld [vmem:[#allocation4 + $0xf8] sm:$0xff] }
  0x2d   :  { %195 = vmatprep.subr.mxu1 %v6617_v20  ;;  %5795 = vmatmul.mubr.msk.f32.vlgmr.msra.gmra.mxu0 %vm87_vm0, %v6695_v33  ;;  %v6836_v47 = vld [vmem:[%s8867_s0 + $0x30] sm:$0x7f]  ;;  %v5803_v48 = vld [vmem:[%s8867_s0 + $0x20] sm:$0x7f]  ;;  %8953 = vst [vmem:[#allocation13_spill] sm:$0xff] %v6951_v53  ;;  %v6955_v55 = vld [vmem:[#allocation4 + $0xe8] sm:$0xff] }
  0x2e   :  { %196 = vmatpush1.msra.mxu1 %v6629_v22  ;;  %593 = vmatpush1.msra.mxu0 %v6563_v11  ;;  %v1040_v49 = vld [vmem:[%s8867_s0 + $0x1] sm:$0x7f]  ;;  %v5824_v50 = vld [vmem:[%s8867_s0 + $0x11] sm:$0x7f]  ;;  %8955 = vst [vmem:[#allocation15_spill] sm:$0xff] %v6955_v55  ;;  %v6962_v57 = vld [vmem:[#allocation4 + $0xd8] sm:$0xff] }
  0x2f   :  { %5766 = vmatmul.mubr.msk.f32.vlgmr.msra.gmra.mxu1 %vm87_vm0, %v67_v24  ;;  %274 = vmatprep.subr.mxu1 %v6644_v25  ;;  %v5834_v51 = vld [vmem:[%s8867_s0 + $0x21] sm:$0x7f]  ;;  %v5848_v52 = vld [vmem:[%s8867_s0 + $0x31] sm:$0x7f]  ;;  %8957 = vst [vmem:[#allocation17_spill] sm:$0xff] %v6962_v57  ;;  %v6968_v59 = vld [vmem:[#allocation4 + $0xc8] sm:$0xff] }
  0x30   :  { %275 = vmatpush1.msra.mxu1 %v6651_v26  ;;  %314 = vmatprep.mubr.f32.mxu1 %v8879_v0  ;;  %v6953_v54 = vld [vmem:[#allocation4 + $0xf0] sm:$0xff]  ;;  %v6960_v56 = vld [vmem:[#allocation4 + $0xe0] sm:$0xff]  ;;  %8959 = vst [vmem:[#allocation19_spill] sm:$0xff] %v6968_v59  ;;  %v6974_v61 = vld [vmem:[#allocation4 + $0xb8] sm:$0xff] }
  0x31   :  { %276 = vmatprep.subr.mxu1 %v6658_v27  ;;  %594 = vmatprep.subr.mxu0 %v6569_v12  ;;  %8954 = vst [vmem:[#allocation14_spill] sm:$0xff] %v6953_v54  ;;  %8956 = vst [vmem:[#allocation16_spill] sm:$0xff] %v6960_v56  ;;  %v6966_v58 = vld [vmem:[#allocation4 + $0xd0] sm:$0xff]  ;;  %v6972_v60 = vld [vmem:[#allocation4 + $0xc0] sm:$0xff] }
  0x32   :  { %277 = vmatpush1.msra.mxu1 %v6671_v29  ;;  %595 = vmatpush1.msra.mxu0 %v6577_v13  ;;  %8958 = vst [vmem:[#allocation18_spill] sm:$0xff] %v6966_v58  ;;  %8960 = vst [vmem:[#allocation20_spill] sm:$0xff] %v6972_v60  ;;  %v6976_v62 = vld [vmem:[#allocation4 + $0xb0] sm:$0xff]  ;;  %v6979_v63 = vld [vmem:[#allocation4 + $0xa8] sm:$0xff] }
  0x33   :  { %278 = vmatprep.subr.mxu1 %v6682_v31  ;;  %596 = vmatprep.subr.mxu0 %v6588_v15  ;;  %8961 = vst [vmem:[#allocation21_spill] sm:$0xff] %v6974_v61  ;;  %8962 = vst [vmem:[#allocation22_spill] sm:$0xff] %v6976_v62  ;;  %v7051_v24 = vld [vmem:[#allocation4 + $0x1f0] sm:$0xff] }
  0x34   :  { %279 = vmatpush1.msra.mxu1 %v6689_v32  ;;  %597 = vmatpush1.msra.mxu0 %v6605_v18  ;;  %8963 = vst [vmem:[#allocation23_spill] sm:$0xff] %v6979_v63 }
  0x35   :  { %280 = vmatprep.subr.mxu1 %v6701_v34  ;;  %598 = vmatprep.subr.mxu0 %v6617_v20 }
  0x36   :  { %281 = vmatpush1.msra.mxu1 %v6708_v35  ;;  %599 = vmatpush1.msra.mxu0 %v6629_v22 }
  0x37   :  { %5776 = vmatmul.mubr.msk.f32.vlgmr.msra.gmra.mxu1 %vm87_vm0, %v5767_v36  ;;  %361 = vmatprep.subr.mxu1 %v6718_v37 }
  0x38   :  { %362 = vmatpush1.msra.mxu1 %v6726_v38  ;;  %401 = vmatprep.mubr.f32.mxu1 %v8879_v0 }
  0x39   :  { %363 = vmatprep.subr.mxu1 %v6733_v39  ;;  %632 = vmatprep.mubr.f32.mxu0 %v8879_v0 }
  0x3a   :  { %364 = vmatpush1.msra.mxu1 %v6741_v40  ;;  %5797 = vmatmul.mubr.msk.f32.vlgmr.msra.gmra.mxu0 %vm87_vm0, %v6552_v9  ;;  %v7006_v9 = vld [vmem:[#allocation4 + $0x60] sm:$0xff] }
  0x3b   :  { %365 = vmatprep.subr.mxu1 %v6747_v41  ;;  %736 = vmatprep.subr.mxu0 %v6718_v37  ;;  %8972 = vst [vmem:[#allocation32_spill] sm:$0xff] %v7006_v9 }
  0x3c   :  { %366 = vmatpush1.msra.mxu1 %v6754_v42  ;;  %737 = vmatpush1.msra.mxu0 %v6726_v38 }
  0x3d   :  { %367 = vmatprep.subr.mxu1 %v6761_v43  ;;  %738 = vmatprep.subr.mxu0 %v6733_v39 }
  0x3e   :  { %368 = vmatpush1.msra.mxu1 %v6768_v44  ;;  %739 = vmatpush1.msra.mxu0 %v6741_v40 }
  0x3f   :  { %5786 = vmatmul.mubr.msk.f32.vlgmr.msra.gmra.mxu1 %vm87_vm0, %v5777_v45  ;;  %521 = vmatprep.subr.mxu1 %v6506_v1 }
  0x40   :  { %522 = vmatpush1.msra.mxu1 %v6511_v2  ;;  %561 = vmatprep.mubr.f32.mxu1 %v8879_v0 }
  0x41   :  { %523 = vmatprep.subr.mxu1 %v6516_v3  ;;  %740 = vmatprep.subr.mxu0 %v6747_v41 }
  0x42   :  { %524 = vmatpush1.msra.mxu1 %v6522_v4  ;;  %741 = vmatpush1.msra.mxu0 %v6754_v42 }
  0x43   :  { %525 = vmatprep.subr.mxu1 %v6528_v5  ;;  %742 = vmatprep.subr.mxu0 %v6761_v43 }
  0x44   :  { %526 = vmatpush1.msra.mxu1 %v6534_v6  ;;  %743 = vmatpush1.msra.mxu0 %v6768_v44 }
  0x45   :  { %527 = vmatprep.subr.mxu1 %v6540_v7  ;;  %776 = vmatprep.mubr.f32.mxu0 %v8879_v0 }
  0x46   :  { %528 = vmatpush1.msra.mxu1 %v6546_v8  ;;  %919 = vmatprep.subr.mxu0 %v6506_v1 }
  0x47   :  { %5796 = vmatmul.mubr.msk.f32.vlgmr.msra.gmra.mxu1 %vm87_vm0, %v5767_v36  ;;  %663 = vmatprep.subr.mxu1 %v6644_v25  ;;  %v7089_v36 = vld [vmem:[#allocation4 + $0x190] sm:$0xff] }
  0x48   :  { %664 = vmatpush1.msra.mxu1 %v6651_v26  ;;  %703 = vmatprep.mubr.f32.mxu1 %v8879_v0 }
  0x49   :  { %665 = vmatprep.subr.mxu1 %v6658_v27  ;;  %5799 = vmatmul.mubr.msk.f32.vlgmr.msra.gmra.mxu0 %vm87_vm0, %v6695_v33  ;;  %v7079_v33 = vld [vmem:[#allocation4 + $0x1a8] sm:$0xff] }
  0x4a   :  { %666 = vmatpush1.msra.mxu1 %v6671_v29  ;;  %920 = vmatpush1.msra.mxu0 %v6511_v2 }
  0x4b   :  { %667 = vmatprep.subr.mxu1 %v6682_v31  ;;  %921 = vmatprep.subr.mxu0 %v6516_v3 }
  0x4c   :  { %668 = vmatpush1.msra.mxu1 %v6689_v32  ;;  %922 = vmatpush1.msra.mxu0 %v6522_v4 }
  0x4d   :  { %669 = vmatprep.subr.mxu1 %v6701_v34  ;;  %923 = vmatprep.subr.mxu0 %v6528_v5 }
  0x4e   :  { %670 = vmatpush1.msra.mxu1 %v6708_v35  ;;  %924 = vmatpush1.msra.mxu0 %v6534_v6 }
  0x4f   :  { %5798 = vmatmul.mubr.msk.f32.vlgmr.msra.gmra.mxu1 %vm87_vm0, %v5777_v45  ;;  %813 = vmatprep.subr.mxu1 %v6582_v14  ;;  %v7116_v45 = vld [vmem:[#allocation4 + $0x148] sm:$0xff] }
  0x50   :  { %814 = vmatpush1.msra.mxu1 %v6594_v16  ;;  %925 = vmatprep.subr.mxu0 %v6540_v7 }
  0x51   :  { %815 = vmatprep.subr.mxu1 %v6599_v17  ;;  %853 = vmatprep.mubr.f32.mxu1 %v8879_v0 }
  0x52   :  { %816 = vmatpush1.msra.mxu1 %v6611_v19  ;;  %926 = vmatpush1.msra.mxu0 %v6546_v8 }
  0x53   :  { %817 = vmatprep.subr.mxu1 %v6623_v21  ;;  %959 = vmatprep.mubr.f32.mxu0 %v8879_v0 }
  0x54   :  { %818 = vmatpush1.msra.mxu1 %v6635_v23  ;;  %1076 = vmatprep.subr.mxu0 %v6644_v25 }
  0x55   :  { %819 = vmatprep.subr.mxu1 %v6664_v28  ;;  %5813 = vmatmul.mubr.msk.f32.vlgmr.msra.gmra.mxu0 %vm87_vm0, %v6836_v47 }
  0x56   :  { %820 = vmatpush1.msra.mxu1 %v6676_v30  ;;  %1077 = vmatpush1.msra.mxu0 %v6651_v26 }
  0x57   :  { %5801 = vmatmul.mubr.msk.f32.vlgmr.msra.gmra.mxu1 %vm87_vm0, %v5800_v46  ;;  %993 = vmatprep.subr.mxu1 %v6557_v10  ;;  %v7119_v46 = vld [vmem:[#allocation4 + $0x140] sm:$0xff] }
  0x58   :  { %994 = vmatpush1.msra.mxu1 %v6563_v11  ;;  %1078 = vmatprep.subr.mxu0 %v6658_v27 }
  0x59   :  { %995 = vmatprep.subr.mxu1 %v6569_v12  ;;  %1079 = vmatpush1.msra.mxu0 %v6671_v29 }
  0x5a   :  { %996 = vmatpush1.msra.mxu1 %v6577_v13  ;;  %1080 = vmatprep.subr.mxu0 %v6682_v31 }
  0x5b   :  { %997 = vmatprep.subr.mxu1 %v6588_v15  ;;  %1081 = vmatpush1.msra.mxu0 %v6689_v32 }
  0x5c   :  { %998 = vmatpush1.msra.mxu1 %v6605_v18  ;;  %1082 = vmatprep.subr.mxu0 %v6701_v34 }
  0x5d   :  { %999 = vmatprep.subr.mxu1 %v6617_v20  ;;  %1033 = vmatprep.mubr.f32.mxu1 %v8879_v0 }
  0x5e   :  { %1000 = vmatpush1.msra.mxu1 %v6629_v22  ;;  %1083 = vmatpush1.msra.mxu0 %v6708_v35 }
  0x5f   :  { %5814 = vmatmul.mubr.msk.f32.vlgmr.msra.gmra.mxu1 %vm87_vm0, %v5803_v48  ;;  %1116 = vmatprep.mubr.f32.mxu0 %v8879_v0  ;;  %v7125_v48 = vld [vmem:[#allocation4 + $0x130] sm:$0xff] }
  0x60   :  { %1161 = vmatprep.subr.mxu1 %v6718_v37  ;;  %1246 = vmatprep.subr.mxu0 %v6582_v14 }
  0x61   :  { %5823 = vmatmul.mubr.msk.f32.vlgmr.msra.gmra.mxu0 %vm87_vm0, %v1040_v49  ;;  %1162 = vmatpush1.msra.mxu1 %v6726_v38 }
  0x62   :  { %1247 = vmatpush1.msra.mxu0 %v6594_v16  ;;  %1163 = vmatprep.subr.mxu1 %v6733_v39 }
  0x63   :  { %1248 = vmatprep.subr.mxu0 %v6599_v17  ;;  %1164 = vmatpush1.msra.mxu1 %v6741_v40 }
  0x64   :  { %1249 = vmatpush1.msra.mxu0 %v6611_v19  ;;  %1165 = vmatprep.subr.mxu1 %v6747_v41 }
  0x65   :  { %1250 = vmatprep.subr.mxu0 %v6623_v21  ;;  %1166 = vmatpush1.msra.mxu1 %v6754_v42 }
  0x66   :  { %1251 = vmatpush1.msra.mxu0 %v6635_v23  ;;  %1167 = vmatprep.subr.mxu1 %v6761_v43 }
  0x67   :  { %1252 = vmatprep.subr.mxu0 %v6664_v28  ;;  %1168 = vmatpush1.msra.mxu1 %v6768_v44 }
  0x68   :  { %1201 = vmatprep.mubr.f32.mxu1 %v8879_v0  ;;  %1253 = vmatpush1.msra.mxu0 %v6676_v30 }
  0x69   :  { %5833 = vmatmul.mubr.msk.f32.vlgmr.msra.gmra.mxu1 %vm87_vm0, %v5824_v50  ;;  %1286 = vmatprep.mubr.f32.mxu0 %v8879_v0 }
  0x6a   :  { %1320 = vmatprep.subr.mxu1 %v6506_v1  ;;  %1391 = vmatprep.subr.mxu0 %v6557_v10  ;;  %v6984_v1 = vld [vmem:[#allocation4 + $0xa0] sm:$0xff]  ;;  %v7009_v10 = vld [vmem:[#allocation4 + $0x58] sm:$0xff] }
  0x6b   :  { %5843 = vmatmul.mubr.msk.f32.vlgmr.msra.gmra.mxu0 %vm87_vm0, %v5834_v51  ;;  %1321 = vmatpush1.msra.mxu1 %v6511_v2  ;;  %8964 = vst [vmem:[#allocation24_spill] sm:$0xff] %v6984_v1  ;;  %v6986_v2 = vld [vmem:[#allocation4 + $0x98] sm:$0xff]  ;;  %8973 = vst [vmem:[#allocation33_spill] sm:$0xff] %v7009_v10 }
  0x6c   :  { %1392 = vmatpush1.msra.mxu0 %v6563_v11  ;;  %1322 = vmatprep.subr.mxu1 %v6516_v3  ;;  %8965 = vst [vmem:[#allocation25_spill] sm:$0xff] %v6986_v2  ;;  %v6990_v3 = vld [vmem:[#allocation4 + $0x90] sm:$0xff] }
  0x6d   :  { %1393 = vmatprep.subr.mxu0 %v6569_v12  ;;  %1323 = vmatpush1.msra.mxu1 %v6522_v4  ;;  %8966 = vst [vmem:[#allocation26_spill] sm:$0xff] %v6990_v3  ;;  %v6993_v4 = vld [vmem:[#allocation4 + $0x88] sm:$0xff]  ;;  %v7012_v11 = vld [vmem:[#allocation4 + $0x50] sm:$0xff] }
  0x6e   :  { %1394 = vmatpush1.msra.mxu0 %v6577_v13  ;;  %1324 = vmatprep.subr.mxu1 %v6528_v5  ;;  %8967 = vst [vmem:[#allocation27_spill] sm:$0xff] %v6993_v4  ;;  %v6996_v5 = vld [vmem:[#allocation4 + $0x80] sm:$0xff]  ;;  %8974 = vst [vmem:[#allocation34_spill] sm:$0xff] %v7012_v11  ;;  %v7015_v12 = vld [vmem:[#allocation4 + $0x48] sm:$0xff] }
  0x6f   :  { %1395 = vmatprep.subr.mxu0 %v6588_v15  ;;  %1325 = vmatpush1.msra.mxu1 %v6534_v6  ;;  %8968 = vst [vmem:[#allocation28_spill] sm:$0xff] %v6996_v5  ;;  %v6999_v6 = vld [vmem:[#allocation4 + $0x78] sm:$0xff]  ;;  %8975 = vst [vmem:[#allocation35_spill] sm:$0xff] %v7015_v12  ;;  %v7018_v13 = vld [vmem:[#allocation4 + $0x40] sm:$0xff] }
  0x70   :  { %1396 = vmatpush1.msra.mxu0 %v6605_v18  ;;  %1326 = vmatprep.subr.mxu1 %v6540_v7  ;;  %8969 = vst [vmem:[#allocation29_spill] sm:$0xff] %v6999_v6  ;;  %v7001_v7 = vld [vmem:[#allocation4 + $0x70] sm:$0xff]  ;;  %8976 = vst [vmem:[#allocation36_spill] sm:$0xff] %v7018_v13  ;;  %v7033_v18 = vld [vmem:[#allocation4 + $0x18] sm:$0xff] }
  0x71   :  { %1397 = vmatprep.subr.mxu0 %v6617_v20  ;;  %1327 = vmatpush1.msra.mxu1 %v6546_v8  ;;  %8970 = vst [vmem:[#allocation30_spill] sm:$0xff] %v7001_v7  ;;  %v7003_v8 = vld [vmem:[#allocation4 + $0x68] sm:$0xff]  ;;  %v7024_v15 = vld [vmem:[#allocation4 + $0x30] sm:$0xff]  ;;  %8981 = vst [vmem:[#allocation41_spill] sm:$0xff] %v7033_v18 }
  0x72   :  { %1360 = vmatprep.mubr.f32.mxu1 %v8879_v0  ;;  %1398 = vmatpush1.msra.mxu0 %v6629_v22  ;;  %8971 = vst [vmem:[#allocation31_spill] sm:$0xff] %v7003_v8  ;;  %8978 = vst [vmem:[#allocation38_spill] sm:$0xff] %v7024_v15  ;;  %v7039_v20 = vld [vmem:[#allocation4 + $0x8] sm:$0xff]  ;;  %v7047_v22 = vld [vmem:[#allocation4 + $0x1f8] sm:$0xff] }
  0x73   :  { %1431 = vmatprep.mubr.f32.mxu0 %v8879_v0  ;;  %5844 = vmatmul.mubr.msk.f32.vlgmr.msra.gmra.mxu1 %vm87_vm0, %v1040_v49  ;;  %8983 = vst [vmem:[#allocation43_spill] sm:$0xff] %v7039_v20  ;;  %v7128_v49 = vld [vmem:[#allocation4 + $0x128] sm:$0xff] }
  0x74   :  { %5845 = vmatmul.mubr.msk.f32.vlgmr.msra.gmra.mxu0 %vm87_vm0, %v6836_v47  ;;  %1462 = vmatprep.subr.mxu1 %v6644_v25  ;;  %v7055_v25 = vld [vmem:[#allocation4 + $0x1e8] sm:$0xff]  ;;  %v7122_v47 = vld [vmem:[#allocation4 + $0x138] sm:$0xff] }
  0x75   :  { %1535 = vmatprep.subr.mxu0 %v6718_v37  ;;  %1463 = vmatpush1.msra.mxu1 %v6651_v26  ;;  %v7058_v26 = vld [vmem:[#allocation4 + $0x1e0] sm:$0xff]  ;;  %v7092_v37 = vld [vmem:[#allocation4 + $0x188] sm:$0xff] }
  0x76   :  { %1536 = vmatpush1.msra.mxu0 %v6726_v38  ;;  %1464 = vmatprep.subr.mxu1 %v6658_v27  ;;  %v7062_v27 = vld [vmem:[#allocation4 + $0x1d8] sm:$0xff]  ;;  %v7095_v38 = vld [vmem:[#allocation4 + $0x180] sm:$0xff] }
  0x77   :  { %1537 = vmatprep.subr.mxu0 %v6733_v39  ;;  %1465 = vmatpush1.msra.mxu1 %v6671_v29  ;;  %v7068_v29 = vld [vmem:[#allocation4 + $0x1c8] sm:$0xff]  ;;  %v7098_v39 = vld [vmem:[#allocation4 + $0x178] sm:$0xff] }
  0x78   :  { %1538 = vmatpush1.msra.mxu0 %v6741_v40  ;;  %1466 = vmatprep.subr.mxu1 %v6682_v31  ;;  %v7074_v31 = vld [vmem:[#allocation4 + $0x1b8] sm:$0xff]  ;;  %v7101_v40 = vld [vmem:[#allocation4 + $0x170] sm:$0xff] }
  0x79   :  { %1539 = vmatprep.subr.mxu0 %v6747_v41  ;;  %1467 = vmatpush1.msra.mxu1 %v6689_v32  ;;  %v7077_v32 = vld [vmem:[#allocation4 + $0x1b0] sm:$0xff]  ;;  %v7104_v41 = vld [vmem:[#allocation4 + $0x168] sm:$0xff] }
  0x7a   :  { %1502 = vmatprep.mubr.f32.mxu1 %v8879_v0  ;;  %1468 = vmatprep.subr.mxu1 %v6701_v34  ;;  %v7082_v34 = vld [vmem:[#allocation4 + $0x1a0] sm:$0xff] }
  0x7b   :  { %1540 = vmatpush1.msra.mxu0 %v6754_v42  ;;  %1469 = vmatpush1.msra.mxu1 %v6708_v35  ;;  %v7086_v35 = vld [vmem:[#allocation4 + $0x198] sm:$0xff]  ;;  %v7107_v42 = vld [vmem:[#allocation4 + $0x160] sm:$0xff] }
  0x7c   :  { %1541 = vmatprep.subr.mxu0 %v6761_v43  ;;  %5846 = vmatmul.mubr.msk.f32.vlgmr.msra.gmra.mxu1 %vm87_vm0, %v5824_v50  ;;  %v7110_v43 = vld [vmem:[#allocation4 + $0x158] sm:$0xff]  ;;  %v7130_v50 = vld [vmem:[#allocation4 + $0x120] sm:$0xff] }
  0x7d   :  { %1612 = vmatprep.subr.mxu1 %v6582_v14  ;;  %1542 = vmatpush1.msra.mxu0 %v6768_v44  ;;  %v7021_v14 = vld [vmem:[#allocation4 + $0x38] sm:$0xff]  ;;  %v7113_v44 = vld [vmem:[#allocation4 + $0x150] sm:$0xff] }
  0x7e   :  { %1575 = vmatprep.mubr.f32.mxu0 %v8879_v0  ;;  %1613 = vmatpush1.msra.mxu1 %v6594_v16  ;;  %8977 = vst [vmem:[#allocation37_spill] sm:$0xff] %v7021_v14  ;;  %v7027_v16 = vld [vmem:[#allocation4 + $0x28] sm:$0xff] }
  0x7f   :  { %5847 = vmatmul.mubr.msk.f32.vlgmr.msra.gmra.mxu0 %vm87_vm0, %v5834_v51  ;;  %1614 = vmatprep.subr.mxu1 %v6599_v17  ;;  %8979 = vst [vmem:[#allocation39_spill] sm:$0xff] %v7027_v16  ;;  %v7030_v17 = vld [vmem:[#allocation4 + $0x20] sm:$0xff]  ;;  %v7133_v51 = vld [vmem:[#allocation4 + $0x118] sm:$0xff] }
  0x80   :  { %1652 = vmatprep.mubr.f32.mxu1 %v8879_v0  ;;  %1615 = vmatpush1.msra.mxu1 %v6611_v19  ;;  %8980 = vst [vmem:[#allocation40_spill] sm:$0xff] %v7030_v17  ;;  %v7036_v19 = vld [vmem:[#allocation4 + $0x10] sm:$0xff]  ;;  %8986 = vst [vmem:[#allocation46_spill] sm:$0xff] %v7133_v51 }
  0x81   :  { %1805 = vmatprep.mubr.f32.mxu0 %v8879_v0  ;;  %1616 = vmatprep.subr.mxu1 %v6623_v21  ;;  %8982 = vst [vmem:[#allocation42_spill] sm:$0xff] %v7036_v19  ;;  %v7043_v21 = vld [vmem:[#allocation4] sm:$0xff] }
  0x82   :  { %1617 = vmatpush1.msra.mxu1 %v6635_v23  ;;  %8984 = vst [vmem:[#allocation44_spill] sm:$0xff] %v7043_v21  ;;  %v7049_v23 = vld [vmem:[#allocation4 + $0x3f8] sm:$0xff]  ;;  %1741 = vmatprep.subr.mxu0 %v7047_v22 }
  0x83   :  { %1618 = vmatprep.subr.mxu1 %v6664_v28  ;;  %8985 = vst [vmem:[#allocation45_spill] sm:$0xff] %v7049_v23  ;;  %1742 = vmatpush1.msra.mxu0 %v7051_v24  ;;  %v7065_v28 = vld [vmem:[#allocation4 + $0x1d0] sm:$0xff] }
  0x84   :  { %1619 = vmatpush1.msra.mxu1 %v6676_v30  ;;  %1743 = vmatprep.subr.mxu0 %v7055_v25  ;;  %v7071_v30 = vld [vmem:[#allocation4 + $0x1c0] sm:$0xff] }
  0x85   :  { %5849 = vmatmul.mubr.msk.f32.vlgmr.msra.gmra.mxu1 %vm87_vm0, %v5848_v52  ;;  %1812 = vmatprep.subr.mxu1 %v6951_v53  ;;  %v7136_v52 = vld [vmem:[#allocation4 + $0x110] sm:$0xff] }
  0x86   :  { %1876 = vmatprep.mubr.f32.mxu1 %v8879_v0  ;;  %1813 = vmatpush1.msra.mxu1 %v6953_v54  ;;  %8987 = vst [vmem:[#allocation47_spill] sm:$0xff] %v7136_v52  ;;  %v7138_v0 = vld [vmem:[#allocation4 + $0x108] sm:$0xff] }
  0x87   :  { %1814 = vmatprep.subr.mxu1 %v6955_v55  ;;  %1744 = vmatpush1.msra.mxu0 %v7058_v26  ;;  %8988 = vst [vmem:[#allocation48_spill] sm:$0xff] %v7138_v0 }
  0x88   :  { %1815 = vmatpush1.msra.mxu1 %v6960_v56  ;;  %1745 = vmatprep.subr.mxu0 %v7062_v27 }
  0x89   :  { %1816 = vmatprep.subr.mxu1 %v6962_v57  ;;  %1746 = vmatpush1.msra.mxu0 %v7065_v28 }
  0x8a   :  { %1817 = vmatpush1.msra.mxu1 %v6966_v58  ;;  %1747 = vmatprep.subr.mxu0 %v7068_v29 }
  0x8b   :  { %1818 = vmatprep.subr.mxu1 %v6968_v59  ;;  %1748 = vmatpush1.msra.mxu0 %v7071_v30 }
  0x8c   :  { %1819 = vmatpush1.msra.mxu1 %v6972_v60  ;;  %1749 = vmatprep.subr.mxu0 %v7074_v31 }
  0x8d   :  { %1820 = vmatprep.subr.mxu1 %v6974_v61  ;;  %1750 = vmatpush1.msra.mxu0 %v7077_v32 }
  0x8e   :  { %1821 = vmatpush1.msra.mxu1 %v6976_v62  ;;  %1751 = vmatprep.subr.mxu0 %v7079_v33 }
  0x8f   :  { %1822 = vmatprep.subr.mxu1 %v6979_v63  ;;  %1752 = vmatpush1.msra.mxu0 %v7082_v34 }
  0x90   :  { %1823 = vmatpush1.msra.mxu1 %v6984_v1  ;;  %1753 = vmatprep.subr.mxu0 %v7086_v35 }
  0x91   :  { %1824 = vmatprep.subr.mxu1 %v6986_v2  ;;  %1754 = vmatpush1.msra.mxu0 %v7089_v36 }
  0x92   :  { %1825 = vmatpush1.msra.mxu1 %v6990_v3  ;;  %1755 = vmatprep.subr.mxu0 %v7092_v37 }
  0x93   :  { %1826 = vmatprep.subr.mxu1 %v6993_v4  ;;  %1756 = vmatpush1.msra.mxu0 %v7095_v38 }
  0x94   :  { %1827 = vmatpush1.msra.mxu1 %v6996_v5  ;;  %1757 = vmatprep.subr.mxu0 %v7098_v39 }
  0x95   :  { %1828 = vmatprep.subr.mxu1 %v6999_v6  ;;  %1758 = vmatpush1.msra.mxu0 %v7101_v40 }
  0x96   :  { %1829 = vmatpush1.msra.mxu1 %v7001_v7  ;;  %1759 = vmatprep.subr.mxu0 %v7104_v41 }
  0x97   :  { %1830 = vmatprep.subr.mxu1 %v7003_v8  ;;  %1760 = vmatpush1.msra.mxu0 %v7107_v42 }
  0x98   :  { %1831 = vmatpush1.msra.mxu1 %v7006_v9  ;;  %1761 = vmatprep.subr.mxu0 %v7110_v43 }
  0x99   :  { %1832 = vmatprep.subr.mxu1 %v7009_v10  ;;  %1762 = vmatpush1.msra.mxu0 %v7113_v44 }
  0x9a   :  { %1833 = vmatpush1.msra.mxu1 %v7012_v11  ;;  %1763 = vmatprep.subr.mxu0 %v7116_v45 }
  0x9b   :  { %1834 = vmatprep.subr.mxu1 %v7015_v12  ;;  %1764 = vmatpush1.msra.mxu0 %v7119_v46 }
  0x9c   :  { %1835 = vmatpush1.msra.mxu1 %v7018_v13  ;;  %1765 = vmatprep.subr.mxu0 %v7122_v47 }
  0x9d   :  { %1836 = vmatprep.subr.mxu1 %v7021_v14  ;;  %1766 = vmatpush1.msra.mxu0 %v7125_v48 }
  0x9e   :  { %1837 = vmatpush1.msra.mxu1 %v7024_v15  ;;  %1767 = vmatprep.subr.mxu0 %v7128_v49 }
  0x9f   :  { %1838 = vmatprep.subr.mxu1 %v7027_v16  ;;  %1768 = vmatpush1.msra.mxu0 %v7130_v50 }
  0xa0   :  { %1839 = vmatpush1.msra.mxu1 %v7030_v17  ;;  %1769 = vmatprep.subr.mxu0 %v7133_v51 }
  0xa1   :  { %1840 = vmatprep.subr.mxu1 %v7033_v18  ;;  %1770 = vmatpush1.msra.mxu0 %v7136_v52 }
  0xa2   :  { %1841 = vmatpush1.msra.mxu1 %v7036_v19  ;;  %1771 = vmatprep.subr.mxu0 %v7138_v0 }
  0xa3   :  { %1842 = vmatprep.subr.mxu1 %v7039_v20 }
  0xa4   :  { %1843 = vmatpush1.msra.mxu1 %v7043_v21  ;;  %v7144_v21 = vld [vmem:[#allocation4 + $0x2f8] sm:$0xff] }
  0xa5   :  { %2024 = vmatprep.subr.mxu1 %v7049_v23  ;;  %v7141_v23 = vld [vmem:[#allocation4 + $0x100] sm:$0xff]  ;;  %8990 = vst [vmem:[#allocation50_spill] sm:$0xff] %v7144_v21 }
  0xa6   :  { %8989 = vst [vmem:[#allocation49_spill] sm:$0xff] %v7141_v23  ;;  %1772 = vmatpush1.msra.mxu0 %v7141_v23 }
  0xa7   :  { %1917 = vmatprep.subr.mxu0 %v7144_v21 }
  0xe7   :  { %v157_v20 = vpop.f32.mrf.mxu1 }
  0xe9   :  { %v159_v19 = vpop.f32.mrf.mxu1 }
  0xed   :  { %v489_v13 = vpop.f32.mrf.mxu0 }
  0xef   :  { %v231_v18 = vpop.f32.mrf.mxu1  ;;  %v491_v11 = vpop.f32.mrf.mxu0 }
  0xf0   :  { %v232_v2 = vadd.f32 %v231_v18, %v157_v20  ;;  %v7195_v18 = vld [vmem:[#allocation4 + $0x388] sm:$0xff]  ;;  %v7198_v20 = vld [vmem:[#allocation4 + $0x380] sm:$0xff] }
  0xf1   :  { %v233_v17 = vpop.f32.mrf.mxu1  ;;  %9000 = vst [vmem:[#allocation59_spill] sm:$0xff] %v7195_v18  ;;  %9001 = vst [vmem:[#allocation60_spill] sm:$0xff] %v7198_v20 }
  0xf2   :  { %v234_v5 = vadd.f32 %v233_v17, %v159_v19 }
  0xf7   :  { %v316_v16 = vpop.f32.mrf.mxu1 }
  0xf8   :  { %v321_v61 = vadd.f32 %v316_v16, %v232_v2  ;;  %v7169_v2 = vld [vmem:[#allocation4 + $0x3c8] sm:$0xff] }
  0xf9   :  { %v318_v15 = vpop.f32.mrf.mxu1  ;;  %8992 = vst [vmem:[#allocation51_spill] sm:$0xff] %v7169_v2 }
  0xfa   :  { %v634_v9 = vpop.f32.mrf.mxu0  ;;  %v322_v1 = vadd.f32 %v318_v15, %v234_v5  ;;  %v7152_v5 = vld [vmem:[%s8869_s2] ss:$0 sm:$0xff]  ;;  %v7192_v15 = vld [vmem:[#allocation4 + $0x390] sm:$0xff] }
  0xfb   :  { %8999 = vst [vmem:[#allocation58_spill] sm:$0xff] %v7192_v15 }
  0xfc   :  { %v636_v7 = vpop.f32.mrf.mxu0 }
  0xff   :  { %v403_v14 = vpop.f32.mrf.mxu1 }
 0x100   :  { %v408_v56 = vadd.f32 %v403_v14, %v321_v61 }
 0x101   :  { %v405_v12 = vpop.f32.mrf.mxu1 }
 0x102   :  { %v409_v60 = vadd.f32 %v405_v12, %v322_v1  ;;  %v494_v0 = vadd.f32 %v489_v13, %v408_v56  ;;  %v8991_v56 = vmov 0.0   ;;  %v7184_v12 = vld [vmem:[#allocation4 + $0x3a0] sm:$0xff]  ;;  %v7187_v13 = vld [vmem:[#allocation4 + $0x398] sm:$0xff] }
 0x103   :  { %8997 = vst [vmem:[#allocation56_spill] sm:$0xff] %v7184_v12  ;;  %8998 = vst [vmem:[#allocation57_spill] sm:$0xff] %v7187_v13 }
 0x104   :  { %v495_v54 = vadd.f32 %v491_v11, %v409_v60  ;;  %v7155_v60 = vld [vmem:[#allocation4 + $0x3f0] sm:$0xff] }
 0x106   :  { %v496_v19 = vmax.f32 %v494_v0, %v495_v54  ;;  %v7159_v0 = vld [vmem:[#allocation4 + $0x3e0] sm:$0xff] }
 0x107   :  { %v563_v10 = vpop.f32.mrf.mxu1 }
 0x108   :  { %v635_v63 = vadd.f32 %v634_v9, %v563_v10  ;;  %v7181_v10 = vld [vmem:[#allocation4 + $0x3a8] sm:$0xff] }
 0x109   :  { %v565_v8 = vpop.f32.mrf.mxu1  ;;  %v778_v3 = vpop.f32.mrf.mxu0  ;;  %8996 = vst [vmem:[#allocation55_spill] sm:$0xff] %v7181_v10 }
 0x10a   :  { %v637_v62 = vadd.f32 %v636_v7, %v565_v8  ;;  %v7175_v7 = vld [vmem:[#allocation4 + $0x3b8] sm:$0xff]  ;;  %v7178_v8 = vld [vmem:[#allocation4 + $0x3b0] sm:$0xff] }
 0x10b   :  { %v780_v57 = vpop.f32.mrf.mxu0  ;;  %8994 = vst [vmem:[#allocation53_spill] sm:$0xff] %v7175_v7  ;;  %8995 = vst [vmem:[#allocation54_spill] sm:$0xff] %v7178_v8 }
 0x10f   :  { %v705_v6 = vpop.f32.mrf.mxu1 }
 0x110   :  { %v710_v59 = vadd.f32 %v705_v6, %v635_v63 }
 0x111   :  { %v707_v4 = vpop.f32.mrf.mxu1 }
 0x112   :  { %v711_v58 = vadd.f32 %v707_v4, %v637_v62  ;;  %v783_v53 = vadd.f32 %v778_v3, %v710_v59  ;;  %v7166_v59 = vld [vmem:[#allocation4 + $0x3d0] sm:$0xff]  ;;  %v7172_v4 = vld [vmem:[#allocation4 + $0x3c0] sm:$0xff] }
 0x113   :  { %8993 = vst [vmem:[#allocation52_spill] sm:$0xff] %v7172_v4 }
 0x114   :  { %v784_v21 = vadd.f32 %v780_v57, %v711_v58  ;;  %v7157_v58 = vld [vmem:[#allocation4 + $0x3e8] sm:$0xff] }
 0x115   :  { %v961_v61 = vpop.f32.mrf.mxu0 }
 0x117   :  { %v855_v55 = vpop.f32.mrf.mxu1 }
 0x118   :  { %v860_v52 = vadd.f32 %v855_v55, %v783_v53  ;;  %v963_v53 = vpop.f32.mrf.mxu0  ;;  %v7162_v55 = vld [vmem:[#allocation4 + $0x3d8] sm:$0xff] }
 0x119   :  { %v857_v23 = vpop.f32.mrf.mxu1 }
 0x11a   :  { %v861_v17 = vadd.f32 %v857_v23, %v784_v21  ;;  %v7201_v23 = vld [vmem:[#allocation4 + $0x378] sm:$0xff] }
 0x11b   :  { %9002 = vst [vmem:[#allocation61_spill] sm:$0xff] %v7201_v23 }
 0x11c   :  { %v862_v51 = vmax.f32 %v860_v52, %v861_v17  ;;  %v7204_v52 = vld [vmem:[#allocation4 + $0x370] sm:$0xff]  ;;  %v7207_v17 = vld [vmem:[#allocation4 + $0x368] sm:$0xff] }
 0x11d   :  { %9003 = vst [vmem:[#allocation62_spill] sm:$0xff] %v7204_v52  ;;  %9004 = vst [vmem:[#allocation63_spill] sm:$0xff] %v7207_v17 }
 0x11e   :  { %v863_v1 = vmax.f32 %v496_v19, %v862_v51 }
 0x11f   :  { %v1035_v54 = vpop.f32.mrf.mxu1 }
 0x120   :  { %v871_v62 = vadd.f32 %v7152_v5, %v863_v1  ;;  %v7210_v1 = vld [vmem:[#allocation4 + $0x360] sm:$0xff] }
 0x121   :  { %v1118_v3 = vpop.f32.mrf.mxu0  ;;  %v1037_v6 = vpop.f32.mrf.mxu1  ;;  %9005 = vst [vmem:[#allocation64_spill] sm:$0xff] %v7210_v1 }
 0x122   :  { %v872_v63 = vmax.f32 %v871_v62, 0.0 }
 0x123   :  { %v1120_v11 = vpop.f32.mrf.mxu0 }
 0x124   :  { %873 = vst [vmem:[#allocation2] sm:$0x7f] %v872_v63  ;;  %v7213_v63 = vld [vmem:[#allocation4 + $0x358] sm:$0xff] }
 0x125   :  { %9006 = vst [vmem:[#allocation65_spill] sm:$0xff] %v7213_v63 }
 0x129   :  { %v1203_v9 = vpop.f32.mrf.mxu1 }
 0x12b   :  { %v1674_v57 = vld [vmem:[#allocation2] sm:$0x1f]  ;;  %v7189_v14 = vpop.f32.mrf.mxu0  ;;  %v1205_v16 = vpop.f32.mrf.mxu1 }
 0x12c   :  { %1877 = vmatmul.mubr.f32.vlgmr.msra.gmra.mxu1 %v1674_v57  ;;  %v7216_v57 = vld [vmem:[#allocation4 + $0x350] sm:$0xff] }
 0x12d   :  { %2025 = vmatpush1.msra.mxu1 %v7155_v60  ;;  %2088 = vmatprep.mubr.f32.mxu1 %v8991_v56  ;;  %v1290_v51 = vpop.f32.mrf.mxu0  ;;  %9007 = vst [vmem:[#allocation66_spill] sm:$0xff] %v7216_v57 }
 0x12e   :  { %2026 = vmatprep.subr.mxu1 %v7157_v58 }
 0x12f   :  { %2027 = vmatpush1.msra.mxu1 %v7159_v0 }
 0x130   :  { %2028 = vmatprep.subr.mxu1 %v7162_v55 }
 0x131   :  { %2029 = vmatpush1.msra.mxu1 %v7166_v59 }
 0x132   :  { %2030 = vmatprep.subr.mxu1 %v7169_v2 }
 0x133   :  { %2031 = vmatpush1.msra.mxu1 %v7172_v4  ;;  %v1362_v21 = vpop.f32.mrf.mxu1 }
 0x134   :  { %2032 = vmatprep.subr.mxu1 %v7175_v7  ;;  %v1433_v19 = vpop.f32.mrf.mxu0  ;;  %v7231_v7 = vld [vmem:[#allocation4 + $0x328] sm:$0xff] }
 0x135   :  { %2033 = vmatpush1.msra.mxu1 %v7178_v8  ;;  %v1364_v62 = vpop.f32.mrf.mxu1 }
 0x136   :  { %2034 = vmatprep.subr.mxu1 %v7181_v10 }
 0x137   :  { %2035 = vmatpush1.msra.mxu1 %v7184_v12  ;;  %v1036_v12 = vadd.f32 %v1035_v54, %v961_v61  ;;  %v7234_v61 = vld [vmem:[#allocation4 + $0x320] sm:$0xff] }
 0x138   :  { %2036 = vmatprep.subr.mxu1 %v7187_v13  ;;  %v1435_v13 = vpop.f32.mrf.mxu0 }
 0x139   :  { %2037 = vmatpush1.msra.mxu1 %v7192_v15  ;;  %v1436_v8 = vadd.f32 %v1435_v13, %v1364_v62  ;;  %v1123_v54 = vadd.f32 %v1118_v3, %v1036_v12  ;;  %v7246_v3 = vld [vmem:[#allocation4 + $0x300] sm:$0xff] }
 0x13a   :  { %2038 = vmatprep.subr.mxu1 %v7195_v18  ;;  %v1038_v18 = vadd.f32 %v1037_v6, %v963_v53  ;;  %v7228_v53 = vld [vmem:[#allocation4 + $0x330] sm:$0xff] }
 0x13b   :  { %2039 = vmatpush1.msra.mxu1 %v7198_v20  ;;  %v7219_v20 = vld [vmem:[#allocation4 + $0x348] sm:$0xff]  ;;  %v1208_v13 = vadd.f32 %v1203_v9, %v1123_v54 }
 0x13c   :  { %2040 = vmatprep.subr.mxu1 %v7201_v23  ;;  %v1504_v15 = vpop.f32.mrf.mxu1  ;;  %9008 = vst [vmem:[#allocation67_spill] sm:$0xff] %v7219_v20  ;;  %v7222_v23 = vld [vmem:[#allocation4 + $0x340] sm:$0xff]  ;;  %v1124_v6 = vadd.f32 %v1120_v11, %v1038_v18  ;;  %v7240_v11 = vld [vmem:[#allocation4 + $0x310] sm:$0xff]  ;;  %v7243_v18 = vld [vmem:[#allocation4 + $0x308] sm:$0xff] }
 0x13d   :  { %2041 = vmatpush1.msra.mxu1 %v7204_v52  ;;  %v7225_v52 = vld [vmem:[#allocation4 + $0x338] sm:$0xff]  ;;  %v7276_v54 = vld [vmem:[#allocation4 + $0x2c8] sm:$0xff] }
 0x13e   :  { %2042 = vmatprep.subr.mxu1 %v7207_v17  ;;  %v1506_v10 = vpop.f32.mrf.mxu1 }
 0x13f   :  { %2043 = vmatpush1.msra.mxu1 %v7210_v1  ;;  %v1577_v17 = vpop.f32.mrf.mxu0  ;;  %v1434_v1 = vadd.f32 %v1433_v19, %v1362_v21  ;;  %v1510_v4 = vadd.f32 %v1506_v10, %v1436_v8 }
 0x140   :  { %2044 = vmatprep.subr.mxu1 %v7213_v63 }
 0x141   :  { %2045 = vmatpush1.msra.mxu1 %v7216_v57  ;;  %v1209_v57 = vadd.f32 %v1205_v16, %v1124_v6  ;;  %v1509_v63 = vadd.f32 %v1504_v15, %v1434_v1  ;;  %v1579_v2 = vpop.f32.mrf.mxu0  ;;  %v1293_v16 = vadd.f32 %v7189_v14, %v1208_v13  ;;  %v7260_v14 = vld [vmem:[#allocation4 + $0x2e8] sm:$0xff]  ;;  %v7280_v13 = vld [vmem:[#allocation4 + $0x2c0] sm:$0xff] }
 0x142   :  { %2046 = vmatprep.subr.mxu1 %v7219_v20  ;;  %v7237_v20 = vld [vmem:[#allocation4 + $0x318] sm:$0xff]  ;;  %v1583_v12 = vadd.f32 %v1579_v2, %v1510_v4  ;;  %v7254_v2 = vld [vmem:[#allocation4 + $0x2f0] sm:$0xff] }
 0x143   :  { %2047 = vmatpush1.msra.mxu1 %v7222_v23  ;;  %v1294_v8 = vadd.f32 %v1290_v51, %v1209_v57  ;;  %v1582_v10 = vadd.f32 %v1577_v17, %v1509_v63  ;;  %v7272_v57 = vld [vmem:[#allocation4 + $0x2d0] sm:$0xff] }
 0x144   :  { %2048 = vmatprep.subr.mxu1 %v7225_v52 }
 0x145   :  { %2049 = vmatpush1.msra.mxu1 %v7228_v53  ;;  %v1654_v21 = vpop.f32.mrf.mxu1  ;;  %v1295_v1 = vmax.f32 %v1293_v16, %v1294_v8  ;;  %v7382_v8 = vld [vmem:[#allocation4 + $0x4f8] sm:$0xff]  ;;  %v9013_v16 = vld [vmem:[#allocation50_spill] sm:$0xff] }
 0x146   :  { %2050 = vmatprep.subr.mxu1 %v7231_v7  ;;  %v1659_v9 = vadd.f32 %v1654_v21, %v1582_v10  ;;  %v7376_v21 = vld [vmem:[#allocation4 + $0x200] sm:$0xff] }
 0x147   :  { %2051 = vmatpush1.msra.mxu1 %v7234_v61  ;;  %v1656_v15 = vpop.f32.mrf.mxu1  ;;  %v1883_v10 = vld [vmem:[#allocation2 + $0x1] sm:$0x1f] }
 0x148   :  { %2052 = vmatprep.subr.mxu1 %v7237_v20  ;;  %v1660_v19 = vadd.f32 %v1656_v15, %v1583_v12  ;;  %v7388_v12 = vld [vmem:[#allocation4 + $0x4f0] sm:$0xff]  ;;  %v7391_v15 = vld [vmem:[#allocation4 + $0x4e8] sm:$0xff] }
 0x149   :  { %2053 = vmatpush1.msra.mxu1 %v7240_v11 }
 0x14a   :  { %2054 = vmatprep.subr.mxu1 %v7243_v18  ;;  %v1661_v62 = vmax.f32 %v1659_v9, %v1660_v19  ;;  %v7394_v9 = vld [vmem:[#allocation4 + $0x4e0] sm:$0xff]  ;;  %v7398_v19 = vld [vmem:[#allocation4 + $0x4d8] sm:$0xff] }
 0x14b   :  { %2055 = vmatpush1.msra.mxu1 %v7246_v3 }
 0x14c   :  { %2205 = vmatprep.subr.mxu1 %v7047_v22  ;;  %v1662_v6 = vmax.f32 %v1295_v1, %v1661_v62  ;;  %v7264_v22 = vld [vmem:[#allocation4 + $0x2e0] sm:$0xff]  ;;  %v7402_v1 = vld [vmem:[#allocation4 + $0x4d0] sm:$0xff]  ;;  %v7406_v62 = vld [vmem:[#allocation4 + $0x4c8] sm:$0xff] }
 0x14e   :  { %v1670_v51 = vadd.f32 %v7152_v5, %v1662_v6  ;;  %v7268_v5 = vld [vmem:[#allocation4 + $0x2d8] sm:$0xff]  ;;  %v7410_v6 = vld [vmem:[#allocation4 + $0x4c0] sm:$0xff] }
 0x150   :  { %v1671_v17 = vmax.f32 %v1670_v51, 0.0  ;;  %v7414_v51 = vld [vmem:[#allocation4 + $0x4b8] sm:$0xff] }
 0x152   :  { %1673 = vst [vmem:[#allocation2 + $0x8] sm:$0x7f] %v1671_v17  ;;  %v7418_v17 = vld [vmem:[#allocation4 + $0x4b0] sm:$0xff] }
 0x159   :  { %v7256_v4 = vld [vmem:[#allocation2 + $0x8] sm:$0x1f] }
 0x15a   :  { %v7258_v63 = vld [vmem:[#allocation2 + $0x9] sm:$0x1f]  ;;  %1806 = vmatmul.mubr.f32.vlgmr.msra.gmra.mxu0 %v7256_v4 }
 0x15b   :  { %2089 = vmatmul.mubr.f32.vlgmr.msra.gmra.mxu1 %v7258_v63  ;;  %1918 = vmatpush1.msra.mxu0 %v7254_v2 }
 0x15c   :  { %2206 = vmatpush1.msra.mxu1 %v7051_v24  ;;  %1919 = vmatprep.subr.mxu0 %v7260_v14  ;;  %v7284_v24 = vld [vmem:[#allocation4 + $0x2b8] sm:$0xff] }
 0x15d   :  { %2207 = vmatprep.subr.mxu1 %v7055_v25  ;;  %1920 = vmatpush1.msra.mxu0 %v7264_v22  ;;  %v7288_v25 = vld [vmem:[#allocation4 + $0x2b0] sm:$0xff] }
 0x15e   :  { %2208 = vmatpush1.msra.mxu1 %v7058_v26  ;;  %1921 = vmatprep.subr.mxu0 %v7268_v5  ;;  %v7292_v26 = vld [vmem:[#allocation4 + $0x2a8] sm:$0xff] }
 0x15f   :  { %2209 = vmatprep.subr.mxu1 %v7062_v27  ;;  %1922 = vmatpush1.msra.mxu0 %v7272_v57  ;;  %v7296_v27 = vld [vmem:[#allocation4 + $0x2a0] sm:$0xff] }
 0x160   :  { %2210 = vmatpush1.msra.mxu1 %v7065_v28  ;;  %1923 = vmatprep.subr.mxu0 %v7276_v54  ;;  %v7300_v28 = vld [vmem:[#allocation4 + $0x298] sm:$0xff] }
 0x161   :  { %2211 = vmatprep.subr.mxu1 %v7068_v29  ;;  %1924 = vmatpush1.msra.mxu0 %v7280_v13  ;;  %v7304_v29 = vld [vmem:[#allocation4 + $0x290] sm:$0xff] }
 0x162   :  { %2212 = vmatpush1.msra.mxu1 %v7071_v30  ;;  %1925 = vmatprep.subr.mxu0 %v7284_v24  ;;  %v7308_v30 = vld [vmem:[#allocation4 + $0x288] sm:$0xff] }
 0x163   :  { %2213 = vmatprep.subr.mxu1 %v7074_v31  ;;  %1926 = vmatpush1.msra.mxu0 %v7288_v25  ;;  %v7312_v31 = vld [vmem:[#allocation4 + $0x280] sm:$0xff] }
 0x164   :  { %2214 = vmatpush1.msra.mxu1 %v7077_v32  ;;  %1927 = vmatprep.subr.mxu0 %v7292_v26  ;;  %v7316_v32 = vld [vmem:[#allocation4 + $0x278] sm:$0xff] }
 0x165   :  { %2215 = vmatprep.subr.mxu1 %v7079_v33  ;;  %1928 = vmatpush1.msra.mxu0 %v7296_v27  ;;  %v7320_v33 = vld [vmem:[#allocation4 + $0x270] sm:$0xff] }
 0x166   :  { %2216 = vmatpush1.msra.mxu1 %v7082_v34  ;;  %1929 = vmatprep.subr.mxu0 %v7300_v28  ;;  %v7324_v34 = vld [vmem:[#allocation4 + $0x268] sm:$0xff] }
 0x167   :  { %2217 = vmatprep.subr.mxu1 %v7086_v35  ;;  %1930 = vmatpush1.msra.mxu0 %v7304_v29  ;;  %v7328_v35 = vld [vmem:[#allocation4 + $0x260] sm:$0xff] }
 0x168   :  { %2218 = vmatpush1.msra.mxu1 %v7089_v36  ;;  %1931 = vmatprep.subr.mxu0 %v7308_v30  ;;  %v7332_v36 = vld [vmem:[#allocation4 + $0x258] sm:$0xff] }
 0x169   :  { %2219 = vmatprep.subr.mxu1 %v7092_v37  ;;  %1932 = vmatpush1.msra.mxu0 %v7312_v31  ;;  %v7336_v37 = vld [vmem:[#allocation4 + $0x250] sm:$0xff] }
 0x16a   :  { %2220 = vmatpush1.msra.mxu1 %v7095_v38  ;;  %1933 = vmatprep.subr.mxu0 %v7316_v32  ;;  %v7340_v38 = vld [vmem:[#allocation4 + $0x248] sm:$0xff] }
 0x16b   :  { %2221 = vmatprep.subr.mxu1 %v7098_v39  ;;  %1934 = vmatpush1.msra.mxu0 %v7320_v33  ;;  %v7344_v39 = vld [vmem:[#allocation4 + $0x240] sm:$0xff] }
 0x16c   :  { %2222 = vmatpush1.msra.mxu1 %v7101_v40  ;;  %1935 = vmatprep.subr.mxu0 %v7324_v34  ;;  %v7348_v40 = vld [vmem:[#allocation4 + $0x238] sm:$0xff] }
 0x16d   :  { %2223 = vmatprep.subr.mxu1 %v7104_v41  ;;  %1936 = vmatpush1.msra.mxu0 %v7328_v35  ;;  %v7352_v41 = vld [vmem:[#allocation4 + $0x230] sm:$0xff] }
 0x16e   :  { %2224 = vmatpush1.msra.mxu1 %v7107_v42  ;;  %1937 = vmatprep.subr.mxu0 %v7332_v36  ;;  %v7356_v42 = vld [vmem:[#allocation4 + $0x228] sm:$0xff] }
 0x16f   :  { %2225 = vmatprep.subr.mxu1 %v7110_v43  ;;  %1938 = vmatpush1.msra.mxu0 %v7336_v37  ;;  %v7360_v43 = vld [vmem:[#allocation4 + $0x220] sm:$0xff] }
 0x170   :  { %2226 = vmatpush1.msra.mxu1 %v7113_v44  ;;  %1939 = vmatprep.subr.mxu0 %v7340_v38  ;;  %v7364_v44 = vld [vmem:[#allocation4 + $0x218] sm:$0xff] }
 0x171   :  { %2227 = vmatprep.subr.mxu1 %v7116_v45  ;;  %1940 = vmatpush1.msra.mxu0 %v7344_v39  ;;  %v7368_v45 = vld [vmem:[#allocation4 + $0x210] sm:$0xff] }
 0x172   :  { %2228 = vmatpush1.msra.mxu1 %v7119_v46  ;;  %1941 = vmatprep.subr.mxu0 %v7348_v40  ;;  %v7372_v46 = vld [vmem:[#allocation4 + $0x208] sm:$0xff] }
 0x173   :  { %2229 = vmatprep.subr.mxu1 %v7122_v47  ;;  %1942 = vmatpush1.msra.mxu0 %v7352_v41  ;;  %v9009_v47 = vld [vmem:[#allocation46_spill] sm:$0xff] }
 0x174   :  { %2230 = vmatpush1.msra.mxu1 %v7125_v48  ;;  %1943 = vmatprep.subr.mxu0 %v7356_v42  ;;  %v9010_v48 = vld [vmem:[#allocation47_spill] sm:$0xff] }
 0x175   :  { %2231 = vmatprep.subr.mxu1 %v7128_v49  ;;  %1944 = vmatpush1.msra.mxu0 %v7360_v43  ;;  %v9011_v49 = vld [vmem:[#allocation48_spill] sm:$0xff] }
 0x176   :  { %2232 = vmatpush1.msra.mxu1 %v7130_v50  ;;  %1945 = vmatprep.subr.mxu0 %v7364_v44  ;;  %v9012_v50 = vld [vmem:[#allocation49_spill] sm:$0xff] }
 0x177   :  { %2233 = vmatprep.subr.mxu1 %v9009_v47  ;;  %1946 = vmatpush1.msra.mxu0 %v7368_v45  ;;  %v9022_v47 = vld [vmem:[#allocation21_spill] sm:$0xff] }
 0x178   :  { %2234 = vmatpush1.msra.mxu1 %v9010_v48  ;;  %1947 = vmatprep.subr.mxu0 %v7372_v46  ;;  %v9024_v48 = vld [vmem:[#allocation23_spill] sm:$0xff] }
 0x179   :  { %2235 = vmatprep.subr.mxu1 %v9011_v49  ;;  %1948 = vmatpush1.msra.mxu0 %v7376_v21  ;;  %v9025_v49 = vld [vmem:[#allocation24_spill] sm:$0xff] }
 0x17a   :  { %1981 = vmatprep.mubr.f32.mxu0 %v8991_v56  ;;  %2236 = vmatpush1.msra.mxu1 %v9012_v50  ;;  %v9027_v50 = vld [vmem:[#allocation26_spill] sm:$0xff] }
 0x17b   :  { %2269 = vmatprep.mubr.f32.mxu1 %v8991_v56  ;;  %1982 = vmatmul.mubr.f32.vlgmr.msra.gmra.mxu0 %v1883_v10 }
 0x17c   :  { %2131 = vmatprep.subr.mxu0 %v7382_v8  ;;  %2270 = vmatmul.mubr.f32.vlgmr.msra.gmra.mxu1 %v1883_v10  ;;  %v9028_v10 = vld [vmem:[#allocation27_spill] sm:$0xff] }
 0x17d   :  { %2347 = vmatprep.subr.mxu1 %v9013_v16  ;;  %2132 = vmatpush1.msra.mxu0 %v7388_v12  ;;  %v9031_v16 = vld [vmem:[#allocation30_spill] sm:$0xff] }
 0x17e   :  { %2348 = vmatpush1.msra.mxu1 %v7254_v2  ;;  %2133 = vmatprep.subr.mxu0 %v7391_v15  ;;  %v7422_v2 = vld [vmem:[#allocation4 + $0x4a8] sm:$0xff] }
 0x17f   :  { %2349 = vmatprep.subr.mxu1 %v7260_v14  ;;  %2134 = vmatpush1.msra.mxu0 %v7394_v9  ;;  %v7426_v14 = vld [vmem:[#allocation4 + $0x4a0] sm:$0xff] }
 0x180   :  { %2350 = vmatpush1.msra.mxu1 %v7264_v22  ;;  %2135 = vmatprep.subr.mxu0 %v7398_v19  ;;  %v7430_v22 = vld [vmem:[#allocation4 + $0x498] sm:$0xff] }
 0x181   :  { %2351 = vmatprep.subr.mxu1 %v7268_v5  ;;  %2136 = vmatpush1.msra.mxu0 %v7402_v1  ;;  %v7434_v5 = vld [vmem:[#allocation4 + $0x490] sm:$0xff] }
 0x182   :  { %2352 = vmatpush1.msra.mxu1 %v7272_v57  ;;  %2137 = vmatprep.subr.mxu0 %v7406_v62  ;;  %v7438_v57 = vld [vmem:[#allocation4 + $0x488] sm:$0xff] }
 0x183   :  { %2353 = vmatprep.subr.mxu1 %v7276_v54  ;;  %2138 = vmatpush1.msra.mxu0 %v7410_v6  ;;  %v7442_v54 = vld [vmem:[#allocation4 + $0x480] sm:$0xff] }
 0x184   :  { %2354 = vmatpush1.msra.mxu1 %v7280_v13  ;;  %2139 = vmatprep.subr.mxu0 %v7414_v51  ;;  %v7446_v13 = vld [vmem:[#allocation4 + $0x478] sm:$0xff] }
 0x185   :  { %2355 = vmatprep.subr.mxu1 %v7284_v24  ;;  %2140 = vmatpush1.msra.mxu0 %v7418_v17  ;;  %v7450_v24 = vld [vmem:[#allocation4 + $0x470] sm:$0xff] }
 0x186   :  { %2356 = vmatpush1.msra.mxu1 %v7288_v25  ;;  %2141 = vmatprep.subr.mxu0 %v7422_v2  ;;  %v7454_v25 = vld [vmem:[#allocation4 + $0x468] sm:$0xff] }
 0x187   :  { %2357 = vmatprep.subr.mxu1 %v7292_v26  ;;  %2142 = vmatpush1.msra.mxu0 %v7426_v14  ;;  %v7458_v26 = vld [vmem:[#allocation4 + $0x460] sm:$0xff] }
 0x188   :  { %2358 = vmatpush1.msra.mxu1 %v7296_v27  ;;  %2143 = vmatprep.subr.mxu0 %v7430_v22  ;;  %v7462_v27 = vld [vmem:[#allocation4 + $0x458] sm:$0xff] }
 0x189   :  { %2359 = vmatprep.subr.mxu1 %v7300_v28  ;;  %2144 = vmatpush1.msra.mxu0 %v7434_v5  ;;  %v7466_v28 = vld [vmem:[#allocation4 + $0x450] sm:$0xff] }
 0x18a   :  { %2360 = vmatpush1.msra.mxu1 %v7304_v29  ;;  %2145 = vmatprep.subr.mxu0 %v7438_v57  ;;  %v7470_v29 = vld [vmem:[#allocation4 + $0x448] sm:$0xff] }
 0x18b   :  { %2361 = vmatprep.subr.mxu1 %v7308_v30  ;;  %2146 = vmatpush1.msra.mxu0 %v7442_v54  ;;  %v7474_v30 = vld [vmem:[#allocation4 + $0x440] sm:$0xff] }
 0x18c   :  { %2362 = vmatpush1.msra.mxu1 %v7312_v31  ;;  %2147 = vmatprep.subr.mxu0 %v7446_v13  ;;  %v7478_v31 = vld [vmem:[#allocation4 + $0x438] sm:$0xff] }
 0x18d   :  { %2363 = vmatprep.subr.mxu1 %v7316_v32  ;;  %2148 = vmatpush1.msra.mxu0 %v7450_v24  ;;  %v7482_v32 = vld [vmem:[#allocation4 + $0x430] sm:$0xff] }
 0x18e   :  { %2364 = vmatpush1.msra.mxu1 %v7320_v33  ;;  %2149 = vmatprep.subr.mxu0 %v7454_v25  ;;  %v7486_v33 = vld [vmem:[#allocation4 + $0x428] sm:$0xff] }
 0x18f   :  { %2365 = vmatprep.subr.mxu1 %v7324_v34  ;;  %2150 = vmatpush1.msra.mxu0 %v7458_v26  ;;  %v7490_v34 = vld [vmem:[#allocation4 + $0x420] sm:$0xff] }
 0x190   :  { %2366 = vmatpush1.msra.mxu1 %v7328_v35  ;;  %2151 = vmatprep.subr.mxu0 %v7462_v27  ;;  %v7494_v35 = vld [vmem:[#allocation4 + $0x418] sm:$0xff] }
 0x191   :  { %2367 = vmatprep.subr.mxu1 %v7332_v36  ;;  %2152 = vmatpush1.msra.mxu0 %v7466_v28  ;;  %v7498_v36 = vld [vmem:[#allocation4 + $0x410] sm:$0xff] }
 0x192   :  { %2368 = vmatpush1.msra.mxu1 %v7336_v37  ;;  %2153 = vmatprep.subr.mxu0 %v7470_v29  ;;  %v7502_v37 = vld [vmem:[#allocation4 + $0x408] sm:$0xff] }
 0x193   :  { %2369 = vmatprep.subr.mxu1 %v7340_v38  ;;  %2154 = vmatpush1.msra.mxu0 %v7474_v30  ;;  %v7506_v38 = vld [vmem:[#allocation4 + $0x400] sm:$0xff] }
 0x194   :  { %2370 = vmatpush1.msra.mxu1 %v7344_v39  ;;  %2155 = vmatprep.subr.mxu0 %v7478_v31  ;;  %v7516_v39 = vld [vmem:[#allocation2 + $0x2] sm:$0x1f] }
 0x195   :  { %2371 = vmatprep.subr.mxu1 %v7348_v40  ;;  %2156 = vmatpush1.msra.mxu0 %v7482_v32  ;;  %v9014_v40 = vld [vmem:[#allocation13_spill] sm:$0xff] }
 0x196   :  { %2372 = vmatpush1.msra.mxu1 %v7352_v41  ;;  %2157 = vmatprep.subr.mxu0 %v7486_v33  ;;  %v9015_v41 = vld [vmem:[#allocation14_spill] sm:$0xff] }
 0x197   :  { %2373 = vmatprep.subr.mxu1 %v7356_v42  ;;  %2158 = vmatpush1.msra.mxu0 %v7490_v34  ;;  %v9016_v42 = vld [vmem:[#allocation15_spill] sm:$0xff] }
 0x198   :  { %2374 = vmatpush1.msra.mxu1 %v7360_v43  ;;  %2159 = vmatprep.subr.mxu0 %v7494_v35  ;;  %v9017_v43 = vld [vmem:[#allocation16_spill] sm:$0xff] }
 0x199   :  { %2375 = vmatprep.subr.mxu1 %v7364_v44  ;;  %2160 = vmatpush1.msra.mxu0 %v7498_v36  ;;  %v9018_v44 = vld [vmem:[#allocation17_spill] sm:$0xff] }
 0x19a   :  { %2376 = vmatpush1.msra.mxu1 %v7368_v45  ;;  %2161 = vmatprep.subr.mxu0 %v7502_v37  ;;  %v9019_v45 = vld [vmem:[#allocation18_spill] sm:$0xff] }
 0x19b   :  { %2377 = vmatprep.subr.mxu1 %v7372_v46  ;;  %2162 = vmatpush1.msra.mxu0 %v7506_v38  ;;  %v9021_v46 = vld [vmem:[#allocation20_spill] sm:$0xff] }
 0x19c   :  { %2195 = vmatprep.mubr.f32.mxu0 %v8991_v56  ;;  %2378 = vmatpush1.msra.mxu1 %v7376_v21  ;;  %v9023_v21 = vld [vmem:[#allocation22_spill] sm:$0xff] }
 0x19d   :  { %2411 = vmatprep.mubr.f32.mxu1 %v8991_v56  ;;  %2196 = vmatmul.mubr.f32.vlgmr.msra.gmra.mxu0 %v7516_v39 }
 0x19e   :  { %2276 = vmatprep.subr.mxu0 %v9014_v40  ;;  %2412 = vmatmul.mubr.f32.vlgmr.msra.gmra.mxu1 %v7258_v63  ;;  %v9020_v63 = vld [vmem:[#allocation19_spill] sm:$0xff]  ;;  %v9054_v40 = vld [vmem:[#allocation58_spill] sm:$0xff] }
 0x19f   :  { %2494 = vmatprep.subr.mxu1 %v7382_v8  ;;  %2277 = vmatpush1.msra.mxu0 %v9015_v41  ;;  %v9026_v8 = vld [vmem:[#allocation25_spill] sm:$0xff] }
 0x1a0   :  { %2495 = vmatpush1.msra.mxu1 %v7388_v12  ;;  %2278 = vmatprep.subr.mxu0 %v9016_v42  ;;  %v9029_v12 = vld [vmem:[#allocation28_spill] sm:$0xff]  ;;  %v9055_v42 = vld [vmem:[#allocation59_spill] sm:$0xff] }
 0x1a1   :  { %2496 = vmatprep.subr.mxu1 %v7391_v15  ;;  %2279 = vmatpush1.msra.mxu0 %v9017_v43  ;;  %v9030_v15 = vld [vmem:[#allocation29_spill] sm:$0xff]  ;;  %v7681_v43 = vld [vmem:[%s8868_s1 + $0xd8] sm:$0xff] }
 0x1a2   :  { %2497 = vmatpush1.msra.mxu1 %v7394_v9  ;;  %2280 = vmatprep.subr.mxu0 %v9018_v44  ;;  %v9032_v9 = vld [vmem:[#allocation31_spill] sm:$0xff]  ;;  %v7674_v41 = vld [vmem:[%s8868_s1 + $0xe0] sm:$0xff] }
 0x1a3   :  { %2498 = vmatprep.subr.mxu1 %v7398_v19  ;;  %2281 = vmatpush1.msra.mxu0 %v9019_v45  ;;  %v9033_v19 = vld [vmem:[#allocation32_spill] sm:$0xff]  ;;  %v7688_v45 = vld [vmem:[%s8868_s1 + $0xd0] sm:$0xff] }
 0x1a4   :  { %2499 = vmatpush1.msra.mxu1 %v7402_v1  ;;  %2282 = vmatprep.subr.mxu0 %v9020_v63  ;;  %v9034_v1 = vld [vmem:[#allocation33_spill] sm:$0xff]  ;;  %v9056_v44 = vld [vmem:[#allocation60_spill] sm:$0xff] }
 0x1a5   :  { %2500 = vmatprep.subr.mxu1 %v7406_v62  ;;  %2283 = vmatpush1.msra.mxu0 %v9021_v46  ;;  %v9035_v62 = vld [vmem:[#allocation34_spill] sm:$0xff]  ;;  %v9057_v63 = vld [vmem:[#allocation61_spill] sm:$0xff] }
 0x1a6   :  { %2501 = vmatpush1.msra.mxu1 %v7410_v6  ;;  %2284 = vmatprep.subr.mxu0 %v9022_v47  ;;  %v9036_v6 = vld [vmem:[#allocation35_spill] sm:$0xff]  ;;  %v7695_v46 = vld [vmem:[%s8868_s1 + $0xc8] sm:$0xff] }
 0x1a7   :  { %2502 = vmatprep.subr.mxu1 %v7414_v51  ;;  %2285 = vmatpush1.msra.mxu0 %v9023_v21  ;;  %v9037_v51 = vld [vmem:[#allocation36_spill] sm:$0xff]  ;;  %v9058_v47 = vld [vmem:[#allocation62_spill] sm:$0xff] }
 0x1a8   :  { %2503 = vmatpush1.msra.mxu1 %v7418_v17  ;;  %2286 = vmatprep.subr.mxu0 %v9024_v48  ;;  %v9038_v17 = vld [vmem:[#allocation37_spill] sm:$0xff]  ;;  %v9059_v48 = vld [vmem:[#allocation63_spill] sm:$0xff] }
 0x1a9   :  { %2504 = vmatprep.subr.mxu1 %v7422_v2  ;;  %2287 = vmatpush1.msra.mxu0 %v9025_v49  ;;  %v9039_v2 = vld [vmem:[#allocation38_spill] sm:$0xff]  ;;  %v7702_v21 = vld [vmem:[%s8868_s1 + $0xc0] sm:$0xff] }
 0x1aa   :  { %2505 = vmatpush1.msra.mxu1 %v7426_v14  ;;  %2288 = vmatprep.subr.mxu0 %v9026_v8  ;;  %v9040_v14 = vld [vmem:[#allocation39_spill] sm:$0xff]  ;;  %v9060_v49 = vld [vmem:[#allocation64_spill] sm:$0xff]  ;;  %v9061_v8 = vld [vmem:[#allocation65_spill] sm:$0xff] }
 0x1ab   :  { %2506 = vmatprep.subr.mxu1 %v7430_v22  ;;  %2289 = vmatpush1.msra.mxu0 %v9027_v50  ;;  %v9041_v22 = vld [vmem:[#allocation40_spill] sm:$0xff] }
 0x1ac   :  { %2507 = vmatpush1.msra.mxu1 %v7434_v5  ;;  %2290 = vmatprep.subr.mxu0 %v9028_v10  ;;  %v9042_v5 = vld [vmem:[#allocation41_spill] sm:$0xff]  ;;  %v7713_v50 = vld [vmem:[%s8867_s0 + $0x38] sm:$0x7f]  ;;  %v9062_v10 = vld [vmem:[#allocation66_spill] sm:$0xff] }
 0x1ad   :  { %2508 = vmatprep.subr.mxu1 %v7438_v57  ;;  %2291 = vmatpush1.msra.mxu0 %v9029_v12  ;;  %v9043_v57 = vld [vmem:[#allocation42_spill] sm:$0xff]  ;;  %v7719_v12 = vld [vmem:[%s8868_s1 + $0x78] sm:$0xff] }
 0x1ae   :  { %2509 = vmatpush1.msra.mxu1 %v7442_v54  ;;  %2292 = vmatprep.subr.mxu0 %v9030_v15  ;;  %v9044_v54 = vld [vmem:[#allocation43_spill] sm:$0xff] }
 0x1af   :  { %2510 = vmatprep.subr.mxu1 %v7446_v13  ;;  %2293 = vmatpush1.msra.mxu0 %v9031_v16  ;;  %v9045_v13 = vld [vmem:[#allocation44_spill] sm:$0xff]  ;;  %v9063_v15 = vld [vmem:[#allocation67_spill] sm:$0xff] }
 0x1b0   :  { %2511 = vmatpush1.msra.mxu1 %v7450_v24  ;;  %2294 = vmatprep.subr.mxu0 %v9032_v9  ;;  %v9046_v24 = vld [vmem:[#allocation45_spill] sm:$0xff]  ;;  %v7728_v16 = vld [vmem:[%s8868_s1 + $0x70] sm:$0xff] }
 0x1b1   :  { %2512 = vmatprep.subr.mxu1 %v7454_v25  ;;  %2295 = vmatpush1.msra.mxu0 %v9033_v19  ;;  %v2493_v25 = vld [vmem:[#allocation2 + $0xa] sm:$0x1f]  ;;  %v7815_v19 = vld [vmem:[%s8868_s1 + $0xa0] sm:$0xff] }
 0x1b2   :  { %2513 = vmatpush1.msra.mxu1 %v7458_v26  ;;  %2296 = vmatprep.subr.mxu0 %v9034_v1  ;;  %v7591_v26 = vld [vmem:[%s8868_s1 + $0x38] sm:$0xff]  ;;  %v7736_v9 = vld [vmem:[%s8868_s1 + $0x68] sm:$0xff] }
 0x1b3   :  { %2514 = vmatprep.subr.mxu1 %v7462_v27  ;;  %2297 = vmatpush1.msra.mxu0 %v9035_v62  ;;  %v7597_v27 = vld [vmem:[%s8868_s1 + $0x30] sm:$0xff]  ;;  %v7822_v1 = vld [vmem:[%s8868_s1 + $0x98] sm:$0xff] }
 0x1b4   :  { %2515 = vmatpush1.msra.mxu1 %v7466_v28  ;;  %2298 = vmatprep.subr.mxu0 %v9036_v6  ;;  %v9047_v28 = vld [vmem:[#allocation51_spill] sm:$0xff]  ;;  %v7841_v6 = vld [vmem:[%s8868_s1 + $0x88] sm:$0xff] }
 0x1b5   :  { %2516 = vmatprep.subr.mxu1 %v7470_v29  ;;  %2299 = vmatpush1.msra.mxu0 %v9037_v51  ;;  %v9048_v29 = vld [vmem:[#allocation52_spill] sm:$0xff]  ;;  %v7834_v62 = vld [vmem:[%s8868_s1 + $0x90] sm:$0xff] }
 0x1b6   :  { %2517 = vmatpush1.msra.mxu1 %v7474_v30  ;;  %2300 = vmatprep.subr.mxu0 %v9038_v17  ;;  %v9049_v30 = vld [vmem:[#allocation53_spill] sm:$0xff]  ;;  %v7857_v17 = vld [vmem:[%s8868_s1 + $0x138] sm:$0xff] }
 0x1b7   :  { %2518 = vmatprep.subr.mxu1 %v7478_v31  ;;  %2301 = vmatpush1.msra.mxu0 %v9039_v2  ;;  %v9050_v31 = vld [vmem:[#allocation54_spill] sm:$0xff]  ;;  %v7848_v51 = vld [vmem:[%s8868_s1 + $0x80] sm:$0xff] }
 0x1b8   :  { %2519 = vmatpush1.msra.mxu1 %v7482_v32  ;;  %2302 = vmatprep.subr.mxu0 %v9040_v14  ;;  %v5852_v32 = vld [vmem:[%s8867_s0 + $0x8] sm:$0x7f]  ;;  %v7864_v2 = vld [vmem:[%s8868_s1 + $0x130] sm:$0xff] }
 0x1b9   :  { %2520 = vmatprep.subr.mxu1 %v7486_v33  ;;  %2303 = vmatpush1.msra.mxu0 %v9041_v22  ;;  %v9051_v33 = vld [vmem:[#allocation55_spill] sm:$0xff]  ;;  %v7871_v14 = vld [vmem:[%s8868_s1 + $0x128] sm:$0xff]  ;;  %v7880_v22 = vld [vmem:[%s8868_s1 + $0x120] sm:$0xff] }
 0x1ba   :  { %2521 = vmatpush1.msra.mxu1 %v7490_v34  ;;  %2304 = vmatprep.subr.mxu0 %v9042_v5  ;;  %v7653_v34 = vld [vmem:[%s8868_s1 + $0xf8] sm:$0xff] }
 0x1bb   :  { %2522 = vmatprep.subr.mxu1 %v7494_v35  ;;  %2305 = vmatpush1.msra.mxu0 %v9043_v57  ;;  %v9052_v35 = vld [vmem:[#allocation56_spill] sm:$0xff]  ;;  %v7893_v57 = vld [vmem:[%s8868_s1 + $0x110] sm:$0xff] }
 0x1bc   :  { %2523 = vmatpush1.msra.mxu1 %v7498_v36  ;;  %2306 = vmatprep.subr.mxu0 %v9044_v54  ;;  %v7660_v36 = vld [vmem:[%s8868_s1 + $0xf0] sm:$0xff]  ;;  %v7886_v5 = vld [vmem:[%s8868_s1 + $0x118] sm:$0xff]  ;;  %v7900_v54 = vld [vmem:[%s8868_s1 + $0x108] sm:$0xff] }
 0x1bd   :  { %2524 = vmatprep.subr.mxu1 %v7502_v37  ;;  %2307 = vmatpush1.msra.mxu0 %v9045_v13  ;;  %v9053_v37 = vld [vmem:[#allocation57_spill] sm:$0xff] }
 0x1be   :  { %2340 = vmatprep.mubr.f32.mxu0 %v8991_v56  ;;  %2525 = vmatpush1.msra.mxu1 %v7506_v38  ;;  %v7667_v38 = vld [vmem:[%s8868_s1 + $0xe8] sm:$0xff]  ;;  %v7907_v13 = vld [vmem:[%s8868_s1 + $0x100] sm:$0xff] }
 0x1bf   :  { %2558 = vmatprep.mubr.f32.mxu1 %v8991_v56  ;;  %2341 = vmatmul.mubr.f32.vlgmr.msra.gmra.mxu0 %v7256_v4  ;;  %v7604_v4 = vld [vmem:[%s8868_s1 + $0x28] sm:$0xff] }
 0x1c0   :  { %2420 = vmatprep.subr.mxu0 %v9046_v24  ;;  %2559 = vmatmul.mubr.f32.vlgmr.msra.gmra.mxu1 %v2493_v25  ;;  %v5884_v24 = vld [vmem:[%s8867_s0 + $0x9] sm:$0x7f]  ;;  %v5898_v25 = vld [vmem:[%s8867_s0 + $0x19] sm:$0x7f] }
 0x1c1   :  { %2421 = vmatpush1.msra.mxu0 %v7155_v60  ;;  %2484 = vmatprep.mubr.f32.mxu0 %v8991_v56  ;;  %v7611_v60 = vld [vmem:[%s8868_s1 + $0x20] sm:$0xff] }
 0x1c2   :  { %2422 = vmatprep.subr.mxu0 %v7157_v58  ;;  %2700 = vmatprep.subr.mxu1 %v7591_v26  ;;  %v7618_v58 = vld [vmem:[%s8868_s1 + $0x18] sm:$0xff] }
 0x1c3   :  { %2423 = vmatpush1.msra.mxu0 %v7159_v0  ;;  %2701 = vmatpush1.msra.mxu1 %v7597_v27  ;;  %v7625_v0 = vld [vmem:[%s8868_s1 + $0x10] sm:$0xff] }
 0x1c4   :  { %2424 = vmatprep.subr.mxu0 %v7162_v55  ;;  %2702 = vmatprep.subr.mxu1 %v7604_v4  ;;  %v7632_v55 = vld [vmem:[%s8868_s1 + $0x8] sm:$0xff] }
 0x1c5   :  { %2425 = vmatpush1.msra.mxu0 %v7166_v59  ;;  %2703 = vmatpush1.msra.mxu1 %v7611_v60  ;;  %v7639_v59 = vld [vmem:[%s8868_s1] sm:$0xff] }
 0x1c6   :  { %2426 = vmatprep.subr.mxu0 %v9047_v28  ;;  %2704 = vmatprep.subr.mxu1 %v7618_v58  ;;  %v5901_v28 = vld [vmem:[%s8867_s0 + $0x28] sm:$0x7f] }
 0x1c7   :  { %2427 = vmatpush1.msra.mxu0 %v9048_v29  ;;  %2705 = vmatpush1.msra.mxu1 %v7625_v0  ;;  %v5902_v29 = vld [vmem:[%s8867_s0 + $0x38] sm:$0x7f] }
 0x1c8   :  { %2428 = vmatprep.subr.mxu0 %v9049_v30  ;;  %2706 = vmatprep.subr.mxu1 %v7632_v55  ;;  %v5923_v30 = vld [vmem:[%s8867_s0 + $0x19] sm:$0x7f] }
 0x1c9   :  { %2429 = vmatpush1.msra.mxu0 %v9050_v31  ;;  %2707 = vmatpush1.msra.mxu1 %v7639_v59  ;;  %v5913_v31 = vld [vmem:[%s8867_s0 + $0x9] sm:$0x7f] }
 0x1ca   :  { %2430 = vmatprep.subr.mxu0 %v9051_v33  ;;  %2740 = vmatprep.mubr.f32.mxu1 %v8991_v56  ;;  %v4206_v33 = vld [vmem:[#allocation4 + $0xc0] sm:$0xff] }
 0x1cb   :  { %2431 = vmatpush1.msra.mxu0 %v9052_v35  ;;  %5863 = vmatmul.mubr.msk.f32.vlgmr.msra.gmra.mxu1 %vm87_vm0, %v5852_v32  ;;  %v5933_v32 = vld [vmem:[%s8867_s0 + $0x29] sm:$0x7f]  ;;  %v4204_v35 = vld [vmem:[#allocation4 + $0xb0] sm:$0xff] }
 0x1cc   :  { %2432 = vmatprep.subr.mxu0 %v9053_v37  ;;  %2870 = vmatprep.subr.mxu1 %v7653_v34  ;;  %v4202_v37 = vld [vmem:[#allocation4 + $0xa0] sm:$0xff] }
 0x1cd   :  { %2433 = vmatpush1.msra.mxu0 %v9054_v40  ;;  %2871 = vmatpush1.msra.mxu1 %v7660_v36  ;;  %v4200_v40 = vld [vmem:[#allocation4 + $0x90] sm:$0xff] }
 0x1ce   :  { %2434 = vmatprep.subr.mxu0 %v9055_v42  ;;  %2872 = vmatprep.subr.mxu1 %v7667_v38  ;;  %v4198_v42 = vld [vmem:[#allocation4 + $0x80] sm:$0xff] }
 0x1cf   :  { %2435 = vmatpush1.msra.mxu0 %v9056_v44  ;;  %2873 = vmatpush1.msra.mxu1 %v7674_v41  ;;  %v4196_v44 = vld [vmem:[#allocation4 + $0x70] sm:$0xff] }
 0x1d0   :  { %2436 = vmatprep.subr.mxu0 %v9057_v63  ;;  %2874 = vmatprep.subr.mxu1 %v7681_v43  ;;  %v4194_v63 = vld [vmem:[#allocation4 + $0x60] sm:$0xff] }
 0x1d1   :  { %2437 = vmatpush1.msra.mxu0 %v9058_v47  ;;  %2875 = vmatpush1.msra.mxu1 %v7688_v45  ;;  %v4192_v47 = vld [vmem:[#allocation4 + $0x50] sm:$0xff] }
 0x1d2   :  { %2438 = vmatprep.subr.mxu0 %v9059_v48  ;;  %2876 = vmatprep.subr.mxu1 %v7695_v46  ;;  %v4190_v48 = vld [vmem:[#allocation4 + $0x40] sm:$0xff] }
 0x1d3   :  { %2439 = vmatpush1.msra.mxu0 %v9060_v49  ;;  %2877 = vmatpush1.msra.mxu1 %v7702_v21  ;;  %v4189_v49 = vld [vmem:[#allocation4 + $0x38] sm:$0xff] }
 0x1d4   :  { %2440 = vmatprep.subr.mxu0 %v9061_v8  ;;  %2910 = vmatprep.mubr.f32.mxu1 %v8991_v56  ;;  %v4188_v8 = vld [vmem:[#allocation4 + $0x30] sm:$0xff] }
 0x1d5   :  { %2441 = vmatpush1.msra.mxu0 %v9062_v10  ;;  %3029 = vmatprep.subr.mxu1 %v7719_v12  ;;  %v4186_v10 = vld [vmem:[#allocation4 + $0x20] sm:$0xff] }
 0x1d6   :  { %2442 = vmatprep.subr.mxu0 %v9063_v15  ;;  %5883 = vmatmul.mubr.msk.f32.vlgmr.msra.gmra.mxu1 %vm87_vm0, %v7713_v50  ;;  %v4184_v15 = vld [vmem:[#allocation4 + $0x10] sm:$0xff] }
 0x1d7   :  { %2443 = vmatpush1.msra.mxu0 %v7222_v23  ;;  %3030 = vmatpush1.msra.mxu1 %v7728_v16  ;;  %v7743_v23 = vld [vmem:[%s8868_s1 + $0x60] sm:$0xff] }
 0x1d8   :  { %2444 = vmatprep.subr.mxu0 %v7225_v52  ;;  %3031 = vmatprep.subr.mxu1 %v7736_v9  ;;  %v7750_v52 = vld [vmem:[%s8868_s1 + $0x58] sm:$0xff] }
 0x1d9   :  { %2445 = vmatpush1.msra.mxu0 %v7228_v53  ;;  %3032 = vmatpush1.msra.mxu1 %v7743_v23  ;;  %v7757_v53 = vld [vmem:[%s8868_s1 + $0x50] sm:$0xff] }
 0x1da   :  { %2446 = vmatprep.subr.mxu0 %v7231_v7  ;;  %3033 = vmatprep.subr.mxu1 %v7750_v52  ;;  %v7764_v7 = vld [vmem:[%s8868_s1 + $0x48] sm:$0xff] }
 0x1db   :  { %2447 = vmatpush1.msra.mxu0 %v7234_v61  ;;  %3034 = vmatpush1.msra.mxu1 %v7757_v53  ;;  %v7771_v61 = vld [vmem:[%s8868_s1 + $0x40] sm:$0xff] }
 0x1dc   :  { %2448 = vmatprep.subr.mxu0 %v7237_v20  ;;  %3035 = vmatprep.subr.mxu1 %v7764_v7  ;;  %v7785_v20 = vld [vmem:[%s8868_s1 + $0xb8] sm:$0xff] }
 0x1dd   :  { %2449 = vmatpush1.msra.mxu0 %v7240_v11  ;;  %3036 = vmatpush1.msra.mxu1 %v7771_v61  ;;  %v5864_v11 = vld [vmem:[%s8867_s0 + $0x28] sm:$0x7f] }
 0x1de   :  { %2450 = vmatprep.subr.mxu0 %v7243_v18  ;;  %3069 = vmatprep.mubr.f32.mxu1 %v8991_v56  ;;  %v7796_v18 = vld [vmem:[%s8868_s1 + $0xb0] sm:$0xff] }
 0x1df   :  { %2451 = vmatpush1.msra.mxu0 %v7246_v3  ;;  %3171 = vmatprep.subr.mxu1 %v7785_v20  ;;  %v7803_v3 = vld [vmem:[%s8868_s1 + $0xa8] sm:$0xff] }
 0x1e0   :  { %2485 = vmatmul.mubr.f32.vlgmr.msra.gmra.mxu0 %v7516_v39  ;;  %2626 = vmatprep.subr.mxu0 %v7719_v12  ;;  %v7810_v39 = vld [vmem:[%s8867_s0 + $0x18] sm:$0x7f] }
 0x1e1   :  { %2627 = vmatpush1.msra.mxu0 %v7728_v16  ;;  %2666 = vmatprep.mubr.f32.mxu0 %v8991_v56 }
 0x1e2   :  { %2628 = vmatprep.subr.mxu0 %v7736_v9  ;;  %5894 = vmatmul.mubr.msk.f32.vlgmr.msra.gmra.mxu1 %vm87_vm0, %v5864_v11 }
 0x1e3   :  { %2629 = vmatpush1.msra.mxu0 %v7743_v23  ;;  %3172 = vmatpush1.msra.mxu1 %v7796_v18 }
 0x1e4   :  { %2630 = vmatprep.subr.mxu0 %v7750_v52  ;;  %3173 = vmatprep.subr.mxu1 %v7803_v3 }
 0x1e5   :  { %2631 = vmatpush1.msra.mxu0 %v7757_v53  ;;  %3174 = vmatpush1.msra.mxu1 %v7815_v19 }
 0x1e6   :  { %2632 = vmatprep.subr.mxu0 %v7764_v7  ;;  %3175 = vmatprep.subr.mxu1 %v7822_v1 }
 0x1e7   :  { %2633 = vmatpush1.msra.mxu0 %v7771_v61  ;;  %3176 = vmatpush1.msra.mxu1 %v7834_v62 }
 0x1e8   :  { %5862 = vmatmul.mubr.msk.f32.vlgmr.msra.gmra.mxu0 %vm87_vm0, %v7810_v39  ;;  %2784 = vmatprep.subr.mxu0 %v7785_v20 }
 0x1e9   :  { %2785 = vmatpush1.msra.mxu0 %v7796_v18  ;;  %2824 = vmatprep.mubr.f32.mxu0 %v8991_v56 }
 0x1ea   :  { %2786 = vmatprep.subr.mxu0 %v7803_v3  ;;  %3177 = vmatprep.subr.mxu1 %v7841_v6 }
 0x1eb   :  { %2787 = vmatpush1.msra.mxu0 %v7815_v19  ;;  %3178 = vmatpush1.msra.mxu1 %v7848_v51 }
 0x1ec   :  { %2788 = vmatprep.subr.mxu0 %v7822_v1  ;;  %3211 = vmatprep.mubr.f32.mxu1 %v8991_v56 }
 0x1ed   :  { %2789 = vmatpush1.msra.mxu0 %v7834_v62  ;;  %3321 = vmatprep.subr.mxu1 %v7857_v17 }
 0x1ee   :  { %2790 = vmatprep.subr.mxu0 %v7841_v6  ;;  %5896 = vmatmul.mubr.msk.f32.vlgmr.msra.gmra.mxu1 %vm87_vm0, %v7713_v50  ;;  %v4187_v50 = vld [vmem:[#allocation4 + $0x28] sm:$0xff] }
 0x1ef   :  { %2791 = vmatpush1.msra.mxu0 %v7848_v51  ;;  %3322 = vmatpush1.msra.mxu1 %v7864_v2 }
 0x1f0   :  { %5873 = vmatmul.mubr.msk.f32.vlgmr.msra.gmra.mxu0 %vm87_vm0, %v5864_v11  ;;  %2955 = vmatprep.subr.mxu0 %v7857_v17  ;;  %v8082_v11 = vld [vmem:[#allocation4 + $0x1d0] sm:$0xff] }
 0x1f1   :  { %2956 = vmatpush1.msra.mxu0 %v7864_v2  ;;  %2995 = vmatprep.mubr.f32.mxu0 %v8991_v56 }
 0x1f2   :  { %2957 = vmatprep.subr.mxu0 %v7871_v14  ;;  %3323 = vmatprep.subr.mxu1 %v7871_v14 }
 0x1f3   :  { %2958 = vmatpush1.msra.mxu0 %v7880_v22  ;;  %3324 = vmatpush1.msra.mxu1 %v7880_v22 }
 0x1f4   :  { %2959 = vmatprep.subr.mxu0 %v7886_v5  ;;  %3325 = vmatprep.subr.mxu1 %v7886_v5 }
 0x1f5   :  { %2960 = vmatpush1.msra.mxu0 %v7893_v57  ;;  %3326 = vmatpush1.msra.mxu1 %v7893_v57 }
 0x1f6   :  { %2961 = vmatprep.subr.mxu0 %v7900_v54  ;;  %3327 = vmatprep.subr.mxu1 %v7900_v54 }
 0x1f7   :  { %2962 = vmatpush1.msra.mxu0 %v7907_v13  ;;  %3328 = vmatpush1.msra.mxu1 %v7907_v13 }
 0x1f8   :  { %5893 = vmatmul.mubr.msk.f32.vlgmr.msra.gmra.mxu0 %vm87_vm0, %v5884_v24  ;;  %3100 = vmatprep.subr.mxu0 %v7591_v26 }
 0x1f9   :  { %3101 = vmatpush1.msra.mxu0 %v7597_v27  ;;  %3140 = vmatprep.mubr.f32.mxu0 %v8991_v56 }
 0x1fa   :  { %3102 = vmatprep.subr.mxu0 %v7604_v4  ;;  %3361 = vmatprep.mubr.f32.mxu1 %v8991_v56 }
 0x1fb   :  { %3103 = vmatpush1.msra.mxu0 %v7611_v60  ;;  %3501 = vmatprep.subr.mxu1 %v7591_v26 }
 0x1fc   :  { %3104 = vmatprep.subr.mxu0 %v7618_v58  ;;  %5899 = vmatmul.mubr.msk.f32.vlgmr.msra.gmra.mxu1 %vm87_vm0, %v5898_v25  ;;  %v8136_v25 = vld [vmem:[#allocation4 + $0x140] sm:$0xff] }
 0x1fd   :  { %3105 = vmatpush1.msra.mxu0 %v7625_v0  ;;  %3502 = vmatpush1.msra.mxu1 %v7597_v27 }
 0x1fe   :  { %3106 = vmatprep.subr.mxu0 %v7632_v55  ;;  %3503 = vmatprep.subr.mxu1 %v7604_v4 }
 0x1ff   :  { %3107 = vmatpush1.msra.mxu0 %v7639_v59  ;;  %3504 = vmatpush1.msra.mxu1 %v7611_v60 }
 0x200   :  { %5895 = vmatmul.mubr.msk.f32.vlgmr.msra.gmra.mxu0 %vm87_vm0, %v7810_v39  ;;  %3244 = vmatprep.subr.mxu0 %v7653_v34  ;;  %v8090_v39 = vld [vmem:[#allocation4 + $0x1b8] sm:$0xff] }
 0x201   :  { %3245 = vmatpush1.msra.mxu0 %v7660_v36  ;;  %3284 = vmatprep.mubr.f32.mxu0 %v8991_v56 }
 0x202   :  { %3246 = vmatprep.subr.mxu0 %v7667_v38  ;;  %3505 = vmatprep.subr.mxu1 %v7618_v58 }
 0x203   :  { %3247 = vmatpush1.msra.mxu0 %v7674_v41  ;;  %3506 = vmatpush1.msra.mxu1 %v7625_v0 }
 0x204   :  { %3248 = vmatprep.subr.mxu0 %v7681_v43  ;;  %3507 = vmatprep.subr.mxu1 %v7632_v55 }
 0x205   :  { %3249 = vmatpush1.msra.mxu0 %v7688_v45  ;;  %3508 = vmatpush1.msra.mxu1 %v7639_v59 }
 0x206   :  { %3250 = vmatprep.subr.mxu0 %v7695_v46  ;;  %3541 = vmatprep.mubr.f32.mxu1 %v8991_v56 }
 0x207   :  { %3251 = vmatpush1.msra.mxu0 %v7702_v21  ;;  %5912 = vmatmul.mubr.msk.f32.vlgmr.msra.gmra.mxu1 %vm87_vm0, %v5901_v28  ;;  %v8139_v28 = vld [vmem:[#allocation4 + $0x138] sm:$0xff] }
 0x208   :  { %5897 = vmatmul.mubr.msk.f32.vlgmr.msra.gmra.mxu0 %vm87_vm0, %v5884_v24  ;;  %3427 = vmatprep.subr.mxu0 %v7719_v12  ;;  %v8133_v24 = vld [vmem:[#allocation4 + $0x148] sm:$0xff] }
 0x209   :  { %3428 = vmatpush1.msra.mxu0 %v7728_v16  ;;  %3467 = vmatprep.mubr.f32.mxu0 %v8991_v56 }
 0x20a   :  { %3429 = vmatprep.subr.mxu0 %v7736_v9  ;;  %3669 = vmatprep.subr.mxu1 %v7653_v34 }
 0x20b   :  { %3430 = vmatpush1.msra.mxu0 %v7743_v23  ;;  %3670 = vmatpush1.msra.mxu1 %v7660_v36 }
 0x20c   :  { %3431 = vmatprep.subr.mxu0 %v7750_v52  ;;  %3671 = vmatprep.subr.mxu1 %v7667_v38 }
 0x20d   :  { %3432 = vmatpush1.msra.mxu0 %v7757_v53  ;;  %3672 = vmatpush1.msra.mxu1 %v7674_v41 }
 0x20e   :  { %3433 = vmatprep.subr.mxu0 %v7764_v7  ;;  %3673 = vmatprep.subr.mxu1 %v7681_v43 }
 0x20f   :  { %3434 = vmatpush1.msra.mxu0 %v7771_v61  ;;  %3674 = vmatpush1.msra.mxu1 %v7688_v45 }
 0x210   :  { %5911 = vmatmul.mubr.msk.f32.vlgmr.msra.gmra.mxu0 %vm87_vm0, %v5902_v29  ;;  %3584 = vmatprep.subr.mxu0 %v7785_v20 }
 0x211   :  { %3585 = vmatpush1.msra.mxu0 %v7796_v18  ;;  %3675 = vmatprep.subr.mxu1 %v7695_v46 }
 0x212   :  { %3586 = vmatprep.subr.mxu0 %v7803_v3  ;;  %3624 = vmatprep.mubr.f32.mxu0 %v8991_v56 }
 0x213   :  { %3587 = vmatpush1.msra.mxu0 %v7815_v19  ;;  %3676 = vmatpush1.msra.mxu1 %v7702_v21 }
 0x214   :  { %3588 = vmatprep.subr.mxu0 %v7822_v1  ;;  %3709 = vmatprep.mubr.f32.mxu1 %v8991_v56 }
 0x215   :  { %3589 = vmatpush1.msra.mxu0 %v7834_v62  ;;  %3828 = vmatprep.subr.mxu1 %v7719_v12  ;;  %v4185_v12 = vld [vmem:[#allocation4 + $0x18] sm:$0xff] }
 0x216   :  { %3590 = vmatprep.subr.mxu0 %v7841_v6  ;;  %5932 = vmatmul.mubr.msk.f32.vlgmr.msra.gmra.mxu1 %vm87_vm0, %v5923_v30 }
 0x217   :  { %3591 = vmatpush1.msra.mxu0 %v7848_v51  ;;  %3829 = vmatpush1.msra.mxu1 %v7728_v16  ;;  %v4183_v16 = vld [vmem:[#allocation4 + $0x8] sm:$0xff] }
 0x218   :  { %5922 = vmatmul.mubr.msk.f32.vlgmr.msra.gmra.mxu0 %vm87_vm0, %v5913_v31  ;;  %3754 = vmatprep.subr.mxu0 %v7857_v17 }
 0x219   :  { %3755 = vmatpush1.msra.mxu0 %v7864_v2  ;;  %3830 = vmatprep.subr.mxu1 %v7736_v9  ;;  %v4182_v9 = vld [vmem:[#allocation4] sm:$0xff] }
 0x21a   :  { %3756 = vmatprep.subr.mxu0 %v7871_v14  ;;  %3831 = vmatpush1.msra.mxu1 %v7743_v23  ;;  %v8067_v23 = vld [vmem:[#allocation4 + $0x1f8] sm:$0xff] }
 0x21b   :  { %3757 = vmatpush1.msra.mxu0 %v7880_v22  ;;  %3832 = vmatprep.subr.mxu1 %v7750_v52  ;;  %v4527_v52 = vld [vmem:[#allocation4 + $0x3f8] sm:$0xff] }
 0x21c   :  { %3758 = vmatprep.subr.mxu0 %v7886_v5  ;;  %3833 = vmatpush1.msra.mxu1 %v7757_v53  ;;  %v8069_v53 = vld [vmem:[#allocation4 + $0x1f0] sm:$0xff] }
 0x21d   :  { %3759 = vmatpush1.msra.mxu0 %v7893_v57  ;;  %3834 = vmatprep.subr.mxu1 %v7764_v7  ;;  %v8073_v7 = vld [vmem:[#allocation4 + $0x1e8] sm:$0xff] }
 0x21e   :  { %3760 = vmatprep.subr.mxu0 %v7900_v54  ;;  %3794 = vmatprep.mubr.f32.mxu0 %v8991_v56 }
 0x21f   :  { %3761 = vmatpush1.msra.mxu0 %v7907_v13  ;;  %3835 = vmatpush1.msra.mxu1 %v7771_v61  ;;  %v8076_v61 = vld [vmem:[#allocation4 + $0x1e0] sm:$0xff] }
 0x220   :  { %5942 = vmatmul.mubr.msk.f32.vlgmr.msra.gmra.mxu0 %vm87_vm0, %v5933_v32  ;;  %3868 = vmatprep.mubr.f32.mxu1 %v8991_v56 }
 0x221   :  { %3899 = vmatprep.subr.mxu0 %v7591_v26  ;;  %3970 = vmatprep.subr.mxu1 %v7785_v20  ;;  %v5947_v26 = vld [vmem:[%s8867_s0 + $0x39] sm:$0x7f] }
 0x222   :  { %5943 = vmatmul.mubr.msk.f32.vlgmr.msra.gmra.mxu1 %vm87_vm0, %v5913_v31  ;;  %3900 = vmatpush1.msra.mxu0 %v7597_v27  ;;  %v4213_v27 = vld [vmem:[#allocation4 + $0xf8] sm:$0xff]  ;;  %v8145_v31 = vld [vmem:[#allocation4 + $0x128] sm:$0xff] }
 0x223   :  { %3971 = vmatpush1.msra.mxu1 %v7796_v18  ;;  %3901 = vmatprep.subr.mxu0 %v7604_v4  ;;  %v4212_v4 = vld [vmem:[#allocation4 + $0xf0] sm:$0xff]  ;;  %v8078_v20 = vld [vmem:[#allocation4 + $0x1d8] sm:$0xff]  ;;  %v8084_v18 = vld [vmem:[#allocation4 + $0x1c8] sm:$0xff] }
 0x224   :  { %3972 = vmatprep.subr.mxu1 %v7803_v3  ;;  %3902 = vmatpush1.msra.mxu0 %v7611_v60  ;;  %v4211_v60 = vld [vmem:[#allocation4 + $0xe8] sm:$0xff]  ;;  %v8087_v3 = vld [vmem:[#allocation4 + $0x1c0] sm:$0xff] }
 0x225   :  { %3973 = vmatpush1.msra.mxu1 %v7815_v19  ;;  %3903 = vmatprep.subr.mxu0 %v7618_v58  ;;  %v4210_v58 = vld [vmem:[#allocation4 + $0xe0] sm:$0xff]  ;;  %v8092_v19 = vld [vmem:[#allocation4 + $0x1b0] sm:$0xff] }
 0x226   :  { %3974 = vmatprep.subr.mxu1 %v7822_v1  ;;  %3904 = vmatpush1.msra.mxu0 %v7625_v0  ;;  %v4209_v0 = vld [vmem:[#allocation4 + $0xd8] sm:$0xff]  ;;  %v8097_v1 = vld [vmem:[#allocation4 + $0x1a8] sm:$0xff] }
 0x227   :  { %3975 = vmatpush1.msra.mxu1 %v7834_v62  ;;  %3905 = vmatprep.subr.mxu0 %v7632_v55  ;;  %v4208_v55 = vld [vmem:[#allocation4 + $0xd0] sm:$0xff]  ;;  %v8100_v62 = vld [vmem:[#allocation4 + $0x1a0] sm:$0xff] }
 0x228   :  { %3976 = vmatprep.subr.mxu1 %v7841_v6  ;;  %3906 = vmatpush1.msra.mxu0 %v7639_v59  ;;  %v4207_v59 = vld [vmem:[#allocation4 + $0xc8] sm:$0xff]  ;;  %v8103_v6 = vld [vmem:[#allocation4 + $0x198] sm:$0xff] }
 0x229   :  { %3939 = vmatprep.mubr.f32.mxu0 %v8991_v56  ;;  %3977 = vmatpush1.msra.mxu1 %v7848_v51  ;;  %v8106_v51 = vld [vmem:[#allocation4 + $0x190] sm:$0xff] }
 0x22a   :  { %5944 = vmatmul.mubr.msk.f32.vlgmr.msra.gmra.mxu0 %vm87_vm0, %v5902_v29  ;;  %4010 = vmatprep.mubr.f32.mxu1 %v8991_v56  ;;  %v8142_v29 = vld [vmem:[#allocation4 + $0x130] sm:$0xff] }
 0x22b   :  { %4043 = vmatprep.subr.mxu0 %v7653_v34  ;;  %4120 = vmatprep.subr.mxu1 %v7857_v17  ;;  %v4205_v34 = vld [vmem:[#allocation4 + $0xb8] sm:$0xff]  ;;  %v8109_v17 = vld [vmem:[#allocation4 + $0x188] sm:$0xff] }
 0x22c   :  { %5945 = vmatmul.mubr.msk.f32.vlgmr.msra.gmra.mxu1 %vm87_vm0, %v5923_v30  ;;  %4044 = vmatpush1.msra.mxu0 %v7660_v36  ;;  %v4203_v36 = vld [vmem:[#allocation4 + $0xa8] sm:$0xff]  ;;  %v1807_v30 = vpop.f32.mrf.mxu0 }
 0x22d   :  { %4121 = vmatpush1.msra.mxu1 %v7864_v2  ;;  %4045 = vmatprep.subr.mxu0 %v7667_v38  ;;  %v4201_v38 = vld [vmem:[#allocation4 + $0x98] sm:$0xff]  ;;  %v8112_v2 = vld [vmem:[#allocation4 + $0x180] sm:$0xff] }
 0x22e   :  { %4122 = vmatprep.subr.mxu1 %v7871_v14  ;;  %4046 = vmatpush1.msra.mxu0 %v7674_v41  ;;  %v4199_v41 = vld [vmem:[#allocation4 + $0x88] sm:$0xff]  ;;  %v8115_v14 = vld [vmem:[#allocation4 + $0x178] sm:$0xff] }
 0x22f   :  { %4123 = vmatpush1.msra.mxu1 %v7880_v22  ;;  %4047 = vmatprep.subr.mxu0 %v7681_v43  ;;  %v4197_v43 = vld [vmem:[#allocation4 + $0x78] sm:$0xff]  ;;  %v8118_v22 = vld [vmem:[#allocation4 + $0x170] sm:$0xff] }
 0x230   :  { %4124 = vmatprep.subr.mxu1 %v7886_v5  ;;  %4048 = vmatpush1.msra.mxu0 %v7688_v45  ;;  %v4195_v45 = vld [vmem:[#allocation4 + $0x68] sm:$0xff] }
 0x231   :  { %4125 = vmatpush1.msra.mxu1 %v7893_v57  ;;  %4049 = vmatprep.subr.mxu0 %v7695_v46  ;;  %v4193_v46 = vld [vmem:[#allocation4 + $0x58] sm:$0xff]  ;;  %v8121_v5 = vld [vmem:[#allocation4 + $0x168] sm:$0xff]  ;;  %v8124_v57 = vld [vmem:[#allocation4 + $0x160] sm:$0xff] }
 0x232   :  { %4126 = vmatprep.subr.mxu1 %v7900_v54  ;;  %4050 = vmatpush1.msra.mxu0 %v7702_v21  ;;  %v4191_v21 = vld [vmem:[#allocation4 + $0x48] sm:$0xff]  ;;  %v8127_v54 = vld [vmem:[#allocation4 + $0x158] sm:$0xff] }
 0x233   :  { %4083 = vmatprep.mubr.f32.mxu0 %v8991_v56  ;;  %4127 = vmatpush1.msra.mxu1 %v7907_v13  ;;  %v8130_v13 = vld [vmem:[#allocation4 + $0x150] sm:$0xff] }
 0x234   :  { %4160 = vmatprep.mubr.f32.mxu1 %v8991_v56  ;;  %5946 = vmatmul.mubr.msk.f32.vlgmr.msra.gmra.mxu0 %vm87_vm0, %v5933_v32  ;;  %v8147_v32 = vld [vmem:[#allocation4 + $0x120] sm:$0xff] }
 0x235   :  { %5948 = vmatmul.mubr.msk.f32.vlgmr.msra.gmra.mxu1 %vm87_vm0, %v5947_v26  ;;  %4311 = vmatprep.mubr.f32.mxu0 %v8991_v56  ;;  %v8150_v26 = vld [vmem:[#allocation4 + $0x118] sm:$0xff] }
 0x236   :  { %4382 = vmatprep.mubr.f32.mxu1 %v8991_v56  ;;  %4318 = vmatprep.subr.mxu1 %v4213_v27  ;;  %9064 = vst [vmem:[#allocation46_spill] sm:$0xff] %v8150_v26  ;;  %v8153_v27 = vld [vmem:[#allocation4 + $0x110] sm:$0xff] }
 0x237   :  { %4319 = vmatpush1.msra.mxu1 %v4212_v4  ;;  %4247 = vmatprep.subr.mxu0 %v8067_v23  ;;  %9065 = vst [vmem:[#allocation47_spill] sm:$0xff] %v8153_v27  ;;  %v8155_v4 = vld [vmem:[#allocation4 + $0x108] sm:$0xff] }
 0x238   :  { %4320 = vmatprep.subr.mxu1 %v4211_v60  ;;  %4248 = vmatpush1.msra.mxu0 %v8069_v53  ;;  %9066 = vst [vmem:[#allocation48_spill] sm:$0xff] %v8155_v4  ;;  %v8158_v60 = vld [vmem:[#allocation4 + $0x100] sm:$0xff] }
 0x239   :  { %4321 = vmatpush1.msra.mxu1 %v4210_v58  ;;  %4249 = vmatprep.subr.mxu0 %v8073_v7  ;;  %9067 = vst [vmem:[#allocation49_spill] sm:$0xff] %v8158_v60  ;;  %v1878_v58 = vpop.f32.mrf.mxu1 }
 0x23a   :  { %4322 = vmatprep.subr.mxu1 %v4209_v0  ;;  %4250 = vmatpush1.msra.mxu0 %v8076_v61  ;;  %v1809_v0 = vpop.f32.mrf.mxu0 }
 0x23b   :  { %4323 = vmatpush1.msra.mxu1 %v4208_v55  ;;  %4251 = vmatprep.subr.mxu0 %v8078_v20  ;;  %v8161_v55 = vld [vmem:[#allocation4 + $0x2f8] sm:$0xff] }
 0x23c   :  { %4324 = vmatprep.subr.mxu1 %v4207_v59  ;;  %4252 = vmatpush1.msra.mxu0 %v8082_v11  ;;  %9068 = vst [vmem:[#allocation50_spill] sm:$0xff] %v8161_v55  ;;  %v1983_v59 = vpop.f32.mrf.mxu0 }
 0x23d   :  { %4325 = vmatpush1.msra.mxu1 %v4206_v33  ;;  %4253 = vmatprep.subr.mxu0 %v8084_v18  ;;  %v1880_v33 = vpop.f32.mrf.mxu1 }
 0x23e   :  { %4326 = vmatprep.subr.mxu1 %v4205_v34  ;;  %4254 = vmatpush1.msra.mxu0 %v8087_v3 }
 0x23f   :  { %4327 = vmatpush1.msra.mxu1 %v4204_v35  ;;  %4255 = vmatprep.subr.mxu0 %v8090_v39  ;;  %v2090_v34 = vpop.f32.mrf.mxu1  ;;  %v1985_v35 = vpop.f32.mrf.mxu0 }
 0x240   :  { %4328 = vmatprep.subr.mxu1 %v4203_v36  ;;  %4256 = vmatpush1.msra.mxu0 %v8092_v19 }
 0x241   :  { %4329 = vmatpush1.msra.mxu1 %v4202_v37  ;;  %4257 = vmatprep.subr.mxu0 %v8097_v1  ;;  %v2092_v37 = vpop.f32.mrf.mxu1 }
 0x242   :  { %4330 = vmatprep.subr.mxu1 %v4201_v38  ;;  %4258 = vmatpush1.msra.mxu0 %v8100_v62 }
 0x243   :  { %4331 = vmatpush1.msra.mxu1 %v4200_v40  ;;  %4259 = vmatprep.subr.mxu0 %v8103_v6  ;;  %v2271_v38 = vpop.f32.mrf.mxu1 }
 0x244   :  { %4332 = vmatprep.subr.mxu1 %v4199_v41  ;;  %4260 = vmatpush1.msra.mxu0 %v8106_v51 }
 0x245   :  { %4333 = vmatpush1.msra.mxu1 %v4198_v42  ;;  %4261 = vmatprep.subr.mxu0 %v8109_v17  ;;  %v2273_v42 = vpop.f32.mrf.mxu1 }
 0x246   :  { %4334 = vmatprep.subr.mxu1 %v4197_v43  ;;  %4262 = vmatpush1.msra.mxu0 %v8112_v2 }
 0x247   :  { %4335 = vmatpush1.msra.mxu1 %v4196_v44  ;;  %4263 = vmatprep.subr.mxu0 %v8115_v14 }
 0x248   :  { %4336 = vmatprep.subr.mxu1 %v4195_v45  ;;  %4264 = vmatpush1.msra.mxu0 %v8118_v22  ;;  %v1881_v45 = vadd.f32 %v1880_v33, %v1809_v0 }
 0x249   :  { %4337 = vmatpush1.msra.mxu1 %v4194_v63  ;;  %4265 = vmatprep.subr.mxu0 %v8121_v5 }
 0x24a   :  { %4338 = vmatprep.subr.mxu1 %v4193_v46  ;;  %4266 = vmatpush1.msra.mxu0 %v8124_v57  ;;  %v1879_v46 = vadd.f32 %v1878_v58, %v1807_v30  ;;  %v5851_v58 = vld [vmem:[%s8871_s4] ss:$0 sm:$0xff] }
 0x24b   :  { %4339 = vmatpush1.msra.mxu1 %v4192_v47  ;;  %4267 = vmatprep.subr.mxu0 %v8127_v54  ;;  %v1989_v47 = vadd.f32 %v1985_v35, %v1881_v45 }
 0x24c   :  { %4340 = vmatprep.subr.mxu1 %v4191_v21  ;;  %4268 = vmatpush1.msra.mxu0 %v8130_v13 }
 0x24d   :  { %4341 = vmatpush1.msra.mxu1 %v4190_v48  ;;  %4269 = vmatprep.subr.mxu0 %v8133_v24 }
 0x24e   :  { %4342 = vmatprep.subr.mxu1 %v4189_v49  ;;  %4270 = vmatpush1.msra.mxu0 %v8136_v25  ;;  %v1988_v49 = vadd.f32 %v1983_v59, %v1879_v46 }
 0x24f   :  { %4343 = vmatpush1.msra.mxu1 %v4188_v8  ;;  %4271 = vmatprep.subr.mxu0 %v8139_v28 }
 0x250   :  { %4344 = vmatprep.subr.mxu1 %v4187_v50  ;;  %4272 = vmatpush1.msra.mxu0 %v8142_v29 }
 0x251   :  { %4345 = vmatpush1.msra.mxu1 %v4186_v10  ;;  %4273 = vmatprep.subr.mxu0 %v8145_v31 }
 0x252   :  { %4346 = vmatprep.subr.mxu1 %v4185_v12  ;;  %4274 = vmatpush1.msra.mxu0 %v8147_v32  ;;  %v2096_v12 = vadd.f32 %v2092_v37, %v1989_v47 }
 0x253   :  { %4347 = vmatpush1.msra.mxu1 %v4184_v15  ;;  %4275 = vmatprep.subr.mxu0 %v8150_v26 }
 0x254   :  { %4348 = vmatprep.subr.mxu1 %v4183_v16  ;;  %4276 = vmatpush1.msra.mxu0 %v8153_v27 }
 0x255   :  { %4349 = vmatpush1.msra.mxu1 %v4182_v9  ;;  %4277 = vmatprep.subr.mxu0 %v8155_v4 }
 0x256   :  { %4528 = vmatprep.subr.mxu1 %v4527_v52  ;;  %4278 = vmatpush1.msra.mxu0 %v8158_v60  ;;  %v2095_v52 = vadd.f32 %v2090_v34, %v1988_v49 }
 0x257   :  { %4422 = vmatprep.subr.mxu0 %v8161_v55 }
 0x25d   :  { %v2197_v36 = vpop.f32.mrf.mxu0 }
 0x25e   :  { %v2413_v43 = vpop.f32.mrf.mxu1  ;;  %v2202_v27 = vadd.f32 %v2197_v36, %v2095_v52 }
 0x25f   :  { %v2199_v40 = vpop.f32.mrf.mxu0 }
 0x260   :  { %v2415_v48 = vpop.f32.mrf.mxu1  ;;  %v2203_v55 = vadd.f32 %v2199_v40, %v2096_v12 }
 0x262   :  { %v2204_v33 = vmax.f32 %v2202_v27, %v2203_v55 }
 0x27f   :  { %v2342_v41 = vpop.f32.mrf.mxu0 }
 0x280   :  { %v2343_v63 = vadd.f32 %v2342_v41, %v2271_v38  ;;  %v2560_v50 = vpop.f32.mrf.mxu1 }
 0x281   :  { %v2344_v44 = vpop.f32.mrf.mxu0 }
 0x282   :  { %v2345_v21 = vadd.f32 %v2344_v44, %v2273_v42  ;;  %v2418_v8 = vadd.f32 %v2413_v43, %v2343_v63  ;;  %v2562_v4 = vpop.f32.mrf.mxu1 }
 0x284   :  { %v2419_v16 = vadd.f32 %v2415_v48, %v2345_v21 }
 0x28b   :  { %v2742_v41 = vpop.f32.mrf.mxu1 }
 0x28d   :  { %v2744_v34 = vpop.f32.mrf.mxu1 }
 0x296   :  { %v2912_v43 = vpop.f32.mrf.mxu1 }
 0x298   :  { %v2914_v36 = vpop.f32.mrf.mxu1 }
 0x2a0   :  { %v2486_v10 = vpop.f32.mrf.mxu0 }
 0x2a1   :  { %v2491_v15 = vadd.f32 %v2486_v10, %v2418_v8 }
 0x2a2   :  { %v2488_v9 = vpop.f32.mrf.mxu0 }
 0x2a3   :  { %v2492_v60 = vadd.f32 %v2488_v9, %v2419_v16  ;;  %v2565_v26 = vadd.f32 %v2560_v50, %v2491_v15 }
 0x2a5   :  { %v2566_v0 = vadd.f32 %v2562_v4, %v2492_v60  ;;  %v3071_v4 = vpop.f32.mrf.mxu1 }
 0x2a7   :  { %v2567_v30 = vmax.f32 %v2565_v26, %v2566_v0  ;;  %v3073_v26 = vpop.f32.mrf.mxu1 }
 0x2a8   :  { %v2668_v37 = vpop.f32.mrf.mxu0 }
 0x2a9   :  { %v2568_v59 = vmax.f32 %v2204_v33, %v2567_v30  ;;  %v2743_v48 = vadd.f32 %v2742_v41, %v2668_v37  ;;  %v8172_v37 = vld [vmem:[%s8869_s2] ss:$0 sm:$0xff] }
 0x2aa   :  { %v2670_v42 = vpop.f32.mrf.mxu0 }
 0x2ab   :  { %v2576_v35 = vadd.f32 %v5851_v58, %v2568_v59  ;;  %v2745_v46 = vadd.f32 %v2744_v34, %v2670_v42 }
 0x2ad   :  { %v2577_v38 = vmax.f32 %v2576_v35, 0.0 }
 0x2ae   :  { %v3213_v55 = vpop.f32.mrf.mxu1 }
 0x2af   :  { %2578 = vst [vmem:[#allocation3] sm:$0x1f] %v2577_v38 }
 0x2b0   :  { %v2826_v40 = vpop.f32.mrf.mxu0  ;;  %v3215_v21 = vpop.f32.mrf.mxu1 }
 0x2b1   :  { %v2831_v10 = vadd.f32 %v2826_v40, %v2743_v48  ;;  %v8189_v48 = vld [vmem:[#allocation4 + $0x3c8] sm:$0xff] }
 0x2b2   :  { %v2828_v44 = vpop.f32.mrf.mxu0 }
 0x2b3   :  { %v2832_v49 = vadd.f32 %v2828_v44, %v2745_v46  ;;  %v2917_v30 = vadd.f32 %v2912_v43, %v2831_v10  ;;  %v8182_v46 = vld [vmem:[#allocation4 + $0x3d8] sm:$0xff] }
 0x2b4   :  { %v8197_v10 = vld [vmem:[#allocation4 + $0x3b8] sm:$0xff] }
 0x2b5   :  { %v2918_v16 = vadd.f32 %v2914_v36, %v2832_v49  ;;  %9069 = vst [vmem:[#allocation13_spill] sm:$0xff] %v8197_v10 }
 0x2b8   :  { %v2997_v45 = vpop.f32.mrf.mxu0 }
 0x2b9   :  { %v3002_v35 = vadd.f32 %v2997_v45, %v2917_v30 }
 0x2ba   :  { %v2999_v27 = vpop.f32.mrf.mxu0 }
 0x2bb   :  { %v3003_v58 = vadd.f32 %v2999_v27, %v2918_v16  ;;  %v8175_v27 = vld [vmem:[#allocation4 + $0x3f0] sm:$0xff]  ;;  %v8205_v16 = vld [vmem:[#allocation4 + $0x3a8] sm:$0xff] }
 0x2bc   :  { %v3363_v50 = vpop.f32.mrf.mxu1  ;;  %9071 = vst [vmem:[#allocation15_spill] sm:$0xff] %v8205_v16 }
 0x2bd   :  { %v3004_v34 = vmax.f32 %v3002_v35, %v3003_v58  ;;  %v8214_v58 = vld [vmem:[#allocation4 + $0x390] sm:$0xff] }
 0x2be   :  { %v3365_v33 = vpop.f32.mrf.mxu1  ;;  %9074 = vst [vmem:[#allocation18_spill] sm:$0xff] %v8214_v58 }
 0x2c0   :  { %v3142_v60 = vpop.f32.mrf.mxu0 }
 0x2c1   :  { %v3143_v47 = vadd.f32 %v3142_v60, %v3071_v4  ;;  %v8177_v60 = vld [vmem:[#allocation4 + $0x3e8] sm:$0xff] }
 0x2c2   :  { %v3144_v63 = vpop.f32.mrf.mxu0 }
 0x2c3   :  { %v3145_v8 = vadd.f32 %v3144_v63, %v3073_v26  ;;  %v3218_v12 = vadd.f32 %v3213_v55, %v3143_v47  ;;  %v8179_v63 = vld [vmem:[#allocation4 + $0x3e0] sm:$0xff] }
 0x2c5   :  { %v3219_v9 = vadd.f32 %v3215_v21, %v3145_v8  ;;  %v8186_v21 = vld [vmem:[#allocation4 + $0x3d0] sm:$0xff] }
 0x2c7   :  { %v3543_v26 = vpop.f32.mrf.mxu1 }
 0x2c8   :  { %v3286_v15 = vpop.f32.mrf.mxu0 }
 0x2c9   :  { %v3291_v52 = vadd.f32 %v3286_v15, %v3218_v12  ;;  %v3545_v47 = vpop.f32.mrf.mxu1  ;;  %v8202_v15 = vld [vmem:[#allocation4 + $0x3b0] sm:$0xff] }
 0x2ca   :  { %v3288_v0 = vpop.f32.mrf.mxu0  ;;  %9070 = vst [vmem:[#allocation14_spill] sm:$0xff] %v8202_v15 }
 0x2cb   :  { %v3292_v59 = vadd.f32 %v3288_v0, %v3219_v9  ;;  %v3368_v38 = vadd.f32 %v3363_v50, %v3291_v52  ;;  %v8194_v50 = vld [vmem:[#allocation4 + $0x3c0] sm:$0xff]  ;;  %v8211_v0 = vld [vmem:[#allocation4 + $0x398] sm:$0xff] }
 0x2cc   :  { %v8208_v52 = vld [vmem:[#allocation4 + $0x3a0] sm:$0xff]  ;;  %9073 = vst [vmem:[#allocation17_spill] sm:$0xff] %v8211_v0 }
 0x2cd   :  { %v3369_v42 = vadd.f32 %v3365_v33, %v3292_v59  ;;  %9072 = vst [vmem:[#allocation16_spill] sm:$0xff] %v8208_v52  ;;  %v8217_v59 = vld [vmem:[#allocation4 + $0x388] sm:$0xff] }
 0x2ce   :  { %9075 = vst [vmem:[#allocation19_spill] sm:$0xff] %v8217_v59 }
 0x2cf   :  { %v3370_v4 = vmax.f32 %v3368_v38, %v3369_v42  ;;  %v8220_v38 = vld [vmem:[#allocation4 + $0x380] sm:$0xff]  ;;  %v8223_v42 = vld [vmem:[#allocation4 + $0x378] sm:$0xff] }
 0x2d0   :  { %v3469_v36 = vpop.f32.mrf.mxu0  ;;  %9076 = vst [vmem:[#allocation20_spill] sm:$0xff] %v8220_v38  ;;  %9077 = vst [vmem:[#allocation21_spill] sm:$0xff] %v8223_v42 }
 0x2d1   :  { %v3371_v41 = vmax.f32 %v3004_v34, %v3370_v4  ;;  %v8226_v4 = vld [vmem:[#allocation4 + $0x370] sm:$0xff] }
 0x2d2   :  { %v3471_v43 = vpop.f32.mrf.mxu0  ;;  %9078 = vst [vmem:[#allocation22_spill] sm:$0xff] %v8226_v4 }
 0x2d3   :  { %v3379_v40 = vadd.f32 %v8172_v37, %v3371_v41  ;;  %v8229_v41 = vld [vmem:[#allocation4 + $0x368] sm:$0xff] }
 0x2d4   :  { %9079 = vst [vmem:[#allocation23_spill] sm:$0xff] %v8229_v41 }
 0x2d5   :  { %v3380_v44 = vmax.f32 %v3379_v40, 0.0 }
 0x2d6   :  { %v8191_v49 = vpop.f32.mrf.mxu1 }
 0x2d7   :  { %3381 = vst [vmem:[#allocation2] sm:$0x7f] %v3380_v44 }
 0x2d8   :  { %v3626_v55 = vpop.f32.mrf.mxu0  ;;  %v3713_v9 = vpop.f32.mrf.mxu1 }
 0x2da   :  { %v3628_v8 = vpop.f32.mrf.mxu0 }
 0x2de   :  { %v4181_v45 = vld [vmem:[#allocation2] sm:$0x1f] }
 0x2df   :  { %4383 = vmatmul.mubr.f32.vlgmr.msra.gmra.mxu1 %v4181_v45  ;;  %v8232_v45 = vld [vmem:[#allocation4 + $0x360] sm:$0xff] }
 0x2e0   :  { %4529 = vmatpush1.msra.mxu1 %v8175_v27  ;;  %4592 = vmatprep.mubr.f32.mxu1 %v8991_v56  ;;  %v8199_v12 = vpop.f32.mrf.mxu0 }
 0x2e1   :  { %4530 = vmatprep.subr.mxu1 %v8177_v60 }
 0x2e2   :  { %4531 = vmatpush1.msra.mxu1 %v8179_v63  ;;  %v3870_v33 = vpop.f32.mrf.mxu1  ;;  %v3798_v30 = vpop.f32.mrf.mxu0 }
 0x2e3   :  { %4532 = vmatprep.subr.mxu1 %v8182_v46 }
 0x2e4   :  { %4533 = vmatpush1.msra.mxu1 %v8186_v21  ;;  %v3872_v34 = vpop.f32.mrf.mxu1 }
 0x2e5   :  { %4534 = vmatprep.subr.mxu1 %v8189_v48 }
 0x2e6   :  { %4535 = vmatpush1.msra.mxu1 %v8194_v50 }
 0x2e7   :  { %4536 = vmatprep.subr.mxu1 %v8197_v10  ;;  %v8241_v10 = vld [vmem:[#allocation4 + $0x348] sm:$0xff] }
 0x2e8   :  { %4537 = vmatpush1.msra.mxu1 %v8202_v15  ;;  %9080 = vst [vmem:[#allocation24_spill] sm:$0xff] %v8241_v10 }
 0x2e9   :  { %4538 = vmatprep.subr.mxu1 %v8205_v16  ;;  %v3544_v16 = vadd.f32 %v3543_v26, %v3469_v36  ;;  %v8250_v36 = vld [vmem:[#allocation4 + $0x330] sm:$0xff] }
 0x2ea   :  { %4539 = vmatpush1.msra.mxu1 %v8208_v52  ;;  %v3941_v35 = vpop.f32.mrf.mxu0 }
 0x2eb   :  { %4540 = vmatprep.subr.mxu1 %v8211_v0  ;;  %v3546_v0 = vadd.f32 %v3545_v47, %v3471_v43  ;;  %v3942_v52 = vadd.f32 %v3941_v35, %v3870_v33  ;;  %v8244_v43 = vld [vmem:[#allocation4 + $0x340] sm:$0xff]  ;;  %v3631_v47 = vadd.f32 %v3626_v55, %v3544_v16  ;;  %v8247_v35 = vld [vmem:[#allocation4 + $0x338] sm:$0xff] }
 0x2ec   :  { %4541 = vmatpush1.msra.mxu1 %v8214_v58  ;;  %v4012_v40 = vpop.f32.mrf.mxu1  ;;  %v3943_v44 = vpop.f32.mrf.mxu0  ;;  %v8235_v58 = vld [vmem:[#allocation4 + $0x358] sm:$0xff]  ;;  %v8256_v55 = vld [vmem:[#allocation4 + $0x320] sm:$0xff] }
 0x2ed   :  { %4542 = vmatprep.subr.mxu1 %v8217_v59  ;;  %v8238_v59 = vld [vmem:[#allocation4 + $0x350] sm:$0xff]  ;;  %v3944_v15 = vadd.f32 %v3943_v44, %v3872_v34  ;;  %v4017_v33 = vadd.f32 %v4012_v40, %v3942_v52  ;;  %v8253_v34 = vld [vmem:[#allocation4 + $0x328] sm:$0xff]  ;;  %v3716_v16 = vadd.f32 %v8191_v49, %v3631_v47  ;;  %v8270_v49 = vld [vmem:[#allocation4 + $0x300] sm:$0xff] }
 0x2ee   :  { %4543 = vmatpush1.msra.mxu1 %v8220_v38  ;;  %v3632_v38 = vadd.f32 %v3628_v8, %v3546_v0 }
 0x2ef   :  { %4544 = vmatprep.subr.mxu1 %v8223_v42  ;;  %v4014_v42 = vpop.f32.mrf.mxu1 }
 0x2f0   :  { %4545 = vmatpush1.msra.mxu1 %v8226_v4  ;;  %v3717_v26 = vadd.f32 %v3713_v9, %v3632_v38  ;;  %v4018_v8 = vadd.f32 %v4014_v42, %v3944_v15  ;;  %v8263_v15 = vld [vmem:[#allocation4 + $0x310] sm:$0xff]  ;;  %v3801_v38 = vadd.f32 %v8199_v12, %v3716_v16  ;;  %v8283_v16 = vld [vmem:[#allocation4 + $0x2e8] sm:$0xff] }
 0x2f1   :  { %4546 = vmatprep.subr.mxu1 %v8229_v41 }
 0x2f2   :  { %4547 = vmatpush1.msra.mxu1 %v8232_v45  ;;  %v3802_v52 = vadd.f32 %v3798_v30, %v3717_v26 }
 0x2f3   :  { %4548 = vmatprep.subr.mxu1 %v8235_v58 }
 0x2f4   :  { %4549 = vmatpush1.msra.mxu1 %v8238_v59  ;;  %v4085_v41 = vpop.f32.mrf.mxu0  ;;  %v3803_v30 = vmax.f32 %v3801_v38, %v3802_v52  ;;  %v8287_v52 = vld [vmem:[#allocation4 + $0x2e0] sm:$0xff] }
 0x2f5   :  { %v4162_v4 = vpop.f32.mrf.mxu1  ;;  %4550 = vmatprep.subr.mxu1 %v8241_v10  ;;  %v4090_v0 = vadd.f32 %v4085_v41, %v4017_v33  ;;  %v8260_v10 = vld [vmem:[#allocation4 + $0x318] sm:$0xff]  ;;  %v8267_v33 = vld [vmem:[#allocation4 + $0x308] sm:$0xff]  ;;  %v8399_v38 = vld [vmem:[#allocation4 + $0x200] sm:$0xff] }
 0x2f6   :  { %4551 = vmatpush1.msra.mxu1 %v8244_v43  ;;  %v4087_v44 = vpop.f32.mrf.mxu0 }
 0x2f7   :  { %4552 = vmatprep.subr.mxu1 %v8247_v35  ;;  %v4091_v40 = vadd.f32 %v4087_v44, %v4018_v8  ;;  %v4164_v9 = vpop.f32.mrf.mxu1  ;;  %v4167_v42 = vadd.f32 %v4162_v4, %v4090_v0  ;;  %v8277_v8 = vld [vmem:[#allocation4 + $0x2f0] sm:$0xff] }
 0x2f8   :  { %4553 = vmatpush1.msra.mxu1 %v8250_v36 }
 0x2f9   :  { %4554 = vmatprep.subr.mxu1 %v8253_v34  ;;  %v4168_v41 = vadd.f32 %v4164_v9, %v4091_v40  ;;  %v8299_v40 = vld [vmem:[#allocation4 + $0x2c8] sm:$0xff]  ;;  %v8303_v9 = vld [vmem:[#allocation4 + $0x2c0] sm:$0xff] }
 0x2fa   :  { %4555 = vmatpush1.msra.mxu1 %v8256_v55 }
 0x2fb   :  { %4556 = vmatprep.subr.mxu1 %v8260_v10  ;;  %v4169_v47 = vmax.f32 %v4167_v42, %v4168_v41  ;;  %v8405_v42 = vld [vmem:[#allocation4 + $0x4f8] sm:$0xff]  ;;  %v4389_v41 = vld [vmem:[#allocation2 + $0x1] sm:$0x1f] }
 0x2fc   :  { %4557 = vmatpush1.msra.mxu1 %v8263_v15 }
 0x2fd   :  { %4558 = vmatprep.subr.mxu1 %v8267_v33  ;;  %v4170_v26 = vmax.f32 %v3803_v30, %v4169_v47  ;;  %v8411_v30 = vld [vmem:[#allocation4 + $0x4f0] sm:$0xff]  ;;  %v8414_v47 = vld [vmem:[#allocation4 + $0x4e8] sm:$0xff] }
 0x2fe   :  { %4559 = vmatpush1.msra.mxu1 %v8270_v49 }
 0x2ff   :  { %4708 = vmatprep.subr.mxu1 %v8067_v23  ;;  %v4178_v12 = vadd.f32 %v8172_v37, %v4170_v26  ;;  %v8291_v23 = vld [vmem:[#allocation4 + $0x2d8] sm:$0xff]  ;;  %v8295_v37 = vld [vmem:[#allocation4 + $0x2d0] sm:$0xff] }
 0x300   :  { %v9085_v26 = vld [vmem:[#allocation50_spill] sm:$0xff] }
 0x301   :  { %v4179_v4 = vmax.f32 %v4178_v12, 0.0  ;;  %v8417_v12 = vld [vmem:[#allocation4 + $0x4e0] sm:$0xff] }
 0x303   :  { %4180 = vst [vmem:[#allocation2 + $0x8] sm:$0x7f] %v4179_v4  ;;  %v8421_v4 = vld [vmem:[#allocation4 + $0x4d8] sm:$0xff] }
 0x30a   :  { %v8279_v0 = vld [vmem:[#allocation2 + $0x8] sm:$0x1f] }
 0x30b   :  { %v8281_v44 = vld [vmem:[#allocation2 + $0x9] sm:$0x1f]  ;;  %4312 = vmatmul.mubr.f32.vlgmr.msra.gmra.mxu0 %v8279_v0 }
 0x30c   :  { %4593 = vmatmul.mubr.f32.vlgmr.msra.gmra.mxu1 %v8281_v44  ;;  %4423 = vmatpush1.msra.mxu0 %v8277_v8 }
 0x30d   :  { %4709 = vmatpush1.msra.mxu1 %v8069_v53  ;;  %4424 = vmatprep.subr.mxu0 %v8283_v16  ;;  %v8307_v53 = vld [vmem:[#allocation4 + $0x2b8] sm:$0xff] }
 0x30e   :  { %4710 = vmatprep.subr.mxu1 %v8073_v7  ;;  %4425 = vmatpush1.msra.mxu0 %v8287_v52  ;;  %v8311_v7 = vld [vmem:[#allocation4 + $0x2b0] sm:$0xff] }
 0x30f   :  { %4711 = vmatpush1.msra.mxu1 %v8076_v61  ;;  %4426 = vmatprep.subr.mxu0 %v8291_v23  ;;  %v8315_v61 = vld [vmem:[#allocation4 + $0x2a8] sm:$0xff] }
 0x310   :  { %4712 = vmatprep.subr.mxu1 %v8078_v20  ;;  %4427 = vmatpush1.msra.mxu0 %v8295_v37  ;;  %v8319_v20 = vld [vmem:[#allocation4 + $0x2a0] sm:$0xff] }
 0x311   :  { %4713 = vmatpush1.msra.mxu1 %v8082_v11  ;;  %4428 = vmatprep.subr.mxu0 %v8299_v40  ;;  %v8323_v11 = vld [vmem:[#allocation4 + $0x298] sm:$0xff] }
 0x312   :  { %4714 = vmatprep.subr.mxu1 %v8084_v18  ;;  %4429 = vmatpush1.msra.mxu0 %v8303_v9  ;;  %v8327_v18 = vld [vmem:[#allocation4 + $0x290] sm:$0xff] }
 0x313   :  { %4715 = vmatpush1.msra.mxu1 %v8087_v3  ;;  %4430 = vmatprep.subr.mxu0 %v8307_v53  ;;  %v8331_v3 = vld [vmem:[#allocation4 + $0x288] sm:$0xff] }
 0x314   :  { %4716 = vmatprep.subr.mxu1 %v8090_v39  ;;  %4431 = vmatpush1.msra.mxu0 %v8311_v7  ;;  %v8335_v39 = vld [vmem:[#allocation4 + $0x280] sm:$0xff] }
 0x315   :  { %4717 = vmatpush1.msra.mxu1 %v8092_v19  ;;  %4432 = vmatprep.subr.mxu0 %v8315_v61  ;;  %v8339_v19 = vld [vmem:[#allocation4 + $0x278] sm:$0xff] }
 0x316   :  { %4718 = vmatprep.subr.mxu1 %v8097_v1  ;;  %4433 = vmatpush1.msra.mxu0 %v8319_v20  ;;  %v8343_v1 = vld [vmem:[#allocation4 + $0x270] sm:$0xff] }
 0x317   :  { %4719 = vmatpush1.msra.mxu1 %v8100_v62  ;;  %4434 = vmatprep.subr.mxu0 %v8323_v11  ;;  %v8347_v62 = vld [vmem:[#allocation4 + $0x268] sm:$0xff] }
 0x318   :  { %4720 = vmatprep.subr.mxu1 %v8103_v6  ;;  %4435 = vmatpush1.msra.mxu0 %v8327_v18  ;;  %v8351_v6 = vld [vmem:[#allocation4 + $0x260] sm:$0xff] }
 0x319   :  { %4721 = vmatpush1.msra.mxu1 %v8106_v51  ;;  %4436 = vmatprep.subr.mxu0 %v8331_v3  ;;  %v8355_v51 = vld [vmem:[#allocation4 + $0x258] sm:$0xff] }
 0x31a   :  { %4722 = vmatprep.subr.mxu1 %v8109_v17  ;;  %4437 = vmatpush1.msra.mxu0 %v8335_v39  ;;  %v8359_v17 = vld [vmem:[#allocation4 + $0x250] sm:$0xff] }
 0x31b   :  { %4723 = vmatpush1.msra.mxu1 %v8112_v2  ;;  %4438 = vmatprep.subr.mxu0 %v8339_v19  ;;  %v8363_v2 = vld [vmem:[#allocation4 + $0x248] sm:$0xff] }
 0x31c   :  { %4724 = vmatprep.subr.mxu1 %v8115_v14  ;;  %4439 = vmatpush1.msra.mxu0 %v8343_v1  ;;  %v8367_v14 = vld [vmem:[#allocation4 + $0x240] sm:$0xff] }
 0x31d   :  { %4725 = vmatpush1.msra.mxu1 %v8118_v22  ;;  %4440 = vmatprep.subr.mxu0 %v8347_v62  ;;  %v8371_v22 = vld [vmem:[#allocation4 + $0x238] sm:$0xff] }
 0x31e   :  { %4726 = vmatprep.subr.mxu1 %v8121_v5  ;;  %4441 = vmatpush1.msra.mxu0 %v8351_v6  ;;  %v8375_v5 = vld [vmem:[#allocation4 + $0x230] sm:$0xff] }
 0x31f   :  { %4727 = vmatpush1.msra.mxu1 %v8124_v57  ;;  %4442 = vmatprep.subr.mxu0 %v8355_v51  ;;  %v8379_v57 = vld [vmem:[#allocation4 + $0x228] sm:$0xff] }
 0x320   :  { %4728 = vmatprep.subr.mxu1 %v8127_v54  ;;  %4443 = vmatpush1.msra.mxu0 %v8359_v17  ;;  %v8383_v54 = vld [vmem:[#allocation4 + $0x220] sm:$0xff] }
 0x321   :  { %4729 = vmatpush1.msra.mxu1 %v8130_v13  ;;  %4444 = vmatprep.subr.mxu0 %v8363_v2  ;;  %v8387_v13 = vld [vmem:[#allocation4 + $0x218] sm:$0xff] }
 0x322   :  { %4730 = vmatprep.subr.mxu1 %v8133_v24  ;;  %4445 = vmatpush1.msra.mxu0 %v8367_v14  ;;  %v8391_v24 = vld [vmem:[#allocation4 + $0x210] sm:$0xff] }
 0x323   :  { %4731 = vmatpush1.msra.mxu1 %v8136_v25  ;;  %4446 = vmatprep.subr.mxu0 %v8371_v22  ;;  %v8395_v25 = vld [vmem:[#allocation4 + $0x208] sm:$0xff] }
 0x324   :  { %4732 = vmatprep.subr.mxu1 %v8139_v28  ;;  %4447 = vmatpush1.msra.mxu0 %v8375_v5  ;;  %v9081_v28 = vld [vmem:[#allocation46_spill] sm:$0xff] }
 0x325   :  { %4733 = vmatpush1.msra.mxu1 %v8142_v29  ;;  %4448 = vmatprep.subr.mxu0 %v8379_v57  ;;  %v9082_v29 = vld [vmem:[#allocation47_spill] sm:$0xff] }
 0x326   :  { %4734 = vmatprep.subr.mxu1 %v8145_v31  ;;  %4449 = vmatpush1.msra.mxu0 %v8383_v54  ;;  %v9083_v31 = vld [vmem:[#allocation48_spill] sm:$0xff] }
 0x327   :  { %4735 = vmatpush1.msra.mxu1 %v8147_v32  ;;  %4450 = vmatprep.subr.mxu0 %v8387_v13  ;;  %v9084_v32 = vld [vmem:[#allocation49_spill] sm:$0xff] }
 0x328   :  { %4736 = vmatprep.subr.mxu1 %v9081_v28  ;;  %4451 = vmatpush1.msra.mxu0 %v8391_v24  ;;  %v8425_v28 = vld [vmem:[#allocation4 + $0x4d0] sm:$0xff] }
 0x329   :  { %4737 = vmatpush1.msra.mxu1 %v9082_v29  ;;  %4452 = vmatprep.subr.mxu0 %v8395_v25  ;;  %v8429_v29 = vld [vmem:[#allocation4 + $0x4c8] sm:$0xff] }
 0x32a   :  { %4738 = vmatprep.subr.mxu1 %v9083_v31  ;;  %4453 = vmatpush1.msra.mxu0 %v8399_v38  ;;  %v8433_v31 = vld [vmem:[#allocation4 + $0x4c0] sm:$0xff] }
 0x32b   :  { %4486 = vmatprep.mubr.f32.mxu0 %v8991_v56  ;;  %4739 = vmatpush1.msra.mxu1 %v9084_v32  ;;  %v6335_v32 = vld [vmem:[#allocation4 + $0xb8] sm:$0xff] }
 0x32c   :  { %4772 = vmatprep.mubr.f32.mxu1 %v8991_v56  ;;  %4487 = vmatmul.mubr.f32.vlgmr.msra.gmra.mxu0 %v4389_v41 }
 0x32d   :  { %4634 = vmatprep.subr.mxu0 %v8405_v42  ;;  %4773 = vmatmul.mubr.f32.vlgmr.msra.gmra.mxu1 %v4389_v41  ;;  %v6336_v41 = vld [vmem:[#allocation4 + $0xb0] sm:$0xff] }
 0x32e   :  { %4850 = vmatprep.subr.mxu1 %v9085_v26  ;;  %4635 = vmatpush1.msra.mxu0 %v8411_v30  ;;  %v6339_v26 = vld [vmem:[#allocation4 + $0x98] sm:$0xff] }
 0x32f   :  { %4851 = vmatpush1.msra.mxu1 %v8277_v8  ;;  %4636 = vmatprep.subr.mxu0 %v8414_v47  ;;  %v8437_v8 = vld [vmem:[#allocation4 + $0x4b8] sm:$0xff] }
 0x330   :  { %4852 = vmatprep.subr.mxu1 %v8283_v16  ;;  %4637 = vmatpush1.msra.mxu0 %v8417_v12  ;;  %v8441_v16 = vld [vmem:[#allocation4 + $0x4b0] sm:$0xff] }
 0x331   :  { %4853 = vmatpush1.msra.mxu1 %v8287_v52  ;;  %4638 = vmatprep.subr.mxu0 %v8421_v4  ;;  %v8445_v52 = vld [vmem:[#allocation4 + $0x4a8] sm:$0xff] }
 0x332   :  { %4854 = vmatprep.subr.mxu1 %v8291_v23  ;;  %4639 = vmatpush1.msra.mxu0 %v8425_v28  ;;  %v8449_v23 = vld [vmem:[#allocation4 + $0x4a0] sm:$0xff] }
 0x333   :  { %4855 = vmatpush1.msra.mxu1 %v8295_v37  ;;  %4640 = vmatprep.subr.mxu0 %v8429_v29  ;;  %v8453_v37 = vld [vmem:[#allocation4 + $0x498] sm:$0xff] }
 0x334   :  { %4856 = vmatprep.subr.mxu1 %v8299_v40  ;;  %4641 = vmatpush1.msra.mxu0 %v8433_v31  ;;  %v8457_v40 = vld [vmem:[#allocation4 + $0x490] sm:$0xff] }
 0x335   :  { %4857 = vmatpush1.msra.mxu1 %v8303_v9  ;;  %4642 = vmatprep.subr.mxu0 %v8437_v8  ;;  %v8461_v9 = vld [vmem:[#allocation4 + $0x488] sm:$0xff] }
 0x336   :  { %4858 = vmatprep.subr.mxu1 %v8307_v53  ;;  %4643 = vmatpush1.msra.mxu0 %v8441_v16  ;;  %v8465_v53 = vld [vmem:[#allocation4 + $0x480] sm:$0xff] }
 0x337   :  { %4859 = vmatpush1.msra.mxu1 %v8311_v7  ;;  %4644 = vmatprep.subr.mxu0 %v8445_v52  ;;  %v8469_v7 = vld [vmem:[#allocation4 + $0x478] sm:$0xff] }
 0x338   :  { %4860 = vmatprep.subr.mxu1 %v8315_v61  ;;  %4645 = vmatpush1.msra.mxu0 %v8449_v23  ;;  %v8473_v61 = vld [vmem:[#allocation4 + $0x470] sm:$0xff] }
 0x339   :  { %4861 = vmatpush1.msra.mxu1 %v8319_v20  ;;  %4646 = vmatprep.subr.mxu0 %v8453_v37  ;;  %v8477_v20 = vld [vmem:[#allocation4 + $0x468] sm:$0xff] }
 0x33a   :  { %4862 = vmatprep.subr.mxu1 %v8323_v11  ;;  %4647 = vmatpush1.msra.mxu0 %v8457_v40  ;;  %v8481_v11 = vld [vmem:[#allocation4 + $0x460] sm:$0xff] }
 0x33b   :  { %4863 = vmatpush1.msra.mxu1 %v8327_v18  ;;  %4648 = vmatprep.subr.mxu0 %v8461_v9  ;;  %v8485_v18 = vld [vmem:[#allocation4 + $0x458] sm:$0xff] }
 0x33c   :  { %4864 = vmatprep.subr.mxu1 %v8331_v3  ;;  %4649 = vmatpush1.msra.mxu0 %v8465_v53  ;;  %v8489_v3 = vld [vmem:[#allocation4 + $0x450] sm:$0xff] }
 0x33d   :  { %4865 = vmatpush1.msra.mxu1 %v8335_v39  ;;  %4650 = vmatprep.subr.mxu0 %v8469_v7  ;;  %v8493_v39 = vld [vmem:[#allocation4 + $0x448] sm:$0xff] }
 0x33e   :  { %4866 = vmatprep.subr.mxu1 %v8339_v19  ;;  %4651 = vmatpush1.msra.mxu0 %v8473_v61  ;;  %v8497_v19 = vld [vmem:[#allocation4 + $0x440] sm:$0xff] }
 0x33f   :  { %4867 = vmatpush1.msra.mxu1 %v8343_v1  ;;  %4652 = vmatprep.subr.mxu0 %v8477_v20  ;;  %v8501_v1 = vld [vmem:[#allocation4 + $0x438] sm:$0xff] }
 0x340   :  { %4868 = vmatprep.subr.mxu1 %v8347_v62  ;;  %4653 = vmatpush1.msra.mxu0 %v8481_v11  ;;  %v8505_v62 = vld [vmem:[#allocation4 + $0x430] sm:$0xff] }
 0x341   :  { %4869 = vmatpush1.msra.mxu1 %v8351_v6  ;;  %4654 = vmatprep.subr.mxu0 %v8485_v18  ;;  %v8509_v6 = vld [vmem:[#allocation4 + $0x428] sm:$0xff] }
 0x342   :  { %4870 = vmatprep.subr.mxu1 %v8355_v51  ;;  %4655 = vmatpush1.msra.mxu0 %v8489_v3  ;;  %v8513_v51 = vld [vmem:[#allocation4 + $0x420] sm:$0xff] }
 0x343   :  { %4871 = vmatpush1.msra.mxu1 %v8359_v17  ;;  %4656 = vmatprep.subr.mxu0 %v8493_v39  ;;  %v8517_v17 = vld [vmem:[#allocation4 + $0x418] sm:$0xff] }
 0x344   :  { %4872 = vmatprep.subr.mxu1 %v8363_v2  ;;  %4657 = vmatpush1.msra.mxu0 %v8497_v19  ;;  %v8521_v2 = vld [vmem:[#allocation4 + $0x410] sm:$0xff] }
 0x345   :  { %4873 = vmatpush1.msra.mxu1 %v8367_v14  ;;  %4658 = vmatprep.subr.mxu0 %v8501_v1  ;;  %v8525_v14 = vld [vmem:[#allocation4 + $0x408] sm:$0xff] }
 0x346   :  { %4874 = vmatprep.subr.mxu1 %v8371_v22  ;;  %4659 = vmatpush1.msra.mxu0 %v8505_v62  ;;  %v8529_v22 = vld [vmem:[#allocation4 + $0x400] sm:$0xff] }
 0x347   :  { %4875 = vmatpush1.msra.mxu1 %v8375_v5  ;;  %4660 = vmatprep.subr.mxu0 %v8509_v6  ;;  %v8539_v5 = vld [vmem:[#allocation2 + $0x2] sm:$0x1f] }
 0x348   :  { %4876 = vmatprep.subr.mxu1 %v8379_v57  ;;  %4661 = vmatpush1.msra.mxu0 %v8513_v51  ;;  %v6327_v57 = vld [vmem:[#allocation4 + $0xf8] sm:$0xff] }
 0x349   :  { %4877 = vmatpush1.msra.mxu1 %v8383_v54  ;;  %4662 = vmatprep.subr.mxu0 %v8517_v17  ;;  %v6328_v54 = vld [vmem:[#allocation4 + $0xf0] sm:$0xff] }
 0x34a   :  { %4878 = vmatprep.subr.mxu1 %v8387_v13  ;;  %4663 = vmatpush1.msra.mxu0 %v8521_v2  ;;  %v6329_v13 = vld [vmem:[#allocation4 + $0xe8] sm:$0xff] }
 0x34b   :  { %4879 = vmatpush1.msra.mxu1 %v8391_v24  ;;  %4664 = vmatprep.subr.mxu0 %v8525_v14  ;;  %v6330_v24 = vld [vmem:[#allocation4 + $0xe0] sm:$0xff] }
 0x34c   :  { %4880 = vmatprep.subr.mxu1 %v8395_v25  ;;  %4665 = vmatpush1.msra.mxu0 %v8529_v22  ;;  %v6331_v25 = vld [vmem:[#allocation4 + $0xd8] sm:$0xff] }
 0x34d   :  { %4698 = vmatprep.mubr.f32.mxu0 %v8991_v56  ;;  %4881 = vmatpush1.msra.mxu1 %v8399_v38  ;;  %v6332_v38 = vld [vmem:[#allocation4 + $0xd0] sm:$0xff] }
 0x34e   :  { %4914 = vmatprep.mubr.f32.mxu1 %v8991_v56  ;;  %4699 = vmatmul.mubr.f32.vlgmr.msra.gmra.mxu0 %v8539_v5 }
 0x34f   :  { %4779 = vmatprep.subr.mxu0 %v6327_v57  ;;  %4915 = vmatmul.mubr.f32.vlgmr.msra.gmra.mxu1 %v8281_v44  ;;  %v6333_v44 = vld [vmem:[#allocation4 + $0xc8] sm:$0xff]  ;;  %v5108_v57 = vld [vmem:[#allocation7 + $0xb0] sm:$0xff] }
 0x350   :  { %4997 = vmatprep.subr.mxu1 %v8405_v42  ;;  %4780 = vmatpush1.msra.mxu0 %v6328_v54  ;;  %v6334_v42 = vld [vmem:[#allocation4 + $0xc0] sm:$0xff]  ;;  %v5092_v54 = vld [vmem:[#allocation7 + $0x38] sm:$0xff] }
 0x351   :  { %4998 = vmatpush1.msra.mxu1 %v8411_v30  ;;  %4781 = vmatprep.subr.mxu0 %v6329_v13  ;;  %v6337_v30 = vld [vmem:[#allocation4 + $0xa8] sm:$0xff] }
 0x352   :  { %4999 = vmatprep.subr.mxu1 %v8414_v47  ;;  %4782 = vmatpush1.msra.mxu0 %v6330_v24  ;;  %v6338_v47 = vld [vmem:[#allocation4 + $0xa0] sm:$0xff]  ;;  %v5107_v13 = vld [vmem:[#allocation7 + $0xa8] sm:$0xff]  ;;  %v5091_v24 = vld [vmem:[#allocation7 + $0x30] sm:$0xff] }
 0x353   :  { %5000 = vmatpush1.msra.mxu1 %v8417_v12  ;;  %4783 = vmatprep.subr.mxu0 %v6331_v25  ;;  %v6340_v12 = vld [vmem:[#allocation4 + $0x90] sm:$0xff]  ;;  %v5106_v25 = vld [vmem:[#allocation7 + $0xa0] sm:$0xff] }
 0x354   :  { %5001 = vmatprep.subr.mxu1 %v8421_v4  ;;  %4784 = vmatpush1.msra.mxu0 %v6332_v38  ;;  %v6341_v4 = vld [vmem:[#allocation4 + $0x88] sm:$0xff] }
 0x355   :  { %5002 = vmatpush1.msra.mxu1 %v8425_v28  ;;  %4785 = vmatprep.subr.mxu0 %v6333_v44  ;;  %v6342_v28 = vld [vmem:[#allocation4 + $0x80] sm:$0xff]  ;;  %v5090_v38 = vld [vmem:[#allocation7 + $0x28] sm:$0xff]  ;;  %v5105_v44 = vld [vmem:[#allocation7 + $0x98] sm:$0xff] }
 0x356   :  { %5003 = vmatprep.subr.mxu1 %v8429_v29  ;;  %4786 = vmatpush1.msra.mxu0 %v6334_v42  ;;  %v6343_v29 = vld [vmem:[#allocation4 + $0x78] sm:$0xff]  ;;  %v5089_v42 = vld [vmem:[#allocation7 + $0x20] sm:$0xff] }
 0x357   :  { %5004 = vmatpush1.msra.mxu1 %v8433_v31  ;;  %4787 = vmatprep.subr.mxu0 %v6335_v32  ;;  %v6344_v31 = vld [vmem:[#allocation4 + $0x70] sm:$0xff] }
 0x358   :  { %5005 = vmatprep.subr.mxu1 %v8437_v8  ;;  %4788 = vmatpush1.msra.mxu0 %v6336_v41  ;;  %v6345_v8 = vld [vmem:[#allocation4 + $0x68] sm:$0xff]  ;;  %v5104_v32 = vld [vmem:[#allocation7 + $0x90] sm:$0xff]  ;;  %v5088_v41 = vld [vmem:[#allocation7 + $0x18] sm:$0xff] }
 0x359   :  { %5006 = vmatpush1.msra.mxu1 %v8441_v16  ;;  %4789 = vmatprep.subr.mxu0 %v6337_v30  ;;  %v6346_v16 = vld [vmem:[#allocation4 + $0x60] sm:$0xff]  ;;  %v5103_v30 = vld [vmem:[#allocation7 + $0x88] sm:$0xff] }
 0x35a   :  { %5007 = vmatprep.subr.mxu1 %v8445_v52  ;;  %4790 = vmatpush1.msra.mxu0 %v6338_v47  ;;  %v6347_v52 = vld [vmem:[#allocation4 + $0x58] sm:$0xff]  ;;  %v5087_v47 = vld [vmem:[#allocation7 + $0x10] sm:$0xff] }
 0x35b   :  { %5008 = vmatpush1.msra.mxu1 %v8449_v23  ;;  %4791 = vmatprep.subr.mxu0 %v6339_v26  ;;  %v6348_v23 = vld [vmem:[#allocation4 + $0x50] sm:$0xff]  ;;  %v5102_v26 = vld [vmem:[#allocation7 + $0x80] sm:$0xff] }
 0x35c   :  { %5009 = vmatprep.subr.mxu1 %v8453_v37  ;;  %4792 = vmatpush1.msra.mxu0 %v6340_v12  ;;  %v6349_v37 = vld [vmem:[#allocation4 + $0x48] sm:$0xff] }
 0x35d   :  { %5010 = vmatpush1.msra.mxu1 %v8457_v40  ;;  %4793 = vmatprep.subr.mxu0 %v6341_v4  ;;  %v6350_v40 = vld [vmem:[#allocation4 + $0x40] sm:$0xff]  ;;  %v5086_v12 = vld [vmem:[#allocation7 + $0x8] sm:$0xff] }
 0x35e   :  { %5011 = vmatprep.subr.mxu1 %v8461_v9  ;;  %4794 = vmatpush1.msra.mxu0 %v6342_v28  ;;  %v6351_v9 = vld [vmem:[#allocation4 + $0x38] sm:$0xff]  ;;  %v5085_v4 = vld [vmem:[#allocation7] sm:$0xff] }
 0x35f   :  { %5012 = vmatpush1.msra.mxu1 %v8465_v53  ;;  %4795 = vmatprep.subr.mxu0 %v6343_v29  ;;  %v6352_v53 = vld [vmem:[#allocation4 + $0x30] sm:$0xff] }
 0x360   :  { %5013 = vmatprep.subr.mxu1 %v8469_v7  ;;  %4796 = vmatpush1.msra.mxu0 %v6344_v31  ;;  %v6353_v7 = vld [vmem:[#allocation4 + $0x28] sm:$0xff] }
 0x361   :  { %5014 = vmatpush1.msra.mxu1 %v8473_v61  ;;  %4797 = vmatprep.subr.mxu0 %v6345_v8  ;;  %v6354_v61 = vld [vmem:[#allocation4 + $0x20] sm:$0xff] }
 0x362   :  { %5015 = vmatprep.subr.mxu1 %v8477_v20  ;;  %4798 = vmatpush1.msra.mxu0 %v6346_v16  ;;  %v6355_v20 = vld [vmem:[#allocation4 + $0x18] sm:$0xff] }
 0x363   :  { %5016 = vmatpush1.msra.mxu1 %v8481_v11  ;;  %4799 = vmatprep.subr.mxu0 %v6347_v52  ;;  %v6356_v11 = vld [vmem:[#allocation4 + $0x10] sm:$0xff] }
 0x364   :  { %5017 = vmatprep.subr.mxu1 %v8485_v18  ;;  %4800 = vmatpush1.msra.mxu0 %v6348_v23  ;;  %v6357_v18 = vld [vmem:[#allocation4 + $0x8] sm:$0xff] }
 0x365   :  { %5018 = vmatpush1.msra.mxu1 %v8489_v3  ;;  %4801 = vmatprep.subr.mxu0 %v6349_v37  ;;  %v6358_v3 = vld [vmem:[#allocation4] sm:$0xff] }
 0x366   :  { %5019 = vmatprep.subr.mxu1 %v8493_v39  ;;  %4802 = vmatpush1.msra.mxu0 %v6350_v40  ;;  %v6359_v39 = vld [vmem:[#allocation4 + $0x3f8] sm:$0xff] }
 0x367   :  { %5020 = vmatpush1.msra.mxu1 %v8497_v19  ;;  %4803 = vmatprep.subr.mxu0 %v6351_v9  ;;  %v4996_v19 = vld [vmem:[#allocation2 + $0xa] sm:$0x1f] }
 0x368   :  { %5021 = vmatprep.subr.mxu1 %v8501_v1  ;;  %4804 = vmatpush1.msra.mxu0 %v6352_v53  ;;  %v9087_v1 = vld [vmem:[#allocation14_spill] sm:$0xff] }
 0x369   :  { %5022 = vmatpush1.msra.mxu1 %v8505_v62  ;;  %4805 = vmatprep.subr.mxu0 %v6353_v7  ;;  %v9090_v62 = vld [vmem:[#allocation17_spill] sm:$0xff] }
 0x36a   :  { %5023 = vmatprep.subr.mxu1 %v8509_v6  ;;  %4806 = vmatpush1.msra.mxu0 %v6354_v61  ;;  %v9092_v6 = vld [vmem:[#allocation19_spill] sm:$0xff] }
 0x36b   :  { %5024 = vmatpush1.msra.mxu1 %v8513_v51  ;;  %4807 = vmatprep.subr.mxu0 %v6355_v20  ;;  %v9097_v51 = vld [vmem:[#allocation24_spill] sm:$0xff] }
 0x36c   :  { %5025 = vmatprep.subr.mxu1 %v8517_v17  ;;  %4808 = vmatpush1.msra.mxu0 %v6356_v11  ;;  %v5095_v17 = vld [vmem:[#allocation7 + $0x50] sm:$0xff] }
 0x36d   :  { %5026 = vmatpush1.msra.mxu1 %v8521_v2  ;;  %4809 = vmatprep.subr.mxu0 %v6357_v18  ;;  %v5110_v2 = vld [vmem:[#allocation7 + $0xc0] sm:$0xff] }
 0x36e   :  { %5027 = vmatprep.subr.mxu1 %v8525_v14  ;;  %4810 = vmatpush1.msra.mxu0 %v6358_v3  ;;  %v5094_v14 = vld [vmem:[#allocation7 + $0x48] sm:$0xff] }
 0x36f   :  { %4843 = vmatprep.mubr.f32.mxu0 %v8991_v56  ;;  %5028 = vmatpush1.msra.mxu1 %v8529_v22  ;;  %v5109_v22 = vld [vmem:[#allocation7 + $0xb8] sm:$0xff] }
 0x370   :  { %5061 = vmatprep.mubr.f32.mxu1 %v8991_v56  ;;  %4844 = vmatmul.mubr.f32.vlgmr.msra.gmra.mxu0 %v8279_v0  ;;  %v9086_v0 = vld [vmem:[#allocation13_spill] sm:$0xff] }
 0x371   :  { %4923 = vmatprep.subr.mxu0 %v6359_v39  ;;  %5062 = vmatmul.mubr.f32.vlgmr.msra.gmra.mxu1 %v4996_v19 }
 0x372   :  { %4924 = vmatpush1.msra.mxu0 %v8175_v27  ;;  %4987 = vmatprep.mubr.f32.mxu0 %v8991_v56  ;;  %v9088_v27 = vld [vmem:[#allocation15_spill] sm:$0xff] }
 0x373   :  { %4925 = vmatprep.subr.mxu0 %v8177_v60  ;;  %6108 = vmatprep.subr.mxu1 %v8991_v56  ;;  %v9089_v60 = vld [vmem:[#allocation16_spill] sm:$0xff] }
 0x374   :  { %4926 = vmatpush1.msra.mxu0 %v8179_v63  ;;  %v9091_v63 = vld [vmem:[#allocation18_spill] sm:$0xff]  ;;  %6140 = vmatprep.mubr.msk.f32.mxu1 %vm6433_vm1, %v8991_v56 }
 0x375   :  { %4927 = vmatprep.subr.mxu0 %v8182_v46  ;;  %v9093_v46 = vld [vmem:[#allocation20_spill] sm:$0xff] }
 0x376   :  { %4928 = vmatpush1.msra.mxu0 %v8186_v21  ;;  %v9094_v21 = vld [vmem:[#allocation21_spill] sm:$0xff] }
 0x377   :  { %4929 = vmatprep.subr.mxu0 %v8189_v48  ;;  %v9095_v48 = vld [vmem:[#allocation22_spill] sm:$0xff] }
 0x378   :  { %4930 = vmatpush1.msra.mxu0 %v8194_v50  ;;  %v9096_v50 = vld [vmem:[#allocation23_spill] sm:$0xff] }
 0x379   :  { %4931 = vmatprep.subr.mxu0 %v9086_v0 }
 0x37a   :  { %4932 = vmatpush1.msra.mxu0 %v9087_v1 }
 0x37b   :  { %4933 = vmatprep.subr.mxu0 %v9088_v27 }
 0x37c   :  { %4934 = vmatpush1.msra.mxu0 %v9089_v60 }
 0x37d   :  { %4935 = vmatprep.subr.mxu0 %v9090_v62 }
 0x37e   :  { %4936 = vmatpush1.msra.mxu0 %v9091_v63 }
 0x37f   :  { %4937 = vmatprep.subr.mxu0 %v9092_v6 }
 0x380   :  { %4938 = vmatpush1.msra.mxu0 %v9093_v46 }
 0x381   :  { %4939 = vmatprep.subr.mxu0 %v9094_v21 }
 0x382   :  { %4940 = vmatpush1.msra.mxu0 %v9095_v48 }
 0x383   :  { %4941 = vmatprep.subr.mxu0 %v9096_v50 }
 0x384   :  { %4942 = vmatpush1.msra.mxu0 %v8232_v45  ;;  %v5100_v45 = vld [vmem:[#allocation7 + $0x78] sm:$0xff] }
 0x385   :  { %4943 = vmatprep.subr.mxu0 %v8235_v58  ;;  %v5117_v58 = vld [vmem:[#allocation7 + $0xf8] sm:$0xff]  ;;  %6109 = vmatpush3.msra.mxu1 %v5100_v45 }
 0x386   :  { %4944 = vmatpush1.msra.mxu0 %v8238_v59  ;;  %v5116_v59 = vld [vmem:[#allocation7 + $0xf0] sm:$0xff]  ;;  %6110 = vmatprep.subr.mxu1 %v8991_v56 }
 0x387   :  { %4945 = vmatprep.subr.mxu0 %v9097_v51 }
 0x388   :  { %4946 = vmatpush1.msra.mxu0 %v8244_v43  ;;  %v5099_v43 = vld [vmem:[#allocation7 + $0x70] sm:$0xff] }
 0x389   :  { %4947 = vmatprep.subr.mxu0 %v8247_v35  ;;  %v5098_v35 = vld [vmem:[#allocation7 + $0x68] sm:$0xff]  ;;  %6111 = vmatpush3.msra.mxu1 %v5099_v43 }
 0x38a   :  { %4948 = vmatpush1.msra.mxu0 %v8250_v36  ;;  %6112 = vmatprep.subr.mxu1 %v8991_v56  ;;  %v5114_v36 = vld [vmem:[#allocation7 + $0xe0] sm:$0xff] }
 0x38b   :  { %4949 = vmatprep.subr.mxu0 %v8253_v34  ;;  %6113 = vmatpush3.msra.mxu1 %v5098_v35  ;;  %v5113_v34 = vld [vmem:[#allocation7 + $0xd8] sm:$0xff] }
 0x38c   :  { %4950 = vmatpush1.msra.mxu0 %v8256_v55  ;;  %6114 = vmatprep.subr.mxu1 %v8991_v56  ;;  %v5097_v55 = vld [vmem:[#allocation7 + $0x60] sm:$0xff] }
 0x38d   :  { %4951 = vmatprep.subr.mxu0 %v8260_v10  ;;  %v5115_v10 = vld [vmem:[#allocation7 + $0xe8] sm:$0xff]  ;;  %6115 = vmatpush3.msra.mxu1 %v5097_v55 }
 0x38e   :  { %4952 = vmatpush1.msra.mxu0 %v8263_v15  ;;  %6116 = vmatprep.subr.mxu1 %v8991_v56  ;;  %v5112_v15 = vld [vmem:[#allocation7 + $0xd0] sm:$0xff] }
 0x38f   :  { %4953 = vmatprep.subr.mxu0 %v8267_v33  ;;  %v5096_v33 = vld [vmem:[#allocation7 + $0x58] sm:$0xff] }
 0x390   :  { %4954 = vmatpush1.msra.mxu0 %v8270_v49  ;;  %6117 = vmatpush3.msra.mxu1 %v5096_v33  ;;  %v5111_v49 = vld [vmem:[#allocation7 + $0xc8] sm:$0xff] }
 0x391   :  { %4988 = vmatmul.mubr.f32.vlgmr.msra.gmra.mxu0 %v8539_v5  ;;  %6073 = vmatprep.subr.mxu0 %v8991_v56  ;;  %v5093_v5 = vld [vmem:[#allocation7 + $0x40] sm:$0xff] }
 0x392   :  { %6074 = vmatpush3.msra.mxu0 %v5117_v58  ;;  %6118 = vmatprep.subr.mxu1 %v8991_v56 }
 0x393   :  { %6075 = vmatprep.subr.mxu0 %v8991_v56  ;;  %6119 = vmatpush3.msra.mxu1 %v5095_v17 }
 0x394   :  { %6076 = vmatpush3.msra.mxu0 %v5116_v59  ;;  %6120 = vmatprep.subr.mxu1 %v8991_v56 }
 0x395   :  { %6077 = vmatprep.subr.mxu0 %v8991_v56  ;;  %6121 = vmatpush3.msra.mxu1 %v5094_v14  ;;  %v5283_v14 = vld [vmem:[#allocation7 + $0x178] sm:$0xff] }
 0x396   :  { %6078 = vmatpush3.msra.mxu0 %v5115_v10  ;;  %6122 = vmatprep.subr.mxu1 %v8991_v56 }
 0x397   :  { %6079 = vmatprep.subr.mxu0 %v8991_v56  ;;  %6123 = vmatpush3.msra.mxu1 %v5093_v5 }
 0x398   :  { %6080 = vmatpush3.msra.mxu0 %v5114_v36  ;;  %6124 = vmatprep.subr.mxu1 %v8991_v56 }
 0x399   :  { %6081 = vmatprep.subr.mxu0 %v8991_v56  ;;  %6125 = vmatpush3.msra.mxu1 %v5092_v54  ;;  %v5375_v54 = vld [vmem:[#allocation7 + $0x1f8] sm:$0xff] }
 0x39a   :  { %6082 = vmatpush3.msra.mxu0 %v5113_v34  ;;  %6126 = vmatprep.subr.mxu1 %v8991_v56  ;;  %v5950_v34 = vld [vmem:[%s8871_s4] ss:$0 sm:$0xff] }
 0x39b   :  { %6083 = vmatprep.subr.mxu0 %v8991_v56  ;;  %6127 = vmatpush3.msra.mxu1 %v5091_v24  ;;  %v5281_v24 = vld [vmem:[#allocation7 + $0x168] sm:$0xff] }
 0x39c   :  { %6084 = vmatpush3.msra.mxu0 %v5112_v15  ;;  %6128 = vmatprep.subr.mxu1 %v8991_v56 }
 0x39d   :  { %6085 = vmatprep.subr.mxu0 %v8991_v56  ;;  %6129 = vmatpush3.msra.mxu1 %v5090_v38  ;;  %v5280_v38 = vld [vmem:[#allocation7 + $0x160] sm:$0xff] }
 0x39e   :  { %6086 = vmatpush3.msra.mxu0 %v5111_v49  ;;  %6130 = vmatprep.subr.mxu1 %v8991_v56  ;;  %v8652_v49 = vld [vmem:[#allocation3] sm:$0x1f] }
 0x39f   :  { %6087 = vmatprep.subr.mxu0 %v8991_v56  ;;  %6131 = vmatpush3.msra.mxu1 %v5089_v42  ;;  %v4384_v29 = vpop.f32.mrf.mxu1  ;;  %v5120_v17 = vrot.slane %v8652_v49, 1  ;;  %v5279_v42 = vld [vmem:[#allocation7 + $0x158] sm:$0xff] }
 0x3a0   :  { %6088 = vmatpush3.msra.mxu0 %v5110_v2  ;;  %6132 = vmatprep.subr.mxu1 %v8991_v56 }
 0x3a1   :  { %6089 = vmatprep.subr.mxu0 %v8991_v56  ;;  %6133 = vmatpush3.msra.mxu1 %v5088_v41  ;;  %v4386_v16 = vpop.f32.mrf.mxu1  ;;  %v5278_v41 = vld [vmem:[#allocation7 + $0x150] sm:$0xff] }
 0x3a2   :  { %6090 = vmatpush3.msra.mxu0 %v5109_v22  ;;  %6134 = vmatprep.subr.mxu1 %v8991_v56 }
 0x3a3   :  { %6091 = vmatprep.subr.mxu0 %v8991_v56  ;;  %6135 = vmatpush3.msra.mxu1 %v5087_v47  ;;  %v5277_v47 = vld [vmem:[#allocation7 + $0x148] sm:$0xff] }
 0x3a4   :  { %6092 = vmatpush3.msra.mxu0 %v5108_v57  ;;  %6136 = vmatprep.subr.mxu1 %v8991_v56  ;;  %v5282_v57 = vld [vmem:[#allocation7 + $0x170] sm:$0xff] }
 0x3a5   :  { %6093 = vmatprep.subr.mxu0 %v8991_v56  ;;  %6137 = vmatpush3.msra.mxu1 %v5086_v12  ;;  %v5276_v12 = vld [vmem:[#allocation7 + $0x140] sm:$0xff] }
 0x3a6   :  { %6094 = vmatpush3.msra.mxu0 %v5107_v13  ;;  %6105 = vmatprep.mubr.msk.f32.mxu0 %vm6433_vm1, %v8991_v56 }
 0x3a7   :  { %6095 = vmatprep.subr.mxu0 %v8991_v56  ;;  %6138 = vmatprep.subr.mxu1 %v8991_v56 }
 0x3a8   :  { %6096 = vmatpush3.msra.mxu0 %v5106_v25  ;;  %6139 = vmatpush3.msra.mxu1 %v5085_v4  ;;  %v5374_v25 = vld [vmem:[#allocation7 + $0x1f0] sm:$0xff]  ;;  %v5369_v4 = vld [vmem:[#allocation7 + $0x1c8] sm:$0xff] }
 0x3a9   :  { %6097 = vmatprep.subr.mxu0 %v8991_v56  ;;  %6178 = vmatprep.subr.mxu1 %v8991_v56 }
 0x3aa   :  { %6098 = vmatpush3.msra.mxu0 %v5105_v44  ;;  %v5373_v44 = vld [vmem:[#allocation7 + $0x1e8] sm:$0xff] }
 0x3ab   :  { %6099 = vmatprep.subr.mxu0 %v8991_v56 }
 0x3ac   :  { %6100 = vmatpush3.msra.mxu0 %v5104_v32  ;;  %v5372_v32 = vld [vmem:[#allocation7 + $0x1e0] sm:$0xff] }
 0x3ad   :  { %6101 = vmatprep.subr.mxu0 %v8991_v56 }
 0x3ae   :  { %6102 = vmatpush3.msra.mxu0 %v5103_v30  ;;  %v5371_v30 = vld [vmem:[#allocation7 + $0x1d8] sm:$0xff] }
 0x3af   :  { %6103 = vmatprep.subr.mxu0 %v8991_v56 }
 0x3b0   :  { %6104 = vmatpush3.msra.mxu0 %v5102_v26  ;;  %v5370_v26 = vld [vmem:[#allocation7 + $0x1d0] sm:$0xff] }
 0x3b1   :  { %6143 = vmatprep.subr.mxu0 %v8991_v56 }
 0x3cb   :  { %v4313_v28 = vpop.f32.mrf.mxu0 }
 0x3cc   :  { %v4594_v52 = vpop.f32.mrf.mxu1  ;;  %v4385_v39 = vadd.f32 %v4384_v29, %v4313_v28  ;;  %v5275_v28 = vld [vmem:[#allocation7 + $0x138] sm:$0xff]  ;;  %v5368_v29 = vld [vmem:[#allocation7 + $0x1c0] sm:$0xff] }
 0x3cd   :  { %v4315_v31 = vpop.f32.mrf.mxu0 }
 0x3ce   :  { %v4596_v40 = vpop.f32.mrf.mxu1  ;;  %v4387_v18 = vadd.f32 %v4386_v16, %v4315_v31  ;;  %v5274_v31 = vld [vmem:[#allocation7 + $0x130] sm:$0xff]  ;;  %v5273_v16 = vld [vmem:[#allocation7 + $0x128] sm:$0xff] }
 0x3ec   :  { %v4488_v8 = vpop.f32.mrf.mxu0 }
 0x3ed   :  { %v4774_v9 = vpop.f32.mrf.mxu1  ;;  %v4493_v27 = vadd.f32 %v4488_v8, %v4385_v39  ;;  %v5367_v8 = vld [vmem:[#allocation7 + $0x1b8] sm:$0xff]  ;;  %v5284_v39 = vrot.slane %v8652_v49, 2 }
 0x3ee   :  { %v4490_v23 = vpop.f32.mrf.mxu0 }
 0x3ef   :  { %v4776_v61 = vpop.f32.mrf.mxu1  ;;  %v4494_v19 = vadd.f32 %v4490_v23, %v4387_v18  ;;  %v4599_v50 = vadd.f32 %v4594_v52, %v4493_v27  ;;  %v5366_v52 = vld [vmem:[#allocation7 + $0x1b0] sm:$0xff]  ;;  %v5272_v23 = vld [vmem:[#allocation7 + $0x120] sm:$0xff]  ;;  %v5467_v27 = vld [vmem:[#allocation7 + $0x278] sm:$0xff] }
 0x3f0   :  { %v5268_v18 = vld [vmem:[#allocation7 + $0x100] sm:$0xff] }
 0x3f1   :  { %v4600_v6 = vadd.f32 %v4596_v40, %v4494_v19  ;;  %v5271_v40 = vld [vmem:[#allocation7 + $0x118] sm:$0xff]  ;;  %v5360_v19 = vld [vmem:[#allocation7 + $0x180] sm:$0xff] }
 0x40e   :  { %v4700_v37 = vpop.f32.mrf.mxu0 }
 0x40f   :  { %v4916_v20 = vpop.f32.mrf.mxu1  ;;  %v4705_v45 = vadd.f32 %v4700_v37, %v4599_v50  ;;  %v5365_v37 = vld [vmem:[#allocation7 + $0x1a8] sm:$0xff] }
 0x410   :  { %v4702_v53 = vpop.f32.mrf.mxu0  ;;  %v5461_v50 = vld [vmem:[#allocation7 + $0x248] sm:$0xff] }
 0x411   :  { %v4918_v1 = vpop.f32.mrf.mxu1  ;;  %v4706_v51 = vadd.f32 %v4702_v53, %v4600_v6  ;;  %v5270_v53 = vld [vmem:[#allocation7 + $0x110] sm:$0xff]  ;;  %v5465_v6 = vld [vmem:[#allocation7 + $0x268] sm:$0xff] }
 0x413   :  { %v4707_v35 = vmax.f32 %v4705_v45, %v4706_v51  ;;  %v5460_v51 = vld [vmem:[#allocation7 + $0x240] sm:$0xff]  ;;  %v5457_v45 = vld [vmem:[#allocation7 + $0x228] sm:$0xff] }
 0x430   :  { %v4845_v7 = vpop.f32.mrf.mxu0 }
 0x431   :  { %v4846_v3 = vadd.f32 %v4845_v7, %v4774_v9  ;;  %v5063_v62 = vpop.f32.mrf.mxu1  ;;  %v5364_v9 = vld [vmem:[#allocation7 + $0x1a0] sm:$0xff]  ;;  %v5363_v7 = vld [vmem:[#allocation7 + $0x198] sm:$0xff] }
 0x432   :  { %v4847_v11 = vpop.f32.mrf.mxu0 }
 0x433   :  { %v4848_v0 = vadd.f32 %v4847_v11, %v4776_v61  ;;  %v4921_v60 = vadd.f32 %v4916_v20, %v4846_v3  ;;  %v5065_v59 = vpop.f32.mrf.mxu1  ;;  %v5269_v61 = vld [vmem:[#allocation7 + $0x108] sm:$0xff]  ;;  %v5362_v20 = vld [vmem:[#allocation7 + $0x190] sm:$0xff] }
 0x434   :  { %v5361_v3 = vld [vmem:[#allocation7 + $0x188] sm:$0xff] }
 0x435   :  { %v4922_v21 = vadd.f32 %v4918_v1, %v4848_v0 }
 0x451   :  { %v4989_v63 = vpop.f32.mrf.mxu0 }
 0x452   :  { %v4994_v46 = vadd.f32 %v4989_v63, %v4921_v60  ;;  %v5376_v60 = vrot.slane %v8652_v49, 3 }
 0x453   :  { %v4991_v48 = vpop.f32.mrf.mxu0 }
 0x454   :  { %v4995_v58 = vadd.f32 %v4991_v48, %v4922_v21  ;;  %v5068_v43 = vadd.f32 %v5063_v62, %v4994_v46  ;;  %v5466_v62 = vld [vmem:[#allocation7 + $0x270] sm:$0xff]  ;;  %v5464_v46 = vld [vmem:[#allocation7 + $0x260] sm:$0xff]  ;;  %v5463_v21 = vld [vmem:[#allocation7 + $0x258] sm:$0xff] }
 0x455   :  { %v5462_v48 = vld [vmem:[#allocation7 + $0x250] sm:$0xff] }
 0x456   :  { %v5069_v10 = vadd.f32 %v5065_v59, %v4995_v58  ;;  %v5459_v58 = vld [vmem:[#allocation7 + $0x238] sm:$0xff]  ;;  %v5458_v59 = vld [vmem:[#allocation7 + $0x230] sm:$0xff] }
 0x458   :  { %v5070_v36 = vmax.f32 %v5068_v43, %v5069_v10  ;;  %v5456_v43 = vld [vmem:[#allocation7 + $0x220] sm:$0xff]  ;;  %v5455_v10 = vld [vmem:[#allocation7 + $0x218] sm:$0xff] }
 0x45a   :  { %v5071_v55 = vmax.f32 %v4707_v35, %v5070_v36  ;;  %v5454_v35 = vld [vmem:[#allocation7 + $0x210] sm:$0xff]  ;;  %v5453_v36 = vld [vmem:[#allocation7 + $0x208] sm:$0xff] }
 0x45c   :  { %v5079_v15 = vadd.f32 %v5950_v34, %v5071_v55  ;;  %v5452_v55 = vld [vmem:[#allocation7 + $0x200] sm:$0xff] }
 0x45e   :  { %v5080_v33 = vmax.f32 %v5079_v15, 0.0  ;;  %v5468_v15 = vrot.slane %v8652_v49, 4 }
 0x460   :  { %5082 = vst [vmem:[#allocation3 + $0x8] sm:$0x1f] %v5080_v33 }
 0x467   :  { %v8655_v2 = vld [vmem:[#allocation3 + $0x8] sm:$0x1f] }
 0x468   :  { %v5122_v22 = vsel %vm5121_vm2, %v8655_v2, %v5120_v17  ;;  %v5194_v5 = vrot.slane %v8655_v2, 7  ;;  %v5285_v11 = vrot.slane %v8655_v2, 1  ;;  %v5377_v0 = vrot.slane %v8655_v2, 2  ;;  %v5567_v17 = vld [vmem:[%s8874_s7 + $0x78] sm:$0xff] }
 0x469   :  { %6106 = vmatmul.mubr.f32.vlgmr.msra.gmra.mxu0 %v5122_v22  ;;  %v5469_v34 = vrot.slane %v8655_v2, 3  ;;  %v5566_v2 = vld [vmem:[%s8874_s7 + $0x70] sm:$0xff]  ;;  %v5563_v22 = vld [vmem:[%s8874_s7 + $0x58] sm:$0xff] }
 0x46a   :  { %6144 = vmatpush3.msra.mxu0 %v5283_v14  ;;  %v5195_v13 = vsel %vm5121_vm2, %v5194_v5, %v8652_v49  ;;  %6175 = vmatprep.mubr.msk.f32.mxu0 %vm6433_vm1, %v8991_v56  ;;  %v5286_v1 = vsel %vm5121_vm2, %v5285_v11, %v5284_v39  ;;  %v5378_v63 = vsel %vm5121_vm2, %v5377_v0, %v5376_v60  ;;  %v5565_v49 = vld [vmem:[%s8874_s7 + $0x68] sm:$0xff]  ;;  %v5564_v14 = vld [vmem:[%s8874_s7 + $0x60] sm:$0xff]  ;;  %v5562_v5 = vld [vmem:[%s8874_s7 + $0x50] sm:$0xff] }
 0x46b   :  { %6145 = vmatprep.subr.mxu0 %v8991_v56  ;;  %6141 = vmatmul.mubr.f32.vlgmr.msra.gmra.mxu1 %v5195_v13  ;;  %v5470_v33 = vsel %vm5121_vm2, %v5469_v34, %v5468_v15  ;;  %v5559_v13 = vld [vmem:[%s8874_s7 + $0x38] sm:$0xff] }
 0x46c   :  { %6146 = vmatpush3.msra.mxu0 %v5282_v57  ;;  %6179 = vmatpush3.msra.mxu1 %v5375_v54  ;;  %v5561_v57 = vld [vmem:[%s8874_s7 + $0x48] sm:$0xff]  ;;  %v5560_v54 = vld [vmem:[%s8874_s7 + $0x40] sm:$0xff] }
 0x46d   :  { %6147 = vmatprep.subr.mxu0 %v8991_v56  ;;  %6180 = vmatprep.subr.mxu1 %v8991_v56 }
 0x46e   :  { %6148 = vmatpush3.msra.mxu0 %v5281_v24  ;;  %6181 = vmatpush3.msra.mxu1 %v5374_v25  ;;  %v5558_v24 = vld [vmem:[%s8874_s7 + $0x30] sm:$0xff]  ;;  %v5557_v25 = vld [vmem:[%s8874_s7 + $0x28] sm:$0xff] }
 0x46f   :  { %6149 = vmatprep.subr.mxu0 %v8991_v56  ;;  %6182 = vmatprep.subr.mxu1 %v8991_v56 }
 0x470   :  { %6150 = vmatpush3.msra.mxu0 %v5280_v38  ;;  %6183 = vmatpush3.msra.mxu1 %v5373_v44  ;;  %v5556_v38 = vld [vmem:[%s8874_s7 + $0x20] sm:$0xff]  ;;  %v5555_v44 = vld [vmem:[%s8874_s7 + $0x18] sm:$0xff] }
 0x471   :  { %6151 = vmatprep.subr.mxu0 %v8991_v56  ;;  %6184 = vmatprep.subr.mxu1 %v8991_v56 }
 0x472   :  { %6152 = vmatpush3.msra.mxu0 %v5279_v42  ;;  %6185 = vmatpush3.msra.mxu1 %v5372_v32  ;;  %v5554_v42 = vld [vmem:[%s8874_s7 + $0x10] sm:$0xff]  ;;  %v5553_v32 = vld [vmem:[%s8874_s7 + $0x8] sm:$0xff] }
 0x473   :  { %6153 = vmatprep.subr.mxu0 %v8991_v56  ;;  %6186 = vmatprep.subr.mxu1 %v8991_v56 }
 0x474   :  { %6154 = vmatpush3.msra.mxu0 %v5278_v41  ;;  %6187 = vmatpush3.msra.mxu1 %v5371_v30  ;;  %v5552_v41 = vld [vmem:[%s8874_s7] sm:$0xff]  ;;  %v5661_v30 = vld [vmem:[%s8876_s9 + $0x78] sm:$0xff] }
 0x475   :  { %6155 = vmatprep.subr.mxu0 %v8991_v56  ;;  %6188 = vmatprep.subr.mxu1 %v8991_v56 }
 0x476   :  { %6156 = vmatpush3.msra.mxu0 %v5277_v47  ;;  %6189 = vmatpush3.msra.mxu1 %v5370_v26  ;;  %v5660_v47 = vld [vmem:[%s8876_s9 + $0x70] sm:$0xff]  ;;  %v5659_v26 = vld [vmem:[%s8876_s9 + $0x68] sm:$0xff] }
 0x477   :  { %6157 = vmatprep.subr.mxu0 %v8991_v56  ;;  %6190 = vmatprep.subr.mxu1 %v8991_v56 }
 0x478   :  { %6158 = vmatpush3.msra.mxu0 %v5276_v12  ;;  %6191 = vmatpush3.msra.mxu1 %v5369_v4  ;;  %v5658_v12 = vld [vmem:[%s8876_s9 + $0x60] sm:$0xff]  ;;  %v5657_v4 = vld [vmem:[%s8876_s9 + $0x58] sm:$0xff] }
 0x479   :  { %6159 = vmatprep.subr.mxu0 %v8991_v56  ;;  %6192 = vmatprep.subr.mxu1 %v8991_v56 }
 0x47a   :  { %6160 = vmatpush3.msra.mxu0 %v5275_v28  ;;  %6193 = vmatpush3.msra.mxu1 %v5368_v29  ;;  %v5656_v28 = vld [vmem:[%s8876_s9 + $0x50] sm:$0xff]  ;;  %v5655_v29 = vld [vmem:[%s8876_s9 + $0x48] sm:$0xff] }
 0x47b   :  { %6161 = vmatprep.subr.mxu0 %v8991_v56  ;;  %6194 = vmatprep.subr.mxu1 %v8991_v56 }
 0x47c   :  { %6162 = vmatpush3.msra.mxu0 %v5274_v31  ;;  %6195 = vmatpush3.msra.mxu1 %v5367_v8  ;;  %v5654_v31 = vld [vmem:[%s8876_s9 + $0x40] sm:$0xff]  ;;  %v5653_v8 = vld [vmem:[%s8876_s9 + $0x38] sm:$0xff] }
 0x47d   :  { %6163 = vmatprep.subr.mxu0 %v8991_v56  ;;  %6196 = vmatprep.subr.mxu1 %v8991_v56 }
 0x47e   :  { %6164 = vmatpush3.msra.mxu0 %v5273_v16  ;;  %6197 = vmatpush3.msra.mxu1 %v5366_v52  ;;  %v5652_v16 = vld [vmem:[%s8876_s9 + $0x30] sm:$0xff]  ;;  %v5651_v52 = vld [vmem:[%s8876_s9 + $0x28] sm:$0xff] }
 0x47f   :  { %6165 = vmatprep.subr.mxu0 %v8991_v56  ;;  %6198 = vmatprep.subr.mxu1 %v8991_v56 }
 0x480   :  { %6166 = vmatpush3.msra.mxu0 %v5272_v23  ;;  %6199 = vmatpush3.msra.mxu1 %v5365_v37  ;;  %v5650_v23 = vld [vmem:[%s8876_s9 + $0x20] sm:$0xff]  ;;  %v5649_v37 = vld [vmem:[%s8876_s9 + $0x18] sm:$0xff] }
 0x481   :  { %6167 = vmatprep.subr.mxu0 %v8991_v56  ;;  %6200 = vmatprep.subr.mxu1 %v8991_v56 }
 0x482   :  { %6168 = vmatpush3.msra.mxu0 %v5271_v40  ;;  %6201 = vmatpush3.msra.mxu1 %v5364_v9 }
 0x483   :  { %6169 = vmatprep.subr.mxu0 %v8991_v56  ;;  %6202 = vmatprep.subr.mxu1 %v8991_v56 }
 0x484   :  { %6170 = vmatpush3.msra.mxu0 %v5270_v53  ;;  %6203 = vmatpush3.msra.mxu1 %v5363_v7 }
 0x485   :  { %6171 = vmatprep.subr.mxu0 %v8991_v56  ;;  %6204 = vmatprep.subr.mxu1 %v8991_v56 }
 0x486   :  { %6172 = vmatpush3.msra.mxu0 %v5269_v61  ;;  %6205 = vmatpush3.msra.mxu1 %v5362_v20 }
 0x487   :  { %6173 = vmatprep.subr.mxu0 %v8991_v56  ;;  %6206 = vmatprep.subr.mxu1 %v8991_v56 }
 0x488   :  { %6174 = vmatpush3.msra.mxu0 %v5268_v18  ;;  %6207 = vmatpush3.msra.mxu1 %v5361_v3 }
 0x489   :  { %6176 = vmatmul.mubr.f32.vlgmr.msra.gmra.mxu0 %v5286_v1  ;;  %6208 = vmatprep.subr.mxu1 %v8991_v56  ;;  %v5951_v1 = vld [vmem:[%s8873_s6] ss:$0 sm:$0xff] }
 0x48a   :  { %6213 = vmatprep.subr.mxu0 %v8991_v56  ;;  %6209 = vmatpush3.msra.mxu1 %v5360_v19 }
 0x48b   :  { %6210 = vmatprep.mubr.msk.f32.mxu1 %vm6433_vm1, %v8991_v56  ;;  %6214 = vmatpush3.msra.mxu0 %v5467_v27 }
 0x48c   :  { %6211 = vmatmul.mubr.f32.vlgmr.msra.gmra.mxu1 %v5378_v63  ;;  %6215 = vmatprep.subr.mxu0 %v8991_v56 }
 0x48d   :  { %6216 = vmatpush3.msra.mxu0 %v5466_v62  ;;  %6245 = vmatprep.mubr.msk.f32.mxu0 %vm6433_vm1, %v8991_v56 }
 0x48e   :  { %6217 = vmatprep.subr.mxu0 %v8991_v56  ;;  %6248 = vmatprep.subr.mxu1 %v8991_v56 }
 0x48f   :  { %6218 = vmatpush3.msra.mxu0 %v5465_v6  ;;  %6280 = vmatprep.mubr.msk.f32.mxu1 %vm6433_vm1, %v8991_v56  ;;  %v5648_v6 = vld [vmem:[%s8876_s9 + $0x10] sm:$0xff] }
 0x490   :  { %6219 = vmatprep.subr.mxu0 %v8991_v56  ;;  %6249 = vmatpush3.msra.mxu1 %v5567_v17 }
 0x491   :  { %6220 = vmatpush3.msra.mxu0 %v5464_v46  ;;  %6250 = vmatprep.subr.mxu1 %v8991_v56  ;;  %v5647_v46 = vld [vmem:[%s8876_s9 + $0x8] sm:$0xff] }
 0x492   :  { %6221 = vmatprep.subr.mxu0 %v8991_v56  ;;  %6251 = vmatpush3.msra.mxu1 %v5566_v2 }
 0x493   :  { %6222 = vmatpush3.msra.mxu0 %v5463_v21  ;;  %6252 = vmatprep.subr.mxu1 %v8991_v56  ;;  %v5646_v21 = vld [vmem:[%s8876_s9] sm:$0xff]  ;;  %s6400_s9 = scalar_lea.vmem %s5747_s29, 32 }
 0x494   :  { %6223 = vmatprep.subr.mxu0 %v8991_v56  ;;  %6253 = vmatpush3.msra.mxu1 %v5565_v49  ;;  %p6401_p10 = scmp.ne.s32.totalorder %s5747_s29, %s6400_s9  ;;  %p6406_p12 = scmp.lt.s32.totalorder %s6400_s9, %s6400_s9 }
 0x495   :  { %6224 = vmatpush3.msra.mxu0 %v5462_v48  ;;  %6254 = vmatprep.subr.mxu1 %v8991_v56  ;;  %v5952_v48 = vld [vmem:[%s8875_s8] ss:$0 sm:$0xff] }
 0x496   :  { %6225 = vmatprep.subr.mxu0 %v8991_v56  ;;  %6255 = vmatpush3.msra.mxu1 %v5564_v14  ;;  %p6407_p13 = por %p6406_p12, %p6405_p11 }
 0x497   :  { %6226 = vmatpush3.msra.mxu0 %v5461_v50  ;;  %6256 = vmatprep.subr.mxu1 %v8991_v56 }
 0x498   :  { %6227 = vmatprep.subr.mxu0 %v8991_v56  ;;  %6257 = vmatpush3.msra.mxu1 %v5563_v22  ;;  %p6408_p0 = pnand %p6407_p13, %p6401_p10 }
 0x499   :  { %6228 = vmatpush3.msra.mxu0 %v5460_v51  ;;  %6258 = vmatprep.subr.mxu1 %v8991_v56 }
 0x49a   :  { %6229 = vmatprep.subr.mxu0 %v8991_v56  ;;  %6259 = vmatpush3.msra.mxu1 %v5562_v5 }
 0x49b   :  { %6230 = vmatpush3.msra.mxu0 %v5459_v58  ;;  %6260 = vmatprep.subr.mxu1 %v8991_v56 }
 0x49c   :  { %6231 = vmatprep.subr.mxu0 %v8991_v56  ;;  %6261 = vmatpush3.msra.mxu1 %v5561_v57 }
 0x49d   :  { %6232 = vmatpush3.msra.mxu0 %v5458_v59  ;;  %6262 = vmatprep.subr.mxu1 %v8991_v56 }
 0x49e   :  { %6233 = vmatprep.subr.mxu0 %v8991_v56  ;;  %6263 = vmatpush3.msra.mxu1 %v5560_v54 }
 0x49f   :  { %6234 = vmatpush3.msra.mxu0 %v5457_v45  ;;  %6264 = vmatprep.subr.mxu1 %v8991_v56  ;;  %v5953_v45 = vld [vmem:[%s8877_s10] ss:$0 sm:$0xff] }
 0x4a0   :  { %6235 = vmatprep.subr.mxu0 %v8991_v56  ;;  %6265 = vmatpush3.msra.mxu1 %v5559_v13 }
 0x4a1   :  { %6236 = vmatpush3.msra.mxu0 %v5456_v43  ;;  %6266 = vmatprep.subr.mxu1 %v8991_v56 }
 0x4a2   :  { %6237 = vmatprep.subr.mxu0 %v8991_v56  ;;  %6267 = vmatpush3.msra.mxu1 %v5558_v24 }
 0x4a3   :  { %6238 = vmatpush3.msra.mxu0 %v5455_v10  ;;  %6268 = vmatprep.subr.mxu1 %v8991_v56 }
 0x4a4   :  { %6239 = vmatprep.subr.mxu0 %v8991_v56  ;;  %6269 = vmatpush3.msra.mxu1 %v5557_v25 }
 0x4a5   :  { %6240 = vmatpush3.msra.mxu0 %v5454_v35  ;;  %6270 = vmatprep.subr.mxu1 %v8991_v56 }
 0x4a6   :  { %6241 = vmatprep.subr.mxu0 %v8991_v56  ;;  %6271 = vmatpush3.msra.mxu1 %v5556_v38 }
 0x4a7   :  { %6242 = vmatpush3.msra.mxu0 %v5453_v36  ;;  %6272 = vmatprep.subr.mxu1 %v8991_v56 }
 0x4a8   :  { %6243 = vmatprep.subr.mxu0 %v8991_v56  ;;  %6273 = vmatpush3.msra.mxu1 %v5555_v44 }
 0x4a9   :  { %6244 = vmatpush3.msra.mxu0 %v5452_v55  ;;  %6274 = vmatprep.subr.mxu1 %v8991_v56 }
 0x4aa   :  { %6246 = vmatmul.mubr.f32.vlgmr.msra.gmra.mxu0 %v5470_v33  ;;  %6283 = vmatprep.subr.mxu0 %v8991_v56 }
 0x4ab   :  { %6315 = vmatprep.mubr.msk.f32.mxu0 %vm6433_vm1, %v8991_v56  ;;  %6275 = vmatpush3.msra.mxu1 %v5554_v42 }
 0x4ac   :  { %6276 = vmatprep.subr.mxu1 %v8991_v56  ;;  %6284 = vmatpush3.msra.mxu0 %v5661_v30 }
 0x4ad   :  { %6277 = vmatpush3.msra.mxu1 %v5553_v32  ;;  %6285 = vmatprep.subr.mxu0 %v8991_v56 }
 0x4ae   :  { %6278 = vmatprep.subr.mxu1 %v8991_v56  ;;  %6286 = vmatpush3.msra.mxu0 %v5660_v47 }
 0x4af   :  { %6279 = vmatpush3.msra.mxu1 %v5552_v41  ;;  %6287 = vmatprep.subr.mxu0 %v8991_v56 }
 0x4b0   :  { %6288 = vmatpush3.msra.mxu0 %v5659_v26 }
 0x4b1   :  { %6289 = vmatprep.subr.mxu0 %v8991_v56 }
 0x4b2   :  { %6290 = vmatpush3.msra.mxu0 %v5658_v12 }
 0x4b3   :  { %6291 = vmatprep.subr.mxu0 %v8991_v56 }
 0x4b4   :  { %6292 = vmatpush3.msra.mxu0 %v5657_v4 }
 0x4b5   :  { %6293 = vmatprep.subr.mxu0 %v8991_v56 }
 0x4b6   :  { %6294 = vmatpush3.msra.mxu0 %v5656_v28 }
 0x4b7   :  { %6295 = vmatprep.subr.mxu0 %v8991_v56 }
 0x4b8   :  { %6296 = vmatpush3.msra.mxu0 %v5655_v29 }
 0x4b9   :  { %6297 = vmatprep.subr.mxu0 %v8991_v56 }
 0x4ba   :  { %6298 = vmatpush3.msra.mxu0 %v5654_v31 }
 0x4bb   :  { %6299 = vmatprep.subr.mxu0 %v8991_v56 }
 0x4bc   :  { %6300 = vmatpush3.msra.mxu0 %v5653_v8 }
 0x4bd   :  { %6301 = vmatprep.subr.mxu0 %v8991_v56 }
 0x4be   :  { %6302 = vmatpush3.msra.mxu0 %v5652_v16 }
 0x4bf   :  { %6303 = vmatprep.subr.mxu0 %v8991_v56 }
 0x4c0   :  { %6304 = vmatpush3.msra.mxu0 %v5651_v52 }
 0x4c1   :  { %6305 = vmatprep.subr.mxu0 %v8991_v56 }
 0x4c2   :  { %6306 = vmatpush3.msra.mxu0 %v5650_v23 }
 0x4c3   :  { %6307 = vmatprep.subr.mxu0 %v8991_v56 }
 0x4c4   :  { %6308 = vmatpush3.msra.mxu0 %v5649_v37 }
 0x4c5   :  { %6309 = vmatprep.subr.mxu0 %v8991_v56 }
 0x4c6   :  { %6310 = vmatpush3.msra.mxu0 %v5648_v6 }
 0x4c7   :  { %6311 = vmatprep.subr.mxu0 %v8991_v56 }
 0x4c8   :  { %6312 = vmatpush3.msra.mxu0 %v5647_v46 }
 0x4c9   :  { %6313 = vmatprep.subr.mxu0 %v8991_v56 }
 0x4ca   :  { %6314 = vmatpush3.msra.mxu0 %v5646_v21 }
 0x529   :  { %v5190_v40 = vpop.f32.mrf.mxu0 }
 0x52b   :  { %v6107_v9 = vpop.f32.mrf.mxu0  ;;  %v5263_v53 = vpop.f32.mrf.mxu1 }
 0x52c   :  { %v5264_v3 = vadd.f32 %v5263_v53, %v5190_v40 }
 0x52d   :  { %v6142_v7 = vpop.f32.mrf.mxu1 }
 0x549   :  { %v5354_v61 = vpop.f32.mrf.mxu0 }
 0x54a   :  { %v5358_v39 = vadd.f32 %v5354_v61, %v5264_v3 }
 0x54b   :  { %v6177_v20 = vpop.f32.mrf.mxu0 }
 0x54c   :  { %v5446_v11 = vpop.f32.mrf.mxu1 }
 0x54d   :  { %v5450_v19 = vadd.f32 %v5446_v11, %v5358_v39 }
 0x54e   :  { %v6212_v18 = vpop.f32.mrf.mxu1 }
 0x56a   :  { %v5538_v0 = vpop.f32.mrf.mxu0 }
 0x56b   :  { %v5542_v27 = vadd.f32 %v5538_v0, %v5450_v19 }
 0x56c   :  { %v6247_v60 = vpop.f32.mrf.mxu0 }
 0x56d   :  { %v5550_v62 = vadd.f32 %v5951_v1, %v5542_v27 }
 0x56f   :  { %v5551_v63 = vmax.f32 %v5550_v62, 0.0 }
 0x571   :  { %6281 = vmatmul.mubr.f32.vlgmr.msra.gmra.mxu1 %v5551_v63 }
 0x631   :  { %v5641_v50 = vpop.f32.mrf.mxu1 }
 0x632   :  { %v5642_v51 = vadd.f32 %v5952_v48, %v5641_v50 }
 0x633   :  { %v6282_v58 = vpop.f32.mrf.mxu1 }
 0x634   :  { %v5645_v59 = vmax.f32 %v5642_v51, 0.0 }
 0x636   :  { %6316 = vmatmul.mubr.f32.vlgmr.msra.gmra.mxu0 %v5645_v59 }
 0x6f6   :  { %v5735_v56 = vpop.f32.mrf.mxu0 }
 0x6f7   :  { %v5736_v43 = vadd.f32 %v5953_v45, %v5735_v56 }
 0x6f8   :  { %v6317_v10 = vpop.f32.mrf.mxu0 }
 0x6f9   :  { %5739 = vst [vmem:[#allocation9] sm:$0x3] %v5736_v43 }
 0x6fa   :  { %6411 = shalt.err (!%p6408_p0)
}
 0x6fb   :  { %5749 = dma.vmem_to_hbm [thread:$0]  %s5747_s29, 32, %s8878_s11, [#allocation6]  }
 0x6fc   :  { %6424 = dma.done.wait [#allocation6], 32  }
 0x6fd   :  { %6425 = vsyncadd [#allocation6], 4294967264 }
 0x6fe   :  { %5753 = vsyncpa [#allocation5], 1 }
 0x6ff   :  { %5754 = vsyncpa [#allocation8], 1 }
 0x700   :  { %5755 = vsyncpa [#allocation6], 1 }

</bundles_post_ra>
